<compile_context>
chip_gen: v6e
topology: v6e:2x2x1
jax: 0.10.0
libtpu: 0.0.40
codegen_flags: <defaults>
</compile_context>

<pallas_src>
import functools

import jax
import jax.numpy as jnp
from jax.experimental import pallas as pl
from jax.experimental.pallas import tpu as pltpu

NUM_GATES = 4
NUM_STATES = 4


def _log_sigmoid(x):
    # numerically stable log(sigmoid(x)) using basic elementwise ops
    return jnp.minimum(x, 0.0) - jnp.log(1.0 + jnp.exp(-jnp.abs(x)))


def _slstm_kernel(n0_ref, x_ref, w_ref, b_ref, s0_ref, y_ref, sfin_ref, state_scr):
    """One grid step = one chunk of T timesteps for one batch tile.

    n0_ref   : SMEM (1,) int32    1 iff the initial normalizer n has any nonzero
    x_ref    : (tb, T, 4*hidden)  Wx chunk, batch-major (no wrapper transpose)
    w_ref    : (hidden, 4*hidden) block-diagonal recurrent weight (VMEM resident)
    b_ref    : (1, 4*hidden)      f32 bias flattened like the reference
    s0_ref   : (4, tb, hidden)    initial (h, c, n, m)
    y_ref    : (T, tb, hidden)    hidden-state slab for this chunk
    sfin_ref : (4, tb, hidden)    final state (written on the last chunk)
    state_scr: VMEM (4, tb, hidden) f32 — carries the state across time chunks
    """
    tc = pl.program_id(1)
    ntc = pl.num_programs(1)

    @pl.when(tc == 0)
    def _():
        state_scr[...] = s0_ref[...].astype(jnp.float32)

    h = state_scr[0]
    c = state_scr[1]
    m = state_scr[3]
    # n (state_scr[2]) is only ever consulted through the whole-batch flag below.

    hidden = h.shape[-1]
    T = x_ref.shape[1]

    # hoisted: resident for the whole chunk
    w = w_ref[...]
    b = b_ref[...]

    # reference: `if torch.all(n == 0.0): mnew = iraw else: max(iraw, logfplusm)`
    # With the state carried inside the kernel this can only trigger at the very
    # first global timestep; the whole-batch flag is computed once in the wrapper.
    use_iraw = jnp.logical_and(tc == 0, n0_ref[0] == 0)

    nnew = None
    for ts in range(T):            # static unroll: T is a compile-time block size
        # single lane-dense matmul on the MXU: (tb, hidden) @ (hidden, 4*hidden)
        ry = jnp.dot(h.astype(w.dtype), w, preferred_element_type=jnp.float32)
        raw = x_ref[:, ts, :].astype(jnp.float32) + ry + b

        # gate-major split, exactly like raw.view(batch, 4, -1).unbind(dim=1)
        iraw = raw[:, 0 * hidden:1 * hidden]
        fraw = raw[:, 1 * hidden:2 * hidden]
        zraw = raw[:, 2 * hidden:3 * hidden]
        oraw = raw[:, 3 * hidden:4 * hidden]

        logfplusm = m + _log_sigmoid(fraw)
        if ts == 0:
            mnew = jnp.where(use_iraw, iraw, jnp.maximum(iraw, logfplusm))
        else:
            # TODO(synk): the reference re-checks `torch.all(n == 0)` every step;
            # mid-sequence all-zero n is a measure-zero corner case and is not
            # reproduced (saves a whole-batch cross-lane reduce per timestep).
            mnew = jnp.maximum(iraw, logfplusm)

        ogate = jax.nn.sigmoid(oraw)
        igate = jnp.exp(iraw - mnew)
        fgate = jnp.exp(logfplusm - mnew)
        cnew = fgate * c + igate * jnp.tanh(zraw)
        nnew = fgate * h + igate          # (sic) matches the reference module
        hnew = ogate * cnew * pl.reciprocal(nnew, approx=False)

        y_ref[ts] = hnew.astype(y_ref.dtype)
        h, c, m = hnew, cnew, mnew

    # carry state to the next time chunk (and to the final-state output)
    state_scr[0] = h
    state_scr[1] = c
    state_scr[2] = nnew
    state_scr[3] = m

    @pl.when(tc == ntc - 1)
    def _():
        sfin_ref[...] = state_scr[...].astype(sfin_ref.dtype)


def _build_effective_weight(recurrent_kernel):
    """Replicate the module's permute/reshape gymnastics and fold the per-head
    recurrent kernels into one block-diagonal (hidden, num_gates*hidden) matrix
    whose columns are laid out gate-major (gate, head, dim) — exactly the Ry
    layout the reference produces before the gate split."""
    H, d, G, d2 = recurrent_kernel.shape
    assert G == NUM_GATES and d2 == d
    # the reference's reshape (H,4,d,d)->(H,d,H*d) is only valid for H == num_gates
    assert H == G, "reference sLSTMCell reshape requires num_heads == num_gates (4)"
    rk = jnp.transpose(recurrent_kernel, (0, 2, 3, 1)).reshape(H, d, H * d)
    rk = jnp.transpose(rk, (0, 2, 1)).reshape(H, d, G * d)   # (h, a, g*d + k)
    rk = rk.reshape(H, d, G, d)                               # (h, a, g, k)
    eye = jnp.eye(H, dtype=rk.dtype)
    w = jnp.einsum("hagk,hj->hagjk", rk, eye)                 # (h_in, a, g, h_out, k)
    return w.reshape(H * d, G * H * d)


def _pick_time_chunk(seq):
    # second-to-last block dim of x must be a multiple of 8 or the full seq dim
    for cand in (32, 16, 8):
        if seq % cand == 0:
            return cand
    return seq


@functools.partial(jax.jit, static_argnames=("tile_b", "time_chunk", "mxu_dtype"))
def slstm_cell_forward(x, recurrent_kernel, bias, state=None, *,
                       tile_b=None, time_chunk=None, mxu_dtype=jnp.bfloat16):
    """x: (batch, seq, num_gates*hidden) pre-activations Wx.
    recurrent_kernel: (num_heads, head_dim, num_gates, head_dim)
    bias            : (num_heads, num_gates, head_dim)
    Returns (output, final_state) = ((seq, batch, hidden), (4, batch, hidden)),
    matching (all_states[0][1:], all_states[:, -1]) of the PyTorch module.

    tile_b:     batch tile ("parallel" axis).  Default = full batch, right for
                v5e/v6e; pass batch//2 (multiple of 8, ideally >= 256) on v7x so
                both TensorCores get work.
    time_chunk: timesteps per grid step (must divide seq; multiple of 8 or seq).
    mxu_dtype:  dtype of the matmul operands (bf16 default, f32 accumulation).
    """
    batch, seq, feat = x.shape
    H, d, G, _ = recurrent_kernel.shape
    hidden = H * d
    assert feat == G * hidden

    w_eff = _build_effective_weight(recurrent_kernel).astype(mxu_dtype)
    b_flat = bias.reshape(1, G * hidden).astype(jnp.float32)  # torch: b.reshape(1,-1)

    if state is None:
        state = jnp.zeros((NUM_STATES, batch, hidden), jnp.float32)
    state = state.astype(jnp.float32)

    # whole-batch `torch.all(n == 0)` flag for the very first timestep
    n0_nonzero = jnp.any(state[2] != 0.0).astype(jnp.int32).reshape(1)

    # pad batch to a multiple of 8 so every block is sublane-aligned
    pad_b = (-batch) % 8
    if pad_b:
        x = jnp.pad(x, ((0, pad_b), (0, 0), (0, 0)))
        state = jnp.pad(state, ((0, 0), (0, pad_b), (0, 0)))
    batch_p = batch + pad_b

    # batch tile ("parallel" axis)
    if (tile_b is not None and 0 < tile_b < batch_p
            and batch_p % tile_b == 0 and tile_b % 8 == 0):
        tb = tile_b
    else:
        tb = batch_p

    # time chunk (sequential "arbitrary" axis)
    if (time_chunk is not None and 0 < time_chunk <= seq
            and seq % time_chunk == 0
            and (time_chunk % 8 == 0 or time_chunk == seq)):
        T = time_chunk
    else:
        T = _pick_time_chunk(seq)

    grid = (batch_p // tb, seq // T)

    y, final_state = pl.pallas_call(
        _slstm_kernel,
        out_shape=(
            jax.ShapeDtypeStruct((seq, batch_p, hidden), x.dtype),
            jax.ShapeDtypeStruct((NUM_STATES, batch_p, hidden), jnp.float32),
        ),
        grid_spec=pltpu.PrefetchScalarGridSpec(
            num_scalar_prefetch=1,
            grid=grid,
            in_specs=[
                # x stays batch-major: no wrapper transpose / extra HBM pass
                pl.BlockSpec((tb, T, G * hidden), lambda b, t, n0: (b, t, 0)),
                # constant block index -> VMEM-resident; single-buffered to avoid
                # a wasted 2x weight copy (matters for big hidden on v7x)
                pl.BlockSpec((hidden, G * hidden), lambda b, t, n0: (0, 0),
                             pipeline_mode=pl.Buffered(1)),
                pl.BlockSpec((1, G * hidden), lambda b, t, n0: (0, 0),
                             pipeline_mode=pl.Buffered(1)),
                pl.BlockSpec((NUM_STATES, tb, hidden), lambda b, t, n0: (0, b, 0)),
            ],
            out_specs=[
                pl.BlockSpec((T, tb, hidden), lambda b, t, n0: (t, b, 0)),
                pl.BlockSpec((NUM_STATES, tb, hidden), lambda b, t, n0: (0, b, 0)),
            ],
            scratch_shapes=[pltpu.VMEM((NUM_STATES, tb, hidden), jnp.float32)],
        ),
        compiler_params=pltpu.CompilerParams(
            dimension_semantics=("parallel", "arbitrary"),
            # 48 MiB is safe on v5e/v6e (128 MiB physical) and leaves headroom on
            # v7x (64 MiB physical).  If a large configuration exceeds it, shrink
            # tile_b / time_chunk — never the lane (hidden) dimension.
            vmem_limit_bytes=48 << 20,
        ),
    )(n0_nonzero, x, w_eff, b_flat, state)

    if pad_b:
        y = y[:, :batch, :]
        final_state = final_state[:, :batch, :]
    return y, final_state


def slstm_reference(x, recurrent_kernel, bias, state=None):
    """Pure-JAX transcription of the PyTorch module (for verification)."""
    xs = jnp.transpose(x, (1, 0, 2))
    H, d, G, _ = recurrent_kernel.shape
    hidden = H * d
    seq, batch, _ = xs.shape
    if state is None:
        state = jnp.zeros((NUM_STATES, batch, hidden), jnp.float32)
    rk = jnp.transpose(recurrent_kernel, (0, 2, 3, 1)).reshape(H, d, H * d)
    rk = jnp.transpose(rk, (0, 2, 1)).reshape(1, H, d, G * d)
    b_flat = bias.reshape(1, -1)
    states = state
    outs = []
    for t in range(seq):
        h, c, n, m = states[0], states[1], states[2], states[3]
        ry = jnp.matmul(h.reshape(batch, H, 1, d), rk,
                        precision=jax.lax.Precision.HIGHEST)
        ry = jnp.transpose(ry.reshape(batch, H, G, d), (0, 2, 1, 3)).reshape(batch, -1)
        raw = xs[t] + ry + b_flat
        iraw, fraw, zraw, oraw = jnp.split(raw, 4, axis=1)
        logfplusm = m + _log_sigmoid(fraw)
        mnew = jnp.where(jnp.all(n == 0.0), iraw, jnp.maximum(iraw, logfplusm))
        ogate = jax.nn.sigmoid(oraw)
        igate = jnp.exp(iraw - mnew)
        fgate = jnp.exp(logfplusm - mnew)
        cnew = fgate * c + igate * jnp.tanh(zraw)
        nnew = fgate * h + igate
        hnew = ogate * cnew / nnew
        states = jnp.stack([hnew, cnew, nnew, mnew], axis=0)
        outs.append(hnew)
    return jnp.stack(outs, axis=0), states


if __name__ == "__main__":
    batch, seq = 2, 8
    num_heads, head_dim = 4, 8                 # hidden = 32, gates*hidden = 128
    hidden = num_heads * head_dim

    key = jax.random.PRNGKey(0)
    kx, kw, kb = jax.random.split(key, 3)
    std = 1.0 / (hidden ** 0.5)
    recurrent_kernel = jax.random.uniform(
        kw, (num_heads, head_dim, NUM_GATES, head_dim),
        minval=-std, maxval=std, dtype=jnp.float32)
    bias = jax.random.uniform(
        kb, (num_heads, NUM_GATES, head_dim),
        minval=-std, maxval=std, dtype=jnp.float32)
    x = jax.random.normal(kx, (batch, seq, NUM_GATES * hidden), dtype=jnp.float32)

    ref_out, ref_state = slstm_reference(x, recurrent_kernel, bias)

    # strict logic check: f32 MXU operands vs. the pure-JAX reference
    out, final_state = slstm_cell_forward(x, recurrent_kernel, bias,
                                          mxu_dtype=jnp.float32)
    out = jax.block_until_ready(out)
    final_state = jax.block_until_ready(final_state)
    assert out.shape == (seq, batch, hidden)
    assert final_state.shape == (NUM_STATES, batch, hidden)
    assert jnp.allclose(out, ref_out, atol=1e-3, rtol=1e-3)
    assert jnp.allclose(final_state, ref_state, atol=1e-3, rtol=1e-3)

    # production path: bf16 MXU operands (f32 accumulation / gate math)
    out_bf, state_bf = slstm_cell_forward(x, recurrent_kernel, bias)
    out_bf = jax.block_until_ready(out_bf)
    state_bf = jax.block_until_ready(state_bf)
    assert out_bf.shape == (seq, batch, hidden)
    assert bool(jnp.all(jnp.isfinite(out_bf)))
    assert bool(jnp.all(jnp.isfinite(state_bf)))

    print("KERNEL_OK")
</pallas_src>

<mosaic_0001>
module attributes {stable_mosaic.version = 11 : i64} {
  func.func @_slstm_kernel(%arg0: i32, %arg1: i32, %arg2: memref<1xi32, #tpu.memory_space<smem>>, %arg3: memref<8x8x128xf32, #tpu.memory_space<vmem>>, %arg4: memref<32x128xf32, #tpu.memory_space<vmem>>, %arg5: memref<1x128xf32, #tpu.memory_space<vmem>>, %arg6: memref<4x8x32xf32, #tpu.memory_space<vmem>>, %arg7: memref<8x8x32xf32, #tpu.memory_space<vmem>>, %arg8: memref<4x8x32xf32, #tpu.memory_space<vmem>>, %arg9: memref<4x8x32xf32, #tpu.memory_space<vmem>>) attributes {dimension_semantics = [#tpu.dimension_semantics<parallel>, #tpu.dimension_semantics<arbitrary>], iteration_bounds = array<i64: 1, 1>, scalar_prefetch = 1 : i64, scratch_operands = 1 : i64, tpu.core_type = #tpu.core_type<tc>, window_params = [{transform_indices = @transform_0, window_bounds = array<i64: 8, 8, 128>}, {pipeline_mode = #tpu.pipeline_mode<synchronous>, transform_indices = @transform_1, window_bounds = array<i64: 32, 128>}, {pipeline_mode = #tpu.pipeline_mode<synchronous>, transform_indices = @transform_2, window_bounds = array<i64: 1, 128>}, {transform_indices = @transform_3, window_bounds = array<i64: 4, 8, 32>}, {transform_indices = @transform_4, window_bounds = array<i64: 8, 8, 32>}, {transform_indices = @transform_5, window_bounds = array<i64: 4, 8, 32>}]} {
    %c0_i32 = arith.constant 0 : i32
    %0 = arith.cmpi eq, %arg1, %c0_i32 : i32
    %1 = arith.extui %0 : i1 to i32
    %c0_i32_0 = arith.constant 0 : i32
    %2 = arith.cmpi ne, %1, %c0_i32_0 : i32
    scf.if %2 {
      %c0_110 = arith.constant 0 : index
      %c0_111 = arith.constant 0 : index
      %c0_112 = arith.constant 0 : index
      %375 = vector.load %arg6[%c0_110, %c0_111, %c0_112] : memref<4x8x32xf32, #tpu.memory_space<vmem>>, vector<4x8x32xf32>
      %c0_113 = arith.constant 0 : index
      %c0_114 = arith.constant 0 : index
      %c0_115 = arith.constant 0 : index
      %376 = vector.load %arg9[%c0_113, %c0_114, %c0_115] : memref<4x8x32xf32, #tpu.memory_space<vmem>>, vector<4x8x32xf32>
      tpu.vector_store %arg9[%c0_113, %c0_114, %c0_115], %375 {strides = array<i32>} : memref<4x8x32xf32, #tpu.memory_space<vmem>>, vector<4x8x32xf32>,
    } else {
    }
    %c0 = arith.constant 0 : index
    %c0_1 = arith.constant 0 : index
    %c0_2 = arith.constant 0 : index
    %3 = vector.load %arg9[%c0, %c0_1, %c0_2] : memref<4x8x32xf32, #tpu.memory_space<vmem>>, vector<1x8x32xf32>
    %4 = vector.shape_cast %3 : vector<1x8x32xf32> to vector<8x32xf32>
    %c1 = arith.constant 1 : index
    %c0_3 = arith.constant 0 : index
    %c0_4 = arith.constant 0 : index
    %5 = vector.load %arg9[%c1, %c0_3, %c0_4] : memref<4x8x32xf32, #tpu.memory_space<vmem>>, vector<1x8x32xf32>
    %6 = vector.shape_cast %5 : vector<1x8x32xf32> to vector<8x32xf32>
    %c3 = arith.constant 3 : index
    %c0_5 = arith.constant 0 : index
    %c0_6 = arith.constant 0 : index
    %7 = vector.load %arg9[%c3, %c0_5, %c0_6] : memref<4x8x32xf32, #tpu.memory_space<vmem>>, vector<1x8x32xf32>
    %8 = vector.shape_cast %7 : vector<1x8x32xf32> to vector<8x32xf32>
    %c0_7 = arith.constant 0 : index
    %c0_8 = arith.constant 0 : index
    %9 = vector.load %arg4[%c0_7, %c0_8] : memref<32x128xf32, #tpu.memory_space<vmem>>, vector<32x128xf32>
    %c0_9 = arith.constant 0 : index
    %c0_10 = arith.constant 0 : index
    %10 = vector.load %arg5[%c0_9, %c0_10] : memref<1x128xf32, #tpu.memory_space<vmem>>, vector<1x128xf32>
    %c0_i32_11 = arith.constant 0 : i32
    %11 = arith.cmpi eq, %arg1, %c0_i32_11 : i32
    %c0_12 = arith.constant 0 : index
    %12 = memref.load %arg2[%c0_12] : memref<1xi32, #tpu.memory_space<smem>>
    %c0_i32_13 = arith.constant 0 : i32
    %13 = arith.cmpi eq, %12, %c0_i32_13 : i32
    %14 = arith.andi %11, %13 : i1
    %cst = arith.constant dense<0.000000e+00> : vector<8x128xf32>
    %15 = tpu.matmul %4, %9, %cst {dimension_numbers = #tpu.dot_dimension_numbers<[1], [0], [0], [1], [0, 0, 1, 1], [], []>} : vector<8x32xf32>, vector<32x128xf32>, vector<8x128xf32> -> vector<8x128xf32>
    %c0_14 = arith.constant 0 : index
    %c0_15 = arith.constant 0 : index
    %c0_16 = arith.constant 0 : index
    %16 = vector.load %arg3[%c0_14, %c0_15, %c0_16] : memref<8x8x128xf32, #tpu.memory_space<vmem>>, vector<8x1x128xf32>
    %17 = vector.shape_cast %16 : vector<8x1x128xf32> to vector<8x128xf32>
    %18 = arith.addf %17, %15 : vector<8x128xf32>
    %19 = vector.broadcast %10 : vector<1x128xf32> to vector<8x128xf32>
    %20 = arith.addf %18, %19 : vector<8x128xf32>
    %21 = vector.extract_strided_slice %20 {offsets = [0, 0], sizes = [8, 32], strides = [1, 1]} : vector<8x128xf32> to vector<8x32xf32>
    %22 = vector.extract_strided_slice %20 {offsets = [0, 32], sizes = [8, 32], strides = [1, 1]} : vector<8x128xf32> to vector<8x32xf32>
    %23 = vector.extract_strided_slice %20 {offsets = [0, 64], sizes = [8, 32], strides = [1, 1]} : vector<8x128xf32> to vector<8x32xf32>
    %24 = vector.extract_strided_slice %20 {offsets = [0, 96], sizes = [8, 32], strides = [1, 1]} : vector<8x128xf32> to vector<8x32xf32>
    %cst_17 = arith.constant 0.000000e+00 : f32
    %25 = vector.broadcast %cst_17 : f32 to vector<8x32xf32>
    %26 = arith.minimumf %22, %25 : vector<8x32xf32>
    %27 = math.absf %22 : vector<8x32xf32>
    %cst_18 = arith.constant 0.000000e+00 : f32
    %28 = vector.broadcast %cst_18 : f32 to vector<8x32xf32>
    %29 = arith.subf %28, %27 : vector<8x32xf32>
    %30 = math.exp %29 : vector<8x32xf32>
    %cst_19 = arith.constant 1.000000e+00 : f32
    %31 = vector.broadcast %cst_19 : f32 to vector<8x32xf32>
    %32 = arith.addf %31, %30 : vector<8x32xf32>
    %33 = math.log %32 : vector<8x32xf32>
    %34 = arith.subf %26, %33 : vector<8x32xf32>
    %35 = arith.addf %8, %34 : vector<8x32xf32>
    %36 = arith.maximumf %21, %35 : vector<8x32xf32>
    %37 = arith.select %14, %21, %36 : vector<8x32xf32>
    %38 = arith.negf %24 : vector<8x32xf32>
    %39 = math.exp %38 : vector<8x32xf32>
    %cst_20 = arith.constant 1.000000e+00 : f32
    %40 = vector.broadcast %cst_20 : f32 to vector<8x32xf32>
    %41 = arith.addf %40, %39 : vector<8x32xf32>
    %42 = arith.divf %40, %41 : vector<8x32xf32>
    %43 = arith.subf %21, %37 : vector<8x32xf32>
    %44 = math.exp %43 : vector<8x32xf32>
    %45 = arith.subf %35, %37 : vector<8x32xf32>
    %46 = math.exp %45 : vector<8x32xf32>
    %47 = arith.mulf %46, %6 : vector<8x32xf32>
    %48 = math.tanh %23 : vector<8x32xf32>
    %49 = arith.mulf %44, %48 : vector<8x32xf32>
    %50 = arith.addf %47, %49 : vector<8x32xf32>
    %51 = arith.mulf %46, %4 : vector<8x32xf32>
    %52 = arith.addf %51, %44 : vector<8x32xf32>
    %53 = arith.mulf %42, %50 : vector<8x32xf32>
    %54 = tpu.reciprocal %52 : vector<8x32xf32> -> vector<8x32xf32>
    %55 = arith.mulf %53, %54 : vector<8x32xf32>
    %c0_21 = arith.constant 0 : index
    %c0_22 = arith.constant 0 : index
    %c0_23 = arith.constant 0 : index
    %56 = vector.load %arg7[%c0_21, %c0_22, %c0_23] : memref<8x8x32xf32, #tpu.memory_space<vmem>>, vector<1x8x32xf32>
    %57 = vector.shape_cast %56 : vector<1x8x32xf32> to vector<8x32xf32>
    %58 = vector.shape_cast %55 : vector<8x32xf32> to vector<1x8x32xf32>
    tpu.vector_store %arg7[%c0_21, %c0_22, %c0_23], %58 {strides = array<i32>} : memref<8x8x32xf32, #tpu.memory_space<vmem>>, vector<1x8x32xf32>,
    %cst_24 = arith.constant dense<0.000000e+00> : vector<8x128xf32>
    %59 = tpu.matmul %55, %9, %cst_24 {dimension_numbers = #tpu.dot_dimension_numbers<[1], [0], [0], [1], [0, 0, 1, 1], [], []>} : vector<8x32xf32>, vector<32x128xf32>, vector<8x128xf32> -> vector<8x128xf32>
    %c0_25 = arith.constant 0 : index
    %c1_26 = arith.constant 1 : index
    %c0_27 = arith.constant 0 : index
    %60 = vector.load %arg3[%c0_25, %c1_26, %c0_27] : memref<8x8x128xf32, #tpu.memory_space<vmem>>, vector<8x1x128xf32>
    %61 = vector.shape_cast %60 : vector<8x1x128xf32> to vector<8x128xf32>
    %62 = arith.addf %61, %59 : vector<8x128xf32>
    %63 = vector.broadcast %10 : vector<1x128xf32> to vector<8x128xf32>
    %64 = arith.addf %62, %63 : vector<8x128xf32>
    %65 = vector.extract_strided_slice %64 {offsets = [0, 0], sizes = [8, 32], strides = [1, 1]} : vector<8x128xf32> to vector<8x32xf32>
    %66 = vector.extract_strided_slice %64 {offsets = [0, 32], sizes = [8, 32], strides = [1, 1]} : vector<8x128xf32> to vector<8x32xf32>
    %67 = vector.extract_strided_slice %64 {offsets = [0, 64], sizes = [8, 32], strides = [1, 1]} : vector<8x128xf32> to vector<8x32xf32>
    %68 = vector.extract_strided_slice %64 {offsets = [0, 96], sizes = [8, 32], strides = [1, 1]} : vector<8x128xf32> to vector<8x32xf32>
    %cst_28 = arith.constant 0.000000e+00 : f32
    %69 = vector.broadcast %cst_28 : f32 to vector<8x32xf32>
    %70 = arith.minimumf %66, %69 : vector<8x32xf32>
    %71 = math.absf %66 : vector<8x32xf32>
    %cst_29 = arith.constant 0.000000e+00 : f32
    %72 = vector.broadcast %cst_29 : f32 to vector<8x32xf32>
    %73 = arith.subf %72, %71 : vector<8x32xf32>
    %74 = math.exp %73 : vector<8x32xf32>
    %cst_30 = arith.constant 1.000000e+00 : f32
    %75 = vector.broadcast %cst_30 : f32 to vector<8x32xf32>
    %76 = arith.addf %75, %74 : vector<8x32xf32>
    %77 = math.log %76 : vector<8x32xf32>
    %78 = arith.subf %70, %77 : vector<8x32xf32>
    %79 = arith.addf %37, %78 : vector<8x32xf32>
    %80 = arith.maximumf %65, %79 : vector<8x32xf32>
    %81 = arith.negf %68 : vector<8x32xf32>
    %82 = math.exp %81 : vector<8x32xf32>
    %cst_31 = arith.constant 1.000000e+00 : f32
    %83 = vector.broadcast %cst_31 : f32 to vector<8x32xf32>
    %84 = arith.addf %83, %82 : vector<8x32xf32>
    %85 = arith.divf %83, %84 : vector<8x32xf32>
    %86 = arith.subf %65, %80 : vector<8x32xf32>
    %87 = math.exp %86 : vector<8x32xf32>
    %88 = arith.subf %79, %80 : vector<8x32xf32>
    %89 = math.exp %88 : vector<8x32xf32>
    %90 = arith.mulf %89, %50 : vector<8x32xf32>
    %91 = math.tanh %67 : vector<8x32xf32>
    %92 = arith.mulf %87, %91 : vector<8x32xf32>
    %93 = arith.addf %90, %92 : vector<8x32xf32>
    %94 = arith.mulf %89, %55 : vector<8x32xf32>
    %95 = arith.addf %94, %87 : vector<8x32xf32>
    %96 = arith.mulf %85, %93 : vector<8x32xf32>
    %97 = tpu.reciprocal %95 : vector<8x32xf32> -> vector<8x32xf32>
    %98 = arith.mulf %96, %97 : vector<8x32xf32>
    %c1_32 = arith.constant 1 : index
    %c0_33 = arith.constant 0 : index
    %c0_34 = arith.constant 0 : index
    %99 = vector.load %arg7[%c1_32, %c0_33, %c0_34] : memref<8x8x32xf32, #tpu.memory_space<vmem>>, vector<1x8x32xf32>
    %100 = vector.shape_cast %99 : vector<1x8x32xf32> to vector<8x32xf32>
    %101 = vector.shape_cast %98 : vector<8x32xf32> to vector<1x8x32xf32>
    tpu.vector_store %arg7[%c1_32, %c0_33, %c0_34], %101 {strides = array<i32>} : memref<8x8x32xf32, #tpu.memory_space<vmem>>, vector<1x8x32xf32>,
    %cst_35 = arith.constant dense<0.000000e+00> : vector<8x128xf32>
    %102 = tpu.matmul %98, %9, %cst_35 {dimension_numbers = #tpu.dot_dimension_numbers<[1], [0], [0], [1], [0, 0, 1, 1], [], []>} : vector<8x32xf32>, vector<32x128xf32>, vector<8x128xf32> -> vector<8x128xf32>
    %c0_36 = arith.constant 0 : index
    %c2 = arith.constant 2 : index
    %c0_37 = arith.constant 0 : index
    %103 = vector.load %arg3[%c0_36, %c2, %c0_37] : memref<8x8x128xf32, #tpu.memory_space<vmem>>, vector<8x1x128xf32>
    %104 = vector.shape_cast %103 : vector<8x1x128xf32> to vector<8x128xf32>
    %105 = arith.addf %104, %102 : vector<8x128xf32>
    %106 = vector.broadcast %10 : vector<1x128xf32> to vector<8x128xf32>
    %107 = arith.addf %105, %106 : vector<8x128xf32>
    %108 = vector.extract_strided_slice %107 {offsets = [0, 0], sizes = [8, 32], strides = [1, 1]} : vector<8x128xf32> to vector<8x32xf32>
    %109 = vector.extract_strided_slice %107 {offsets = [0, 32], sizes = [8, 32], strides = [1, 1]} : vector<8x128xf32> to vector<8x32xf32>
    %110 = vector.extract_strided_slice %107 {offsets = [0, 64], sizes = [8, 32], strides = [1, 1]} : vector<8x128xf32> to vector<8x32xf32>
    %111 = vector.extract_strided_slice %107 {offsets = [0, 96], sizes = [8, 32], strides = [1, 1]} : vector<8x128xf32> to vector<8x32xf32>
    %cst_38 = arith.constant 0.000000e+00 : f32
    %112 = vector.broadcast %cst_38 : f32 to vector<8x32xf32>
    %113 = arith.minimumf %109, %112 : vector<8x32xf32>
    %114 = math.absf %109 : vector<8x32xf32>
    %cst_39 = arith.constant 0.000000e+00 : f32
    %115 = vector.broadcast %cst_39 : f32 to vector<8x32xf32>
    %116 = arith.subf %115, %114 : vector<8x32xf32>
    %117 = math.exp %116 : vector<8x32xf32>
    %cst_40 = arith.constant 1.000000e+00 : f32
    %118 = vector.broadcast %cst_40 : f32 to vector<8x32xf32>
    %119 = arith.addf %118, %117 : vector<8x32xf32>
    %120 = math.log %119 : vector<8x32xf32>
    %121 = arith.subf %113, %120 : vector<8x32xf32>
    %122 = arith.addf %80, %121 : vector<8x32xf32>
    %123 = arith.maximumf %108, %122 : vector<8x32xf32>
    %124 = arith.negf %111 : vector<8x32xf32>
    %125 = math.exp %124 : vector<8x32xf32>
    %cst_41 = arith.constant 1.000000e+00 : f32
    %126 = vector.broadcast %cst_41 : f32 to vector<8x32xf32>
    %127 = arith.addf %126, %125 : vector<8x32xf32>
    %128 = arith.divf %126, %127 : vector<8x32xf32>
    %129 = arith.subf %108, %123 : vector<8x32xf32>
    %130 = math.exp %129 : vector<8x32xf32>
    %131 = arith.subf %122, %123 : vector<8x32xf32>
    %132 = math.exp %131 : vector<8x32xf32>
    %133 = arith.mulf %132, %93 : vector<8x32xf32>
    %134 = math.tanh %110 : vector<8x32xf32>
    %135 = arith.mulf %130, %134 : vector<8x32xf32>
    %136 = arith.addf %133, %135 : vector<8x32xf32>
    %137 = arith.mulf %132, %98 : vector<8x32xf32>
    %138 = arith.addf %137, %130 : vector<8x32xf32>
    %139 = arith.mulf %128, %136 : vector<8x32xf32>
    %140 = tpu.reciprocal %138 : vector<8x32xf32> -> vector<8x32xf32>
    %141 = arith.mulf %139, %140 : vector<8x32xf32>
    %c2_42 = arith.constant 2 : index
    %c0_43 = arith.constant 0 : index
    %c0_44 = arith.constant 0 : index
    %142 = vector.load %arg7[%c2_42, %c0_43, %c0_44] : memref<8x8x32xf32, #tpu.memory_space<vmem>>, vector<1x8x32xf32>
    %143 = vector.shape_cast %142 : vector<1x8x32xf32> to vector<8x32xf32>
    %144 = vector.shape_cast %141 : vector<8x32xf32> to vector<1x8x32xf32>
    tpu.vector_store %arg7[%c2_42, %c0_43, %c0_44], %144 {strides = array<i32>} : memref<8x8x32xf32, #tpu.memory_space<vmem>>, vector<1x8x32xf32>,
    %cst_45 = arith.constant dense<0.000000e+00> : vector<8x128xf32>
    %145 = tpu.matmul %141, %9, %cst_45 {dimension_numbers = #tpu.dot_dimension_numbers<[1], [0], [0], [1], [0, 0, 1, 1], [], []>} : vector<8x32xf32>, vector<32x128xf32>, vector<8x128xf32> -> vector<8x128xf32>
    %c0_46 = arith.constant 0 : index
    %c3_47 = arith.constant 3 : index
    %c0_48 = arith.constant 0 : index
    %146 = vector.load %arg3[%c0_46, %c3_47, %c0_48] : memref<8x8x128xf32, #tpu.memory_space<vmem>>, vector<8x1x128xf32>
    %147 = vector.shape_cast %146 : vector<8x1x128xf32> to vector<8x128xf32>
    %148 = arith.addf %147, %145 : vector<8x128xf32>
    %149 = vector.broadcast %10 : vector<1x128xf32> to vector<8x128xf32>
    %150 = arith.addf %148, %149 : vector<8x128xf32>
    %151 = vector.extract_strided_slice %150 {offsets = [0, 0], sizes = [8, 32], strides = [1, 1]} : vector<8x128xf32> to vector<8x32xf32>
    %152 = vector.extract_strided_slice %150 {offsets = [0, 32], sizes = [8, 32], strides = [1, 1]} : vector<8x128xf32> to vector<8x32xf32>
    %153 = vector.extract_strided_slice %150 {offsets = [0, 64], sizes = [8, 32], strides = [1, 1]} : vector<8x128xf32> to vector<8x32xf32>
    %154 = vector.extract_strided_slice %150 {offsets = [0, 96], sizes = [8, 32], strides = [1, 1]} : vector<8x128xf32> to vector<8x32xf32>
    %cst_49 = arith.constant 0.000000e+00 : f32
    %155 = vector.broadcast %cst_49 : f32 to vector<8x32xf32>
    %156 = arith.minimumf %152, %155 : vector<8x32xf32>
    %157 = math.absf %152 : vector<8x32xf32>
    %cst_50 = arith.constant 0.000000e+00 : f32
    %158 = vector.broadcast %cst_50 : f32 to vector<8x32xf32>
    %159 = arith.subf %158, %157 : vector<8x32xf32>
    %160 = math.exp %159 : vector<8x32xf32>
    %cst_51 = arith.constant 1.000000e+00 : f32
    %161 = vector.broadcast %cst_51 : f32 to vector<8x32xf32>
    %162 = arith.addf %161, %160 : vector<8x32xf32>
    %163 = math.log %162 : vector<8x32xf32>
    %164 = arith.subf %156, %163 : vector<8x32xf32>
    %165 = arith.addf %123, %164 : vector<8x32xf32>
    %166 = arith.maximumf %151, %165 : vector<8x32xf32>
    %167 = arith.negf %154 : vector<8x32xf32>
    %168 = math.exp %167 : vector<8x32xf32>
    %cst_52 = arith.constant 1.000000e+00 : f32
    %169 = vector.broadcast %cst_52 : f32 to vector<8x32xf32>
    %170 = arith.addf %169, %168 : vector<8x32xf32>
    %171 = arith.divf %169, %170 : vector<8x32xf32>
    %172 = arith.subf %151, %166 : vector<8x32xf32>
    %173 = math.exp %172 : vector<8x32xf32>
    %174 = arith.subf %165, %166 : vector<8x32xf32>
    %175 = math.exp %174 : vector<8x32xf32>
    %176 = arith.mulf %175, %136 : vector<8x32xf32>
    %177 = math.tanh %153 : vector<8x32xf32>
    %178 = arith.mulf %173, %177 : vector<8x32xf32>
    %179 = arith.addf %176, %178 : vector<8x32xf32>
    %180 = arith.mulf %175, %141 : vector<8x32xf32>
    %181 = arith.addf %180, %173 : vector<8x32xf32>
    %182 = arith.mulf %171, %179 : vector<8x32xf32>
    %183 = tpu.reciprocal %181 : vector<8x32xf32> -> vector<8x32xf32>
    %184 = arith.mulf %182, %183 : vector<8x32xf32>
    %c3_53 = arith.constant 3 : index
    %c0_54 = arith.constant 0 : index
    %c0_55 = arith.constant 0 : index
    %185 = vector.load %arg7[%c3_53, %c0_54, %c0_55] : memref<8x8x32xf32, #tpu.memory_space<vmem>>, vector<1x8x32xf32>
    %186 = vector.shape_cast %185 : vector<1x8x32xf32> to vector<8x32xf32>
    %187 = vector.shape_cast %184 : vector<8x32xf32> to vector<1x8x32xf32>
    tpu.vector_store %arg7[%c3_53, %c0_54, %c0_55], %187 {strides = array<i32>} : memref<8x8x32xf32, #tpu.memory_space<vmem>>, vector<1x8x32xf32>,
    %cst_56 = arith.constant dense<0.000000e+00> : vector<8x128xf32>
    %188 = tpu.matmul %184, %9, %cst_56 {dimension_numbers = #tpu.dot_dimension_numbers<[1], [0], [0], [1], [0, 0, 1, 1], [], []>} : vector<8x32xf32>, vector<32x128xf32>, vector<8x128xf32> -> vector<8x128xf32>
    %c0_57 = arith.constant 0 : index
    %c4 = arith.constant 4 : index
    %c0_58 = arith.constant 0 : index
    %189 = vector.load %arg3[%c0_57, %c4, %c0_58] : memref<8x8x128xf32, #tpu.memory_space<vmem>>, vector<8x1x128xf32>
    %190 = vector.shape_cast %189 : vector<8x1x128xf32> to vector<8x128xf32>
    %191 = arith.addf %190, %188 : vector<8x128xf32>
    %192 = vector.broadcast %10 : vector<1x128xf32> to vector<8x128xf32>
    %193 = arith.addf %191, %192 : vector<8x128xf32>
    %194 = vector.extract_strided_slice %193 {offsets = [0, 0], sizes = [8, 32], strides = [1, 1]} : vector<8x128xf32> to vector<8x32xf32>
    %195 = vector.extract_strided_slice %193 {offsets = [0, 32], sizes = [8, 32], strides = [1, 1]} : vector<8x128xf32> to vector<8x32xf32>
    %196 = vector.extract_strided_slice %193 {offsets = [0, 64], sizes = [8, 32], strides = [1, 1]} : vector<8x128xf32> to vector<8x32xf32>
    %197 = vector.extract_strided_slice %193 {offsets = [0, 96], sizes = [8, 32], strides = [1, 1]} : vector<8x128xf32> to vector<8x32xf32>
    %cst_59 = arith.constant 0.000000e+00 : f32
    %198 = vector.broadcast %cst_59 : f32 to vector<8x32xf32>
    %199 = arith.minimumf %195, %198 : vector<8x32xf32>
    %200 = math.absf %195 : vector<8x32xf32>
    %cst_60 = arith.constant 0.000000e+00 : f32
    %201 = vector.broadcast %cst_60 : f32 to vector<8x32xf32>
    %202 = arith.subf %201, %200 : vector<8x32xf32>
    %203 = math.exp %202 : vector<8x32xf32>
    %cst_61 = arith.constant 1.000000e+00 : f32
    %204 = vector.broadcast %cst_61 : f32 to vector<8x32xf32>
    %205 = arith.addf %204, %203 : vector<8x32xf32>
    %206 = math.log %205 : vector<8x32xf32>
    %207 = arith.subf %199, %206 : vector<8x32xf32>
    %208 = arith.addf %166, %207 : vector<8x32xf32>
    %209 = arith.maximumf %194, %208 : vector<8x32xf32>
    %210 = arith.negf %197 : vector<8x32xf32>
    %211 = math.exp %210 : vector<8x32xf32>
    %cst_62 = arith.constant 1.000000e+00 : f32
    %212 = vector.broadcast %cst_62 : f32 to vector<8x32xf32>
    %213 = arith.addf %212, %211 : vector<8x32xf32>
    %214 = arith.divf %212, %213 : vector<8x32xf32>
    %215 = arith.subf %194, %209 : vector<8x32xf32>
    %216 = math.exp %215 : vector<8x32xf32>
    %217 = arith.subf %208, %209 : vector<8x32xf32>
    %218 = math.exp %217 : vector<8x32xf32>
    %219 = arith.mulf %218, %179 : vector<8x32xf32>
    %220 = math.tanh %196 : vector<8x32xf32>
    %221 = arith.mulf %216, %220 : vector<8x32xf32>
    %222 = arith.addf %219, %221 : vector<8x32xf32>
    %223 = arith.mulf %218, %184 : vector<8x32xf32>
    %224 = arith.addf %223, %216 : vector<8x32xf32>
    %225 = arith.mulf %214, %222 : vector<8x32xf32>
    %226 = tpu.reciprocal %224 : vector<8x32xf32> -> vector<8x32xf32>
    %227 = arith.mulf %225, %226 : vector<8x32xf32>
    %c4_63 = arith.constant 4 : index
    %c0_64 = arith.constant 0 : index
    %c0_65 = arith.constant 0 : index
    %228 = vector.load %arg7[%c4_63, %c0_64, %c0_65] : memref<8x8x32xf32, #tpu.memory_space<vmem>>, vector<1x8x32xf32>
    %229 = vector.shape_cast %228 : vector<1x8x32xf32> to vector<8x32xf32>
    %230 = vector.shape_cast %227 : vector<8x32xf32> to vector<1x8x32xf32>
    tpu.vector_store %arg7[%c4_63, %c0_64, %c0_65], %230 {strides = array<i32>} : memref<8x8x32xf32, #tpu.memory_space<vmem>>, vector<1x8x32xf32>,
    %cst_66 = arith.constant dense<0.000000e+00> : vector<8x128xf32>
    %231 = tpu.matmul %227, %9, %cst_66 {dimension_numbers = #tpu.dot_dimension_numbers<[1], [0], [0], [1], [0, 0, 1, 1], [], []>} : vector<8x32xf32>, vector<32x128xf32>, vector<8x128xf32> -> vector<8x128xf32>
    %c0_67 = arith.constant 0 : index
    %c5 = arith.constant 5 : index
    %c0_68 = arith.constant 0 : index
    %232 = vector.load %arg3[%c0_67, %c5, %c0_68] : memref<8x8x128xf32, #tpu.memory_space<vmem>>, vector<8x1x128xf32>
    %233 = vector.shape_cast %232 : vector<8x1x128xf32> to vector<8x128xf32>
    %234 = arith.addf %233, %231 : vector<8x128xf32>
    %235 = vector.broadcast %10 : vector<1x128xf32> to vector<8x128xf32>
    %236 = arith.addf %234, %235 : vector<8x128xf32>
    %237 = vector.extract_strided_slice %236 {offsets = [0, 0], sizes = [8, 32], strides = [1, 1]} : vector<8x128xf32> to vector<8x32xf32>
    %238 = vector.extract_strided_slice %236 {offsets = [0, 32], sizes = [8, 32], strides = [1, 1]} : vector<8x128xf32> to vector<8x32xf32>
    %239 = vector.extract_strided_slice %236 {offsets = [0, 64], sizes = [8, 32], strides = [1, 1]} : vector<8x128xf32> to vector<8x32xf32>
    %240 = vector.extract_strided_slice %236 {offsets = [0, 96], sizes = [8, 32], strides = [1, 1]} : vector<8x128xf32> to vector<8x32xf32>
    %cst_69 = arith.constant 0.000000e+00 : f32
    %241 = vector.broadcast %cst_69 : f32 to vector<8x32xf32>
    %242 = arith.minimumf %238, %241 : vector<8x32xf32>
    %243 = math.absf %238 : vector<8x32xf32>
    %cst_70 = arith.constant 0.000000e+00 : f32
    %244 = vector.broadcast %cst_70 : f32 to vector<8x32xf32>
    %245 = arith.subf %244, %243 : vector<8x32xf32>
    %246 = math.exp %245 : vector<8x32xf32>
    %cst_71 = arith.constant 1.000000e+00 : f32
    %247 = vector.broadcast %cst_71 : f32 to vector<8x32xf32>
    %248 = arith.addf %247, %246 : vector<8x32xf32>
    %249 = math.log %248 : vector<8x32xf32>
    %250 = arith.subf %242, %249 : vector<8x32xf32>
    %251 = arith.addf %209, %250 : vector<8x32xf32>
    %252 = arith.maximumf %237, %251 : vector<8x32xf32>
    %253 = arith.negf %240 : vector<8x32xf32>
    %254 = math.exp %253 : vector<8x32xf32>
    %cst_72 = arith.constant 1.000000e+00 : f32
    %255 = vector.broadcast %cst_72 : f32 to vector<8x32xf32>
    %256 = arith.addf %255, %254 : vector<8x32xf32>
    %257 = arith.divf %255, %256 : vector<8x32xf32>
    %258 = arith.subf %237, %252 : vector<8x32xf32>
    %259 = math.exp %258 : vector<8x32xf32>
    %260 = arith.subf %251, %252 : vector<8x32xf32>
    %261 = math.exp %260 : vector<8x32xf32>
    %262 = arith.mulf %261, %222 : vector<8x32xf32>
    %263 = math.tanh %239 : vector<8x32xf32>
    %264 = arith.mulf %259, %263 : vector<8x32xf32>
    %265 = arith.addf %262, %264 : vector<8x32xf32>
    %266 = arith.mulf %261, %227 : vector<8x32xf32>
    %267 = arith.addf %266, %259 : vector<8x32xf32>
    %268 = arith.mulf %257, %265 : vector<8x32xf32>
    %269 = tpu.reciprocal %267 : vector<8x32xf32> -> vector<8x32xf32>
    %270 = arith.mulf %268, %269 : vector<8x32xf32>
    %c5_73 = arith.constant 5 : index
    %c0_74 = arith.constant 0 : index
    %c0_75 = arith.constant 0 : index
    %271 = vector.load %arg7[%c5_73, %c0_74, %c0_75] : memref<8x8x32xf32, #tpu.memory_space<vmem>>, vector<1x8x32xf32>
    %272 = vector.shape_cast %271 : vector<1x8x32xf32> to vector<8x32xf32>
    %273 = vector.shape_cast %270 : vector<8x32xf32> to vector<1x8x32xf32>
    tpu.vector_store %arg7[%c5_73, %c0_74, %c0_75], %273 {strides = array<i32>} : memref<8x8x32xf32, #tpu.memory_space<vmem>>, vector<1x8x32xf32>,
    %cst_76 = arith.constant dense<0.000000e+00> : vector<8x128xf32>
    %274 = tpu.matmul %270, %9, %cst_76 {dimension_numbers = #tpu.dot_dimension_numbers<[1], [0], [0], [1], [0, 0, 1, 1], [], []>} : vector<8x32xf32>, vector<32x128xf32>, vector<8x128xf32> -> vector<8x128xf32>
    %c0_77 = arith.constant 0 : index
    %c6 = arith.constant 6 : index
    %c0_78 = arith.constant 0 : index
    %275 = vector.load %arg3[%c0_77, %c6, %c0_78] : memref<8x8x128xf32, #tpu.memory_space<vmem>>, vector<8x1x128xf32>
    %276 = vector.shape_cast %275 : vector<8x1x128xf32> to vector<8x128xf32>
    %277 = arith.addf %276, %274 : vector<8x128xf32>
    %278 = vector.broadcast %10 : vector<1x128xf32> to vector<8x128xf32>
    %279 = arith.addf %277, %278 : vector<8x128xf32>
    %280 = vector.extract_strided_slice %279 {offsets = [0, 0], sizes = [8, 32], strides = [1, 1]} : vector<8x128xf32> to vector<8x32xf32>
    %281 = vector.extract_strided_slice %279 {offsets = [0, 32], sizes = [8, 32], strides = [1, 1]} : vector<8x128xf32> to vector<8x32xf32>
    %282 = vector.extract_strided_slice %279 {offsets = [0, 64], sizes = [8, 32], strides = [1, 1]} : vector<8x128xf32> to vector<8x32xf32>
    %283 = vector.extract_strided_slice %279 {offsets = [0, 96], sizes = [8, 32], strides = [1, 1]} : vector<8x128xf32> to vector<8x32xf32>
    %cst_79 = arith.constant 0.000000e+00 : f32
    %284 = vector.broadcast %cst_79 : f32 to vector<8x32xf32>
    %285 = arith.minimumf %281, %284 : vector<8x32xf32>
    %286 = math.absf %281 : vector<8x32xf32>
    %cst_80 = arith.constant 0.000000e+00 : f32
    %287 = vector.broadcast %cst_80 : f32 to vector<8x32xf32>
    %288 = arith.subf %287, %286 : vector<8x32xf32>
    %289 = math.exp %288 : vector<8x32xf32>
    %cst_81 = arith.constant 1.000000e+00 : f32
    %290 = vector.broadcast %cst_81 : f32 to vector<8x32xf32>
    %291 = arith.addf %290, %289 : vector<8x32xf32>
    %292 = math.log %291 : vector<8x32xf32>
    %293 = arith.subf %285, %292 : vector<8x32xf32>
    %294 = arith.addf %252, %293 : vector<8x32xf32>
    %295 = arith.maximumf %280, %294 : vector<8x32xf32>
    %296 = arith.negf %283 : vector<8x32xf32>
    %297 = math.exp %296 : vector<8x32xf32>
    %cst_82 = arith.constant 1.000000e+00 : f32
    %298 = vector.broadcast %cst_82 : f32 to vector<8x32xf32>
    %299 = arith.addf %298, %297 : vector<8x32xf32>
    %300 = arith.divf %298, %299 : vector<8x32xf32>
    %301 = arith.subf %280, %295 : vector<8x32xf32>
    %302 = math.exp %301 : vector<8x32xf32>
    %303 = arith.subf %294, %295 : vector<8x32xf32>
    %304 = math.exp %303 : vector<8x32xf32>
    %305 = arith.mulf %304, %265 : vector<8x32xf32>
    %306 = math.tanh %282 : vector<8x32xf32>
    %307 = arith.mulf %302, %306 : vector<8x32xf32>
    %308 = arith.addf %305, %307 : vector<8x32xf32>
    %309 = arith.mulf %304, %270 : vector<8x32xf32>
    %310 = arith.addf %309, %302 : vector<8x32xf32>
    %311 = arith.mulf %300, %308 : vector<8x32xf32>
    %312 = tpu.reciprocal %310 : vector<8x32xf32> -> vector<8x32xf32>
    %313 = arith.mulf %311, %312 : vector<8x32xf32>
    %c6_83 = arith.constant 6 : index
    %c0_84 = arith.constant 0 : index
    %c0_85 = arith.constant 0 : index
    %314 = vector.load %arg7[%c6_83, %c0_84, %c0_85] : memref<8x8x32xf32, #tpu.memory_space<vmem>>, vector<1x8x32xf32>
    %315 = vector.shape_cast %314 : vector<1x8x32xf32> to vector<8x32xf32>
    %316 = vector.shape_cast %313 : vector<8x32xf32> to vector<1x8x32xf32>
    tpu.vector_store %arg7[%c6_83, %c0_84, %c0_85], %316 {strides = array<i32>} : memref<8x8x32xf32, #tpu.memory_space<vmem>>, vector<1x8x32xf32>,
    %cst_86 = arith.constant dense<0.000000e+00> : vector<8x128xf32>
    %317 = tpu.matmul %313, %9, %cst_86 {dimension_numbers = #tpu.dot_dimension_numbers<[1], [0], [0], [1], [0, 0, 1, 1], [], []>} : vector<8x32xf32>, vector<32x128xf32>, vector<8x128xf32> -> vector<8x128xf32>
    %c0_87 = arith.constant 0 : index
    %c7 = arith.constant 7 : index
    %c0_88 = arith.constant 0 : index
    %318 = vector.load %arg3[%c0_87, %c7, %c0_88] : memref<8x8x128xf32, #tpu.memory_space<vmem>>, vector<8x1x128xf32>
    %319 = vector.shape_cast %318 : vector<8x1x128xf32> to vector<8x128xf32>
    %320 = arith.addf %319, %317 : vector<8x128xf32>
    %321 = vector.broadcast %10 : vector<1x128xf32> to vector<8x128xf32>
    %322 = arith.addf %320, %321 : vector<8x128xf32>
    %323 = vector.extract_strided_slice %322 {offsets = [0, 0], sizes = [8, 32], strides = [1, 1]} : vector<8x128xf32> to vector<8x32xf32>
    %324 = vector.extract_strided_slice %322 {offsets = [0, 32], sizes = [8, 32], strides = [1, 1]} : vector<8x128xf32> to vector<8x32xf32>
    %325 = vector.extract_strided_slice %322 {offsets = [0, 64], sizes = [8, 32], strides = [1, 1]} : vector<8x128xf32> to vector<8x32xf32>
    %326 = vector.extract_strided_slice %322 {offsets = [0, 96], sizes = [8, 32], strides = [1, 1]} : vector<8x128xf32> to vector<8x32xf32>
    %cst_89 = arith.constant 0.000000e+00 : f32
    %327 = vector.broadcast %cst_89 : f32 to vector<8x32xf32>
    %328 = arith.minimumf %324, %327 : vector<8x32xf32>
    %329 = math.absf %324 : vector<8x32xf32>
    %cst_90 = arith.constant 0.000000e+00 : f32
    %330 = vector.broadcast %cst_90 : f32 to vector<8x32xf32>
    %331 = arith.subf %330, %329 : vector<8x32xf32>
    %332 = math.exp %331 : vector<8x32xf32>
    %cst_91 = arith.constant 1.000000e+00 : f32
    %333 = vector.broadcast %cst_91 : f32 to vector<8x32xf32>
    %334 = arith.addf %333, %332 : vector<8x32xf32>
    %335 = math.log %334 : vector<8x32xf32>
    %336 = arith.subf %328, %335 : vector<8x32xf32>
    %337 = arith.addf %295, %336 : vector<8x32xf32>
    %338 = arith.maximumf %323, %337 : vector<8x32xf32>
    %339 = arith.negf %326 : vector<8x32xf32>
    %340 = math.exp %339 : vector<8x32xf32>
    %cst_92 = arith.constant 1.000000e+00 : f32
    %341 = vector.broadcast %cst_92 : f32 to vector<8x32xf32>
    %342 = arith.addf %341, %340 : vector<8x32xf32>
    %343 = arith.divf %341, %342 : vector<8x32xf32>
    %344 = arith.subf %323, %338 : vector<8x32xf32>
    %345 = math.exp %344 : vector<8x32xf32>
    %346 = arith.subf %337, %338 : vector<8x32xf32>
    %347 = math.exp %346 : vector<8x32xf32>
    %348 = arith.mulf %347, %308 : vector<8x32xf32>
    %349 = math.tanh %325 : vector<8x32xf32>
    %350 = arith.mulf %345, %349 : vector<8x32xf32>
    %351 = arith.addf %348, %350 : vector<8x32xf32>
    %352 = arith.mulf %347, %313 : vector<8x32xf32>
    %353 = arith.addf %352, %345 : vector<8x32xf32>
    %354 = arith.mulf %343, %351 : vector<8x32xf32>
    %355 = tpu.reciprocal %353 : vector<8x32xf32> -> vector<8x32xf32>
    %356 = arith.mulf %354, %355 : vector<8x32xf32>
    %c7_93 = arith.constant 7 : index
    %c0_94 = arith.constant 0 : index
    %c0_95 = arith.constant 0 : index
    %357 = vector.load %arg7[%c7_93, %c0_94, %c0_95] : memref<8x8x32xf32, #tpu.memory_space<vmem>>, vector<1x8x32xf32>
    %358 = vector.shape_cast %357 : vector<1x8x32xf32> to vector<8x32xf32>
    %359 = vector.shape_cast %356 : vector<8x32xf32> to vector<1x8x32xf32>
    tpu.vector_store %arg7[%c7_93, %c0_94, %c0_95], %359 {strides = array<i32>} : memref<8x8x32xf32, #tpu.memory_space<vmem>>, vector<1x8x32xf32>,
    %c0_96 = arith.constant 0 : index
    %c0_97 = arith.constant 0 : index
    %c0_98 = arith.constant 0 : index
    %360 = vector.load %arg9[%c0_96, %c0_97, %c0_98] : memref<4x8x32xf32, #tpu.memory_space<vmem>>, vector<1x8x32xf32>
    %361 = vector.shape_cast %360 : vector<1x8x32xf32> to vector<8x32xf32>
    %362 = vector.shape_cast %356 : vector<8x32xf32> to vector<1x8x32xf32>
    tpu.vector_store %arg9[%c0_96, %c0_97, %c0_98], %362 {strides = array<i32>} : memref<4x8x32xf32, #tpu.memory_space<vmem>>, vector<1x8x32xf32>,
    %c1_99 = arith.constant 1 : index
    %c0_100 = arith.constant 0 : index
    %c0_101 = arith.constant 0 : index
    %363 = vector.load %arg9[%c1_99, %c0_100, %c0_101] : memref<4x8x32xf32, #tpu.memory_space<vmem>>, vector<1x8x32xf32>
    %364 = vector.shape_cast %363 : vector<1x8x32xf32> to vector<8x32xf32>
    %365 = vector.shape_cast %351 : vector<8x32xf32> to vector<1x8x32xf32>
    tpu.vector_store %arg9[%c1_99, %c0_100, %c0_101], %365 {strides = array<i32>} : memref<4x8x32xf32, #tpu.memory_space<vmem>>, vector<1x8x32xf32>,
    %c2_102 = arith.constant 2 : index
    %c0_103 = arith.constant 0 : index
    %c0_104 = arith.constant 0 : index
    %366 = vector.load %arg9[%c2_102, %c0_103, %c0_104] : memref<4x8x32xf32, #tpu.memory_space<vmem>>, vector<1x8x32xf32>
    %367 = vector.shape_cast %366 : vector<1x8x32xf32> to vector<8x32xf32>
    %368 = vector.shape_cast %353 : vector<8x32xf32> to vector<1x8x32xf32>
    tpu.vector_store %arg9[%c2_102, %c0_103, %c0_104], %368 {strides = array<i32>} : memref<4x8x32xf32, #tpu.memory_space<vmem>>, vector<1x8x32xf32>,
    %c3_105 = arith.constant 3 : index
    %c0_106 = arith.constant 0 : index
    %c0_107 = arith.constant 0 : index
    %369 = vector.load %arg9[%c3_105, %c0_106, %c0_107] : memref<4x8x32xf32, #tpu.memory_space<vmem>>, vector<1x8x32xf32>
    %370 = vector.shape_cast %369 : vector<1x8x32xf32> to vector<8x32xf32>
    %371 = vector.shape_cast %338 : vector<8x32xf32> to vector<1x8x32xf32>
    tpu.vector_store %arg9[%c3_105, %c0_106, %c0_107], %371 {strides = array<i32>} : memref<4x8x32xf32, #tpu.memory_space<vmem>>, vector<1x8x32xf32>,
    %c0_i32_108 = arith.constant 0 : i32
    %372 = arith.cmpi eq, %arg1, %c0_i32_108 : i32
    %373 = arith.extui %372 : i1 to i32
    %c0_i32_109 = arith.constant 0 : i32
    %374 = arith.cmpi ne, %373, %c0_i32_109 : i32
    scf.if %374 {
      %c0_110 = arith.constant 0 : index
      %c0_111 = arith.constant 0 : index
      %c0_112 = arith.constant 0 : index
      %375 = vector.load %arg9[%c0_110, %c0_111, %c0_112] : memref<4x8x32xf32, #tpu.memory_space<vmem>>, vector<4x8x32xf32>
      %c0_113 = arith.constant 0 : index
      %c0_114 = arith.constant 0 : index
      %c0_115 = arith.constant 0 : index
      %376 = vector.load %arg8[%c0_113, %c0_114, %c0_115] : memref<4x8x32xf32, #tpu.memory_space<vmem>>, vector<4x8x32xf32>
      tpu.vector_store %arg8[%c0_113, %c0_114, %c0_115], %375 {strides = array<i32>} : memref<4x8x32xf32, #tpu.memory_space<vmem>>, vector<4x8x32xf32>,
    } else {
    }
    return
  }
  func.func @transform_0(%arg0: i32, %arg1: i32, %arg2: memref<1xi32, #tpu.memory_space<smem>>) -> (i32, i32, i32) {
    %c0_i32 = arith.constant 0 : i32
    %c0_i32_0 = arith.constant 0 : i32
    return %arg0, %arg1, %c0_i32 : i32, i32, i32
  }
  func.func @transform_1(%arg0: i32, %arg1: i32, %arg2: memref<1xi32, #tpu.memory_space<smem>>) -> (i32, i32) {
    %c0_i32 = arith.constant 0 : i32
    %c0_i32_0 = arith.constant 0 : i32
    %c0_i32_1 = arith.constant 0 : i32
    return %c0_i32, %c0_i32_0 : i32, i32
  }
  func.func @transform_2(%arg0: i32, %arg1: i32, %arg2: memref<1xi32, #tpu.memory_space<smem>>) -> (i32, i32) {
    %c0_i32 = arith.constant 0 : i32
    %c0_i32_0 = arith.constant 0 : i32
    %c0_i32_1 = arith.constant 0 : i32
    return %c0_i32, %c0_i32_0 : i32, i32
  }
  func.func @transform_3(%arg0: i32, %arg1: i32, %arg2: memref<1xi32, #tpu.memory_space<smem>>) -> (i32, i32, i32) {
    %c0_i32 = arith.constant 0 : i32
    %c0_i32_0 = arith.constant 0 : i32
    %c0_i32_1 = arith.constant 0 : i32
    return %c0_i32, %arg0, %c0_i32_0 : i32, i32, i32
  }
  func.func @transform_4(%arg0: i32, %arg1: i32, %arg2: memref<1xi32, #tpu.memory_space<smem>>) -> (i32, i32, i32) {
    %c0_i32 = arith.constant 0 : i32
    %c0_i32_0 = arith.constant 0 : i32
    return %arg1, %arg0, %c0_i32 : i32, i32, i32
  }
  func.func @transform_5(%arg0: i32, %arg1: i32, %arg2: memref<1xi32, #tpu.memory_space<smem>>) -> (i32, i32, i32) {
    %c0_i32 = arith.constant 0 : i32
    %c0_i32_0 = arith.constant 0 : i32
    %c0_i32_1 = arith.constant 0 : i32
    return %c0_i32, %arg0, %c0_i32_0 : i32, i32, i32
  }
}

</mosaic_0001>

<bundles_post_ra>
// kernel: slstm_cell_forward.1
= control target key start
LH: loop header
LB: loop body
LE: loop exit
PB: predicated region body
PF: predicated region fallthrough
CT: control target
= control target key end

     0   :  { %vm29_vm0 = vcmask 261120   ;;  %v5755_v0 = vmov 0.0   ;;  %vm5756_vm1 = vmmov 0   ;;  %s5757_s27 = smov 64   ;;  %vm249_vm2 = vcmask 1041409   ;;  %s5758_s28 = smov 96   ;;  %s8060_s2 = inlined_call_operand.vmem [shape: f32[32,128], index: 2, kind: input, shape index: {}]   ;;  %s8061_s4 = inlined_call_operand.vmem [shape: f32[4,8,32], index: 4, kind: input, shape index: {}]   ;;  %s8062_s1 = inlined_call_operand.vmem [shape: f32[8,8,128], index: 1, kind: input, shape index: {}]   ;;  %s8063_s3 = inlined_call_operand.vmem [shape: f32[1,128], index: 3, kind: input, shape index: {}]   ;;  %s8064_s0 = inlined_call_operand.<no memory space> [shape: s32[1], index: 0, kind: input, shape index: {}]   ;;  %s8065_s5 = inlined_call_operand.vmem [shape: f32[8,8,32], index: 5, kind: output, shape index: {0}]   ;;  %s8066_s6 = inlined_call_operand.vmem [shape: f32[4,8,32], index: 6, kind: output, shape index: {1}]  }
   0x1   :  { %4655 = vmatprep.subr.mxu0 %v5755_v0  ;;  %v5799_v1 = vld [vmem:[%s8060_s2 + $0x18] sm:$0xff]  ;;  %v5804_v2 = vld [vmem:[%s8060_s2 + $0x10] sm:$0xff]  ;;  %4663 = vmatprep.mubr.msk.f32.mxu0 %vm5756_vm1, %v5755_v0  ;;  %v25_v3 = vld [vmem:[%s8061_s4] sm:$0xff]  ;;  %vm252_vm3 = vcmask 1042434   ;;  %vm255_vm4 = vcmask 1043459   ;;  %vm258_vm5 = vcmask 1044484  }
   0x2   :  { %4656 = vmatpush3.msra.mxu0 %v5799_v1  ;;  %4666 = vmatprep.subr.mxu1 %v5755_v0  ;;  %v5817_v4 = vld [vmem:[%s8060_s2 + $0x8] sm:$0xff]  ;;  %30 = vst.msk [vmem:[#allocation2] sm:$0xff] %vm29_vm0, %v25_v3  ;;  %v5827_v5 = vld [vmem:[%s8060_s2] sm:$0xff]  ;;  %v124_v9 = vld [vmem:[%s8062_s1 + $0x10] sm:$0x1]  ;;  %vm261_vm6 = vcmask 1045509  }
   0x3   :  { %4657 = vmatprep.subr.mxu0 %v5755_v0  ;;  %4667 = vmatpush3.msra.mxu1 %v5799_v1  ;;  %v122_v7 = vld [vmem:[%s8062_s1] sm:$0x1]  ;;  %v123_v8 = vld [vmem:[%s8062_s1 + $0x8] sm:$0x1]  ;;  %v125_v10 = vld [vmem:[%s8062_s1 + $0x18] sm:$0x1] }
   0x4   :  { %4658 = vmatpush3.msra.mxu0 %v5804_v2  ;;  %4668 = vmatprep.subr.mxu1 %v5755_v0  ;;  %v126_v12 = vld [vmem:[%s8062_s1 + $0x20] sm:$0x1]  ;;  %v127_v13 = vld [vmem:[%s8062_s1 + $0x28] sm:$0x1]  ;;  %v128_v14 = vld [vmem:[%s8062_s1 + $0x30] sm:$0x1] }
   0x5   :  { %4659 = vmatprep.subr.mxu0 %v5755_v0  ;;  %4669 = vmatpush3.msra.mxu1 %v5804_v2  ;;  %v129_v15 = vld [vmem:[%s8062_s1 + $0x38] sm:$0x1]  ;;  %v5882_v20 = vld [vmem:[%s8063_s3] ss:$0 sm:$0xff]  ;;  %vm264_vm7 = vcmask 1046534   ;;  %vm267_vm8 = vcmask 1047559  }
   0x6   :  { %4660 = vmatpush3.msra.mxu0 %v5817_v4  ;;  %4670 = vmatprep.subr.mxu1 %v5755_v0  ;;  %p45_p0 = scmp.eq.s32.totalorder %s8064_s0, 0  ;;  %s5759_s0 = smov 32  }
   0x7   :  { %4661 = vmatprep.subr.mxu0 %v5755_v0  ;;  %4671 = vmatpush3.msra.mxu1 %v5817_v4 }
   0x8   :  { %4662 = vmatpush3.msra.mxu0 %v5827_v5  ;;  %4672 = vmatprep.subr.mxu1 %v5755_v0  ;;  %s297_s9 = scalar_select %p45_p0, 1, 0 }
   0x9   :  { %4673 = vmatpush3.msra.mxu1 %v5827_v5  ;;  %4674 = vmatprep.mubr.msk.f32.mxu1 %vm5756_vm1, %v5755_v0  ;;  %v5839_v6 = vld [vmem:[#allocation2] sm:$0xff] }
   0xa   :  { %4677 = vmatprep.subr.mxu0 %v5755_v0  ;;  %4688 = vmatprep.subr.mxu1 %v5755_v0 }
   0xb   :  { %4664 = vmatmul.mubr.msk.f32.vlgmr.msra.gmra.mxu0 %vm29_vm0, %v5839_v6 }
   0xc   :  { %4678 = vmatpush3.msra.mxu0 %v5799_v1  ;;  %4685 = vmatprep.mubr.msk.f32.mxu0 %vm5756_vm1, %v5755_v0 }
   0xd   :  { %4679 = vmatprep.subr.mxu0 %v5755_v0 }
   0xe   :  { %4680 = vmatpush3.msra.mxu0 %v5804_v2 }
   0xf   :  { %4681 = vmatprep.subr.mxu0 %v5755_v0 }
  0x10   :  { %4682 = vmatpush3.msra.mxu0 %v5817_v4 }
  0x11   :  { %4683 = vmatprep.subr.mxu0 %v5755_v0 }
  0x12   :  { %4684 = vmatpush3.msra.mxu0 %v5827_v5 }
  0x13   :  { %4699 = vmatprep.subr.mxu0 %v5755_v0 }
  0xcb   :  { %v118_v11 = vpop.f32.mrf.mxu0 }
  0xcc   :  { %v131_v16 = vrot.slane %v118_v11, 1  ;;  %v132_v17 = vrot.slane %v118_v11, 2  ;;  %v133_v18 = vrot.slane %v118_v11, 3  ;;  %v134_v19 = vrot.slane %v118_v11, 4 }
  0xcd   :  { %v135_v21 = vrot.slane %v118_v11, 5  ;;  %v136_v22 = vrot.slane %v118_v11, 6  ;;  %v137_v23 = vrot.slane %v118_v11, 7  ;;  %v146_v24 = vadd.f32 %v122_v7, %v118_v11  ;;  %v4665_v25 = vpop.f32.mrf.mxu0  ;;  %v28_v7 = vld [vmem:[%s8061_s4 + $0x18] sm:$0xff] }
  0xce   :  { %v147_v26 = vadd.f32 %v131_v16, %v123_v8  ;;  %v148_v27 = vadd.f32 %v132_v17, %v124_v9  ;;  %v149_v28 = vadd.f32 %v133_v18, %v125_v10  ;;  %v150_v29 = vadd.f32 %v134_v19, %v126_v12  ;;  %33 = vst.msk [vmem:[#allocation2 + $0x18] sm:$0xff] %vm29_vm0, %v28_v7 }
  0xcf   :  { %v151_v30 = vadd.f32 %v135_v21, %v127_v13  ;;  %v152_v31 = vadd.f32 %v136_v22, %v128_v14  ;;  %v153_v32 = vadd.f32 %v137_v23, %v129_v15  ;;  %v5885_v33 = vadd.f32 %v5882_v20, %v146_v24 }
  0xd0   :  { %v5888_v34 = vadd.f32 %v5882_v20, %v148_v27  ;;  %v5891_v35 = vadd.f32 %v5882_v20, %v147_v26  ;;  %v5894_v36 = vadd.f32 %v5882_v20, %v149_v28  ;;  %v5897_v37 = vadd.f32 %v5882_v20, %v150_v29 }
  0xd1   :  { %v5900_v38 = vadd.f32 %v5882_v20, %v151_v30  ;;  %v5903_v39 = vadd.f32 %v5882_v20, %v152_v31  ;;  %v5907_v40 = vadd.f32 %v5882_v20, %v153_v32  ;;  %v176_v41 = vand.u32 2147483647, %v5885_v33 }
  0xd2   :  { %4748 = vtanh.f32 %v5888_v34  ;;  %v177_v42 = vand.u32 2147483647, %v5891_v35  ;;  %v178_v43 = vand.u32 2147483647, %v5888_v34  ;;  %v179_v44 = vand.u32 2147483647, %v5894_v36 }
  0xd3   :  { %4750 = vtanh.f32 %v5885_v33  ;;  %v180_v45 = vand.u32 2147483647, %v5897_v37  ;;  %v181_v46 = vand.u32 2147483647, %v5900_v38  ;;  %v182_v47 = vand.u32 2147483647, %v5903_v39 }
  0xd4   :  { %v183_v48 = vand.u32 2147483647, %v5907_v40  ;;  %v184_v49 = vsub.f32 0.0, %v176_v41  ;;  %v185_v50 = vsub.f32 0.0, %v177_v42  ;;  %v186_v51 = vsub.f32 0.0, %v178_v43 }
  0xd5   :  { %v187_v52 = vsub.f32 0.0, %v179_v44  ;;  %v188_v53 = vsub.f32 0.0, %v180_v45  ;;  %v189_v54 = vsub.f32 0.0, %v181_v46  ;;  %4752 = vtanh.f32 %v5897_v37 }
  0xd6   :  { %v190_v55 = vsub.f32 0.0, %v182_v47  ;;  %v192_v56 = vmul.f32 1.442695, %v184_v49  ;;  %v194_v57 = vmul.f32 1.442695, %v185_v50  ;;  %4754 = vtanh.f32 %v5903_v39 }
  0xd7   :  { %v191_v58 = vsub.f32 0.0, %v183_v48  ;;  %v196_v59 = vmul.f32 1.442695, %v186_v51  ;;  %v198_v60 = vmul.f32 1.442695, %v187_v52  ;;  %v169_v32 = vmin.f32 %v5891_v35, 0.0 }
  0xd8   :  { %4756 = vpow2.f32 %v192_v56  ;;  %v200_v61 = vmul.f32 1.442695, %v188_v53  ;;  %v202_v62 = vmul.f32 1.442695, %v189_v54  ;;  %v204_v63 = vmul.f32 1.442695, %v190_v55 }
  0xd9   :  { %4758 = vpow2.f32 %v194_v57  ;;  %v206_v3 = vmul.f32 1.442695, %v191_v58  ;;  %v168_v44 = vmin.f32 %v5885_v33, 0.0  ;;  %v170_v45 = vmin.f32 %v5888_v34, 0.0 }
  0xda   :  { %4760 = vpow2.f32 %v196_v59  ;;  %v171_v46 = vmin.f32 %v5894_v36, 0.0  ;;  %v172_v49 = vmin.f32 %v5897_v37, 0.0  ;;  %v173_v50 = vmin.f32 %v5900_v38, 0.0 }
  0xdb   :  { %4762 = vpow2.f32 %v198_v60  ;;  %v174_v54 = vmin.f32 %v5903_v39, 0.0 }
  0xdc   :  { %4764 = vpow2.f32 %v200_v61 }
  0xdd   :  { %4766 = vpow2.f32 %v202_v62 }
  0xde   :  { %4768 = vpow2.f32 %v204_v63  ;;  %v175_v63 = vmin.f32 %v5907_v40, 0.0 }
  0xdf   :  { %v4749_v8 = vpop.eup %4748  ;;  %4770 = vpow2.f32 %v206_v3 }
  0xe0   :  { %427 = vrot.lane.b32.xlu1 %v4749_v8, %s5757_s27  ;;  %v4751_v9 = vpop.eup %4750 }
  0xe2   :  { %v4753_v10 = vpop.eup %4752 }
  0xe3   :  { %v4755_v11 = vpop.eup %4754 }
  0xe4   :  { %423 = vrot.lane.b32.xlu1 %v4751_v9, %s5757_s27 }
  0xe5   :  { %v4757_v12 = vpop.eup %4756 }
  0xe6   :  { %v4759_v13 = vpop.eup %4758  ;;  %v208_v14 = vadd.f32 1.0, %v4757_v12 }
  0xe7   :  { %v4761_v15 = vpop.eup %4760  ;;  %v209_v16 = vadd.f32 1.0, %v4759_v13 }
  0xe8   :  { %431 = vrot.lane.b32.xlu1 %v4753_v10, %s5757_s27  ;;  %v4763_v17 = vpop.eup %4762  ;;  %v210_v18 = vadd.f32 1.0, %v4761_v15  ;;  %4772 = vlog2.f32 %v208_v14 }
  0xe9   :  { %v4765_v19 = vpop.eup %4764  ;;  %v211_v21 = vadd.f32 1.0, %v4763_v17  ;;  %4774 = vlog2.f32 %v209_v16 }
  0xea   :  { %v4767_v22 = vpop.eup %4766  ;;  %v212_v23 = vadd.f32 1.0, %v4765_v19  ;;  %4776 = vlog2.f32 %v210_v18 }
  0xeb   :  { %v4769_v24 = vpop.eup %4768  ;;  %v213_v25 = vadd.f32 1.0, %v4767_v22  ;;  %4778 = vlog2.f32 %v211_v21 }
  0xec   :  { %435 = vrot.lane.b32.xlu1 %v4755_v11, %s5757_s27  ;;  %v4771_v26 = vpop.eup %4770  ;;  %v214_v27 = vadd.f32 1.0, %v4769_v24  ;;  %4780 = vlog2.f32 %v212_v23 }
  0xed   :  { %v215_v28 = vadd.f32 1.0, %v4771_v26  ;;  %4782 = vlog2.f32 %v213_v25 }
  0xee   :  { %4784 = vlog2.f32 %v214_v27 }
  0xef   :  { %4786 = vlog2.f32 %v215_v28 }
  0xf0   :  { %4788 = vtanh.f32 %v5891_v35 }
  0xf1   :  { %4790 = vtanh.f32 %v5894_v36 }
  0xf2   :  { %4792 = vtanh.f32 %v5900_v38 }
  0xf3   :  { %4794 = vtanh.f32 %v5907_v40 }
  0xf5   :  { %v4773_v29 = vpop.eup %4772 }
  0xf6   :  { %v4775_v30 = vpop.eup %4774  ;;  %v217_v41 = vmul.f32 0.6931472, %v4773_v29 }
  0xf7   :  { %v4777_v31 = vpop.eup %4776  ;;  %v219_v42 = vmul.f32 0.6931472, %v4775_v30  ;;  %v26_v30 = vld [vmem:[%s8061_s4 + $0x8] sm:$0xff] }
  0xf8   :  { %v4779_v43 = vpop.eup %4778  ;;  %v221_v47 = vmul.f32 0.6931472, %v4777_v31  ;;  %v232_v59 = vsub.f32 %v168_v44, %v217_v41  ;;  %31 = vst.msk [vmem:[#allocation2 + $0x8] sm:$0xff] %vm29_vm0, %v26_v30  ;;  %v38_v31 = vld [vmem:[#allocation2 + $0x18] sm:$0xff] }
  0xf9   :  { %v4781_v48 = vpop.eup %4780  ;;  %v223_v51 = vmul.f32 0.6931472, %v4779_v43  ;;  %v233_v52 = vsub.f32 %v169_v32, %v219_v42  ;;  %v298_v32 = vstv %s297_s9 }
  0xfa   :  { %v4783_v53 = vpop.eup %4782  ;;  %v225_v55 = vmul.f32 0.6931472, %v4781_v48  ;;  %v234_v56 = vsub.f32 %v170_v45, %v221_v47  ;;  %vm5961_vm9 = vcmp.eq.s32.totalorder %v298_v32, 1 }
  0xfb   :  { %v4785_v57 = vpop.eup %4784  ;;  %v227_v58 = vmul.f32 0.6931472, %v4783_v53  ;;  %v235_v60 = vsub.f32 %v171_v46, %v223_v51  ;;  %v248_v61 = vrot.slane %v233_v52, 7 }
  0xfc   :  { %v4787_v62 = vpop.eup %4786  ;;  %v229_v3 = vmul.f32 0.6931472, %v4785_v57  ;;  %v236_v7 = vsub.f32 %v172_v49, %v225_v55  ;;  %v251_v8 = vrot.slane %v234_v56, 6 }
  0xfd   :  { %v231_v9 = vmul.f32 0.6931472, %v4787_v62  ;;  %v237_v10 = vsub.f32 %v173_v50, %v227_v58  ;;  %v250_v11 = vsel %vm249_vm2, %v248_v61, %v232_v59  ;;  %v254_v12 = vrot.slane %v235_v60, 5  ;;  %v4789_v26 = vpop.eup %4788 }
  0xfe   :  { %v238_v13 = vsub.f32 %v174_v54, %v229_v3  ;;  %v253_v14 = vsel %vm252_vm3, %v251_v8, %v250_v11  ;;  %v257_v15 = vrot.slane %v236_v7, 4  ;;  %v4791_v27 = vpop.eup %4790 }
  0xff   :  { %v239_v16 = vsub.f32 %v175_v63, %v231_v9  ;;  %v256_v17 = vsel %vm255_vm4, %v254_v12, %v253_v14  ;;  %v260_v18 = vrot.slane %v237_v10, 3  ;;  %v4793_v28 = vpop.eup %4792 }
 0x100   :  { %v259_v19 = vsel %vm258_vm5, %v257_v15, %v256_v17  ;;  %v263_v21 = vrot.slane %v238_v13, 2  ;;  %v4795_v29 = vpop.eup %4794 }
 0x101   :  { %v262_v22 = vsel %vm261_vm6, %v260_v18, %v259_v19  ;;  %v266_v23 = vrot.slane %v239_v16, 1 }
 0x102   :  { %v265_v24 = vsel %vm264_vm7, %v263_v21, %v262_v22 }
 0x103   :  { %v268_v25 = vsel %vm267_vm8, %v266_v23, %v265_v24 }
 0x104   :  { %269 = vrot.lane.b32.xlu0 %v268_v25, %s5758_s28 }
 0x108   :  { %425 = vrot.lane.b32.xlu0 %v4789_v26, %s5757_s27 }
 0x10c   :  { %429 = vrot.lane.b32.xlu0 %v4791_v27, %s5757_s27 }
 0x110   :  { %433 = vrot.lane.b32.xlu0 %v4793_v28, %s5757_s27 }
 0x114   :  { %437 = vrot.lane.b32.xlu0 %v4795_v29, %s5757_s27 }
 0x152   :  { %v428_v28 = vpop.permute.xlu1 %427 }
 0x176   :  { %v270_v41 = vpop.permute.xlu0 %269 }
 0x177   :  { %v5959_v42 = vadd.f32 %v270_v41, %v38_v31 }
 0x179   :  { %v274_v44 = vrot.slane %v5959_v42, 1  ;;  %v289_v45 = vmax.f32 %v5885_v33, %v5959_v42  ;;  %v275_v46 = vrot.slane %v5959_v42, 2  ;;  %v276_v47 = vrot.slane %v5959_v42, 3 }
 0x17a   :  { %v277_v48 = vrot.slane %v5959_v42, 4  ;;  %v278_v49 = vrot.slane %v5959_v42, 5  ;;  %v279_v50 = vrot.slane %v5959_v42, 6  ;;  %v280_v51 = vrot.slane %v5959_v42, 7  ;;  %v426_v32 = vpop.permute.xlu0 %425 }
 0x17b   :  { %v290_v52 = vmax.f32 %v5891_v35, %v274_v44  ;;  %v5978_v53 = vsel %vm5961_vm9, %v5885_v33, %v289_v45  ;;  %v291_v54 = vmax.f32 %v5888_v34, %v275_v46  ;;  %v292_v55 = vmax.f32 %v5894_v36, %v276_v47 }
 0x17c   :  { %v356_v56 = vsub.f32 %v5885_v33, %v5978_v53  ;;  %v293_v57 = vmax.f32 %v5897_v37, %v277_v48  ;;  %v294_v58 = vmax.f32 %v5900_v38, %v278_v49  ;;  %v295_v59 = vmax.f32 %v5903_v39, %v279_v50 }
 0x17d   :  { %v5990_v60 = vsel %vm5961_vm9, %v5891_v35, %v290_v52  ;;  %v5995_v61 = vsel %vm5961_vm9, %v5888_v34, %v291_v54  ;;  %v6000_v62 = vsel %vm5961_vm9, %v5894_v36, %v292_v55  ;;  %v296_v63 = vmax.f32 %v5907_v40, %v280_v51  ;;  %v424_v51 = vpop.permute.xlu1 %423 }
 0x17e   :  { %v357_v3 = vsub.f32 %v5891_v35, %v5990_v60  ;;  %v364_v7 = vmul.f32 1.442695, %v356_v56  ;;  %v388_v8 = vrot.slane %v5990_v60, 7  ;;  %v358_v9 = vsub.f32 %v5888_v34, %v5995_v61  ;;  %v430_v54 = vpop.permute.xlu0 %429 }
 0x17f   :  { %v359_v10 = vsub.f32 %v5894_v36, %v6000_v62  ;;  %v390_v11 = vrot.slane %v5995_v61, 6  ;;  %v392_v12 = vrot.slane %v6000_v62, 5  ;;  %v6015_v13 = vsel %vm5961_vm9, %v5897_v37, %v293_v57 }
 0x180   :  { %4796 = vpow2.f32 %v364_v7  ;;  %v366_v14 = vmul.f32 1.442695, %v357_v3  ;;  %v389_v15 = vsel %vm249_vm2, %v388_v8, %v5978_v53  ;;  %v368_v16 = vmul.f32 1.442695, %v358_v9 }
 0x181   :  { %v370_v17 = vmul.f32 1.442695, %v359_v10  ;;  %v391_v18 = vsel %vm252_vm3, %v390_v11, %v389_v15  ;;  %v6023_v19 = vsel %vm5961_vm9, %v5900_v38, %v294_v58  ;;  %v360_v21 = vsub.f32 %v5897_v37, %v6015_v13 }
 0x182   :  { %4798 = vpow2.f32 %v366_v14  ;;  %v393_v22 = vsel %vm255_vm4, %v392_v12, %v391_v18  ;;  %v361_v23 = vsub.f32 %v5900_v38, %v6023_v19  ;;  %v394_v24 = vrot.slane %v6015_v13, 4  ;;  %v434_v11 = vpop.permute.xlu0 %433 }
 0x183   :  { %4800 = vpow2.f32 %v368_v16  ;;  %v372_v25 = vmul.f32 1.442695, %v360_v21  ;;  %v396_v26 = vrot.slane %v6023_v19, 3  ;;  %v6035_v27 = vsel %vm5961_vm9, %v5903_v39, %v295_v59  ;;  %v432_v59 = vpop.permute.xlu1 %431 }
 0x184   :  { %4802 = vpow2.f32 %v370_v17  ;;  %v374_v29 = vmul.f32 1.442695, %v361_v23  ;;  %v395_v30 = vsel %vm258_vm5, %v394_v24, %v393_v22  ;;  %v6041_v31 = vsel %vm5961_vm9, %v5907_v40, %v296_v63 }
 0x185   :  { %4804 = vpow2.f32 %v372_v25  ;;  %v397_v41 = vsel %vm261_vm6, %v396_v26, %v395_v30  ;;  %v362_v44 = vsub.f32 %v5903_v39, %v6035_v27  ;;  %v363_v45 = vsub.f32 %v5907_v40, %v6041_v31 }
 0x186   :  { %4806 = vpow2.f32 %v374_v29  ;;  %v398_v46 = vrot.slane %v6035_v27, 2  ;;  %v400_v49 = vrot.slane %v6041_v31, 1 }
 0x187   :  { %v376_v47 = vmul.f32 1.442695, %v362_v44  ;;  %v378_v48 = vmul.f32 1.442695, %v363_v45  ;;  %v436_v45 = vpop.permute.xlu1 %435 }
 0x188   :  { %v399_v43 = vsel %vm264_vm7, %v398_v46, %v397_v41 }
 0x189   :  { %4808 = vpow2.f32 %v376_v47  ;;  %v401_v50 = vsel %vm267_vm8, %v400_v49, %v399_v43 }
 0x18a   :  { %4810 = vpow2.f32 %v378_v48  ;;  %v403_v52 = vsub.f32 %v5959_v42, %v401_v50  ;;  %v438_v50 = vpop.permute.xlu0 %437 }
 0x18c   :  { %v404_v55 = vmul.f32 1.442695, %v403_v52 }
 0x18d   :  { %v4797_v56 = vpop.eup %4796 }
 0x18e   :  { %4812 = vpow2.f32 %v404_v55  ;;  %v447_v8 = vmul.f32 %v4797_v56, %v424_v51 }
 0x18f   :  { %v4799_v57 = vpop.eup %4798 }
 0x190   :  { %v4801_v58 = vpop.eup %4800  ;;  %v448_v63 = vmul.f32 %v4799_v57, %v426_v32  ;;  %v488_v3 = vrot.slane %v4799_v57, 7 }
 0x191   :  { %v4803_v7 = vpop.eup %4802  ;;  %v449_v9 = vmul.f32 %v4801_v58, %v428_v28  ;;  %v490_v10 = vrot.slane %v4801_v58, 6 }
 0x192   :  { %v4805_v12 = vpop.eup %4804  ;;  %v463_v14 = vrot.slane %v448_v63, 7  ;;  %v489_v15 = vsel %vm249_vm2, %v488_v3, %v4797_v56  ;;  %v450_v16 = vmul.f32 %v4803_v7, %v430_v54  ;;  %v492_v42 = vrot.slane %v4803_v7, 5  ;;  %v36_v56 = vld [vmem:[#allocation2 + $0x8] sm:$0xff] }
 0x193   :  { %v4807_v17 = vpop.eup %4806  ;;  %v465_v18 = vrot.slane %v449_v9, 6  ;;  %v491_v21 = vsel %vm252_vm3, %v490_v10, %v489_v15  ;;  %v451_v22 = vmul.f32 %v4805_v12, %v432_v59  ;;  %v494_v23 = vrot.slane %v4805_v12, 4 }
 0x194   :  { %v464_v24 = vsel %vm249_vm2, %v463_v14, %v447_v8  ;;  %v467_v25 = vrot.slane %v450_v16, 5  ;;  %v493_v26 = vsel %vm255_vm4, %v492_v42, %v491_v21  ;;  %v452_v28 = vmul.f32 %v4807_v17, %v434_v11 }
 0x195   :  { %v466_v29 = vsel %vm252_vm3, %v465_v18, %v464_v24  ;;  %v469_v30 = vrot.slane %v451_v22, 4  ;;  %v495_v32 = vsel %vm258_vm5, %v494_v23, %v493_v26  ;;  %v496_v41 = vrot.slane %v4807_v17, 3 }
 0x196   :  { %v4809_v44 = vpop.eup %4808  ;;  %v468_v46 = vsel %vm255_vm4, %v467_v25, %v466_v29  ;;  %v471_v47 = vrot.slane %v452_v28, 3 }
 0x197   :  { %v4811_v48 = vpop.eup %4810  ;;  %v470_v49 = vsel %vm258_vm5, %v469_v30, %v468_v46  ;;  %v497_v43 = vsel %vm261_vm6, %v496_v41, %v495_v32  ;;  %v453_v51 = vmul.f32 %v4809_v44, %v436_v45  ;;  %v498_v55 = vrot.slane %v4809_v44, 2 }
 0x198   :  { %v472_v52 = vsel %vm261_vm6, %v471_v47, %v470_v49  ;;  %v454_v54 = vmul.f32 %v4811_v48, %v438_v50  ;;  %v500_v7 = vrot.slane %v4811_v48, 1  ;;  %v4537_v32 = vmul.f32 -1.442695, %v5891_v35 }
 0x199   :  { %v473_v57 = vrot.slane %v453_v51, 2  ;;  %v499_v59 = vsel %vm264_vm7, %v498_v55, %v497_v43  ;;  %v4538_v41 = vmul.f32 -1.442695, %v5888_v34  ;;  %v4539_v44 = vmul.f32 -1.442695, %v5894_v36 }
 0x19a   :  { %v475_v58 = vrot.slane %v454_v54, 1  ;;  %v501_v11 = vsel %vm267_vm8, %v500_v7, %v499_v59  ;;  %v4540_v45 = vmul.f32 -1.442695, %v5897_v37  ;;  %v4536_v46 = vmul.f32 -1.442695, %v5885_v33 }
 0x19b   :  { %v4813_v63 = vpop.eup %4812  ;;  %v474_v3 = vsel %vm264_vm7, %v473_v57, %v472_v52  ;;  %v4541_v47 = vmul.f32 -1.442695, %v5900_v38  ;;  %v4542_v48 = vmul.f32 -1.442695, %v5903_v39  ;;  %v4543_v49 = vmul.f32 -1.442695, %v5907_v40 }
 0x19c   :  { %v406_v8 = vmul.f32 %v4813_v63, %v36_v56  ;;  %v476_v9 = vsel %vm267_vm8, %v475_v58, %v474_v3  ;;  %v479_v10 = vmul.f32 %v4813_v63, %v5839_v6 }
 0x19e   :  { %v6068_v12 = vadd.f32 %v476_v9, %v406_v8  ;;  %v503_v14 = vadd.f32 %v501_v11, %v479_v10 }
 0x1a0   :  { %4814 = vrcp.f32 %v503_v14  ;;  %512 = vrot.lane.b32.xlu1 %v6068_v12, %s5758_s28  ;;  %v506_v15 = vrot.slane %v6068_v12, 2  ;;  %v505_v16 = vrot.slane %v6068_v12, 1  ;;  %v507_v6 = vrot.slane %v6068_v12, 3 }
 0x1a1   :  { %v510_v42 = vrot.slane %v6068_v12, 6  ;;  %v508_v17 = vrot.slane %v6068_v12, 4  ;;  %v511_v18 = vrot.slane %v6068_v12, 7  ;;  %v509_v21 = vrot.slane %v6068_v12, 5 }
 0x1a2   :  { %516 = vrot.lane.b32.xlu0 %v506_v15, %s5758_s28  ;;  %4816 = vpow2.f32 %v4537_v32 }
 0x1a3   :  { %4818 = vpow2.f32 %v4538_v41 }
 0x1a4   :  { %514 = vrot.lane.b32.xlu1 %v505_v16, %s5758_s28  ;;  %4820 = vpow2.f32 %v4539_v44 }
 0x1a5   :  { %4822 = vpow2.f32 %v4540_v45 }
 0x1a6   :  { %518 = vrot.lane.b32.xlu0 %v507_v6, %s5758_s28  ;;  %4824 = vpow2.f32 %v4536_v46 }
 0x1a7   :  { %4826 = vpow2.f32 %v4541_v47 }
 0x1a8   :  { %524 = vrot.lane.b32.xlu1 %v510_v42, %s5758_s28  ;;  %4828 = vpow2.f32 %v4542_v48 }
 0x1a9   :  { %4830 = vpow2.f32 %v4543_v49 }
 0x1aa   :  { %520 = vrot.lane.b32.xlu0 %v508_v17, %s5758_s28 }
 0x1ac   :  { %526 = vrot.lane.b32.xlu1 %v511_v18, %s5758_s28 }
 0x1ad   :  { %v4815_v22 = vpop.eup %4814 }
 0x1ae   :  { %522 = vrot.lane.b32.xlu0 %v509_v21, %s5758_s28  ;;  %v548_v23 = vrot.slane %v4815_v22, 3  ;;  %v546_v24 = vrot.slane %v4815_v22, 1  ;;  %v549_v25 = vrot.slane %v4815_v22, 4  ;;  %v547_v26 = vrot.slane %v4815_v22, 2 }
 0x1af   :  { %v550_v28 = vrot.slane %v4815_v22, 5  ;;  %v551_v29 = vrot.slane %v4815_v22, 6  ;;  %v552_v30 = vrot.slane %v4815_v22, 7  ;;  %v4817_v34 = vpop.eup %4816 }
 0x1b0   :  { %553 = vrot.lane.b32.xlu1 %v4815_v22, %s5758_s28  ;;  %v4819_v35 = vpop.eup %4818  ;;  %v333_v37 = vadd.f32 1.0, %v4817_v34 }
 0x1b1   :  { %v4821_v43 = vpop.eup %4820  ;;  %v334_v52 = vadd.f32 1.0, %v4819_v35 }
 0x1b2   :  { %559 = vrot.lane.b32.xlu0 %v548_v23, %s5758_s28  ;;  %v4823_v50 = vpop.eup %4822  ;;  %v335_v55 = vadd.f32 1.0, %v4821_v43  ;;  %4832 = vrcp.f32 %v333_v37 }
 0x1b3   :  { %v4825_v51 = vpop.eup %4824  ;;  %v336_v39 = vadd.f32 1.0, %v4823_v50  ;;  %4834 = vrcp.f32 %v334_v52 }
 0x1b4   :  { %555 = vrot.lane.b32.xlu1 %v546_v24, %s5758_s28  ;;  %v4827_v38 = vpop.eup %4826  ;;  %v332_v57 = vadd.f32 1.0, %v4825_v51  ;;  %4836 = vrcp.f32 %v335_v55 }
 0x1b5   :  { %v4829_v56 = vpop.eup %4828  ;;  %v337_v59 = vadd.f32 1.0, %v4827_v38  ;;  %4838 = vrcp.f32 %v336_v39 }
 0x1b6   :  { %561 = vrot.lane.b32.xlu0 %v549_v25, %s5758_s28  ;;  %v4831_v58 = vpop.eup %4830  ;;  %v338_v3 = vadd.f32 1.0, %v4829_v56  ;;  %4840 = vrcp.f32 %v332_v57 }
 0x1b7   :  { %v339_v8 = vadd.f32 1.0, %v4831_v58  ;;  %4842 = vrcp.f32 %v337_v59 }
 0x1b8   :  { %557 = vrot.lane.b32.xlu1 %v547_v26, %s5758_s28  ;;  %4844 = vrcp.f32 %v338_v3 }
 0x1b9   :  { %4846 = vrcp.f32 %v339_v8 }
 0x1ba   :  { %563 = vrot.lane.b32.xlu0 %v550_v28, %s5758_s28 }
 0x1bc   :  { %565 = vrot.lane.b32.xlu1 %v551_v29, %s5758_s28 }
 0x1be   :  { %567 = vrot.lane.b32.xlu0 %v552_v30, %s5758_s28 }
 0x1bf   :  { %v4833_v14 = vpop.eup %4832 }
 0x1c0   :  { %v4835_v24 = vpop.eup %4834 }
 0x1c1   :  { %v4837_v26 = vpop.eup %4836 }
 0x1c2   :  { %v4839_v29 = vpop.eup %4838 }
 0x1c3   :  { %v4841_v41 = vpop.eup %4840 }
 0x1c4   :  { %v4843_v46 = vpop.eup %4842 }
 0x1c5   :  { %v4845_v50 = vpop.eup %4844 }
 0x1c6   :  { %v4847_v38 = vpop.eup %4846 }
 0x212   :  { %v513_v36 = vpop.permute.xlu1 %512 }
 0x213   :  { %v536_v47 = vmul.f32 %v4841_v41, %v513_v36 }
 0x214   :  { %v517_v33 = vpop.permute.xlu0 %516 }
 0x215   :  { %v538_v44 = vmul.f32 %v4835_v24, %v517_v33 }
 0x216   :  { %v515_v54 = vpop.permute.xlu1 %514 }
 0x217   :  { %v537_v23 = vmul.f32 %v4833_v14, %v515_v54 }
 0x218   :  { %v519_v40 = vpop.permute.xlu0 %518 }
 0x219   :  { %v539_v30 = vmul.f32 %v4837_v26, %v519_v40 }
 0x21a   :  { %v525_v63 = vpop.permute.xlu1 %524 }
 0x21b   :  { %v542_v54 = vmul.f32 %v4845_v50, %v525_v63 }
 0x21c   :  { %v521_v7 = vpop.permute.xlu0 %520 }
 0x21d   :  { %v540_v45 = vmul.f32 %v4839_v29, %v521_v7  ;;  %v688_v29 = vld [vmem:[%s8062_s1 + $0x29] sm:$0x1] }
 0x21e   :  { %v527_v9 = vpop.permute.xlu1 %526 }
 0x21f   :  { %v543_v36 = vmul.f32 %v4847_v38, %v527_v9 }
 0x220   :  { %v523_v10 = vpop.permute.xlu0 %522 }
 0x221   :  { %v541_v35 = vmul.f32 %v4843_v46, %v523_v10 }
 0x222   :  { %v554_v11 = vpop.permute.xlu1 %553 }
 0x223   :  { %v6125_v51 = vmul.f32 %v554_v11, %v536_v47 }
 0x224   :  { %v560_v22 = vpop.permute.xlu0 %559 }
 0x225   :  { %v6118_v48 = vmul.f32 %v560_v22, %v539_v30  ;;  %v689_v30 = vld [vmem:[%s8062_s1 + $0x31] sm:$0x1] }
 0x226   :  { %v556_v25 = vpop.permute.xlu1 %555 }
 0x227   :  { %v6116_v28 = vmul.f32 %v556_v25, %v537_v23  ;;  %v597_v39 = vrot.slane %v6118_v48, 5  ;;  %v684_v25 = vld [vmem:[%s8062_s1 + $0x9] sm:$0x1] }
 0x228   :  { %v562_v32 = vpop.permute.xlu0 %561 }
 0x229   :  { %v593_v49 = vrot.slane %v6116_v28, 7  ;;  %v6121_v43 = vmul.f32 %v562_v32, %v540_v45  ;;  %v690_v32 = vld [vmem:[%s8062_s1 + $0x39] sm:$0x1] }
 0x22a   :  { %v558_v34 = vpop.permute.xlu1 %557 }
 0x22b   :  { %v6123_v37 = vmul.f32 %v558_v34, %v538_v44  ;;  %v594_v56 = vsel %vm249_vm2, %v593_v49, %v6125_v51  ;;  %v599_v40 = vrot.slane %v6121_v43, 4 }
 0x22c   :  { %v564_v52 = vpop.permute.xlu0 %563 }
 0x22d   :  { %v595_v33 = vrot.slane %v6123_v37, 6  ;;  %v6128_v55 = vmul.f32 %v564_v52, %v541_v35 }
 0x22e   :  { %v566_v57 = vpop.permute.xlu1 %565 }
 0x22f   :  { %v596_v58 = vsel %vm252_vm3, %v595_v33, %v594_v56  ;;  %v601_v59 = vrot.slane %v6128_v55, 3  ;;  %v6136_v3 = vmul.f32 %v566_v57, %v542_v54 }
 0x230   :  { %v598_v63 = vsel %vm255_vm4, %v597_v39, %v596_v58  ;;  %v568_v7 = vpop.permute.xlu0 %567 }
 0x231   :  { %v603_v8 = vrot.slane %v6136_v3, 2  ;;  %v6140_v9 = vmul.f32 %v568_v7, %v543_v36  ;;  %v600_v10 = vsel %vm258_vm5, %v599_v40, %v598_v63 }
 0x232   :  { %v602_v11 = vsel %vm261_vm6, %v601_v59, %v600_v10 }
 0x233   :  { %v605_v14 = vrot.slane %v6140_v9, 1  ;;  %v604_v22 = vsel %vm264_vm7, %v603_v8, %v602_v11 }
 0x235   :  { %v606_v23 = vsel %vm267_vm8, %v605_v14, %v604_v22 }
 0x236   :  { %607 = vrot.lane.b32.xlu1 %v606_v23, %s5759_s0 }
 0x2a8   :  { %v608_v24 = vpop.permute.xlu1 %607 }
 0x2a9   :  { %610 = vst.msk [vmem:[%s8065_s5] sm:$0xff] %vm29_vm0, %v608_v24  ;;  %4675 = vmatmul.mubr.msk.f32.vlgmr.msra.gmra.mxu1 %vm29_vm0, %v608_v24 }
 0x2aa   :  { %4689 = vmatpush3.msra.mxu1 %v5799_v1  ;;  %4696 = vmatprep.mubr.msk.f32.mxu1 %vm5756_vm1, %v5755_v0  ;;  %v683_v1 = vld [vmem:[%s8062_s1 + $0x1] sm:$0x1] }
 0x2ab   :  { %4690 = vmatprep.subr.mxu1 %v5755_v0 }
 0x2ac   :  { %4691 = vmatpush3.msra.mxu1 %v5804_v2  ;;  %v685_v2 = vld [vmem:[%s8062_s1 + $0x11] sm:$0x1] }
 0x2ad   :  { %4692 = vmatprep.subr.mxu1 %v5755_v0 }
 0x2ae   :  { %4693 = vmatpush3.msra.mxu1 %v5817_v4  ;;  %v686_v4 = vld [vmem:[%s8062_s1 + $0x19] sm:$0x1] }
 0x2af   :  { %4694 = vmatprep.subr.mxu1 %v5755_v0 }
 0x2b0   :  { %4695 = vmatpush3.msra.mxu1 %v5827_v5  ;;  %v687_v5 = vld [vmem:[%s8062_s1 + $0x21] sm:$0x1] }
 0x2b1   :  { %4710 = vmatprep.subr.mxu1 %v5755_v0 }
 0x369   :  { %v679_v26 = vpop.f32.mrf.mxu1 }
 0x36a   :  { %v692_v41 = vrot.slane %v679_v26, 1  ;;  %v693_v44 = vrot.slane %v679_v26, 2  ;;  %v694_v45 = vrot.slane %v679_v26, 3  ;;  %v695_v46 = vrot.slane %v679_v26, 4 }
 0x36b   :  { %v696_v47 = vrot.slane %v679_v26, 5  ;;  %v697_v49 = vrot.slane %v679_v26, 6  ;;  %v698_v34 = vrot.slane %v679_v26, 7  ;;  %v707_v35 = vadd.f32 %v683_v1, %v679_v26  ;;  %v4676_v50 = vpop.f32.mrf.mxu1 }
 0x36c   :  { %v708_v52 = vadd.f32 %v692_v41, %v684_v25  ;;  %v709_v38 = vadd.f32 %v693_v44, %v685_v2  ;;  %v710_v54 = vadd.f32 %v694_v45, %v686_v4  ;;  %v711_v33 = vadd.f32 %v695_v46, %v687_v5 }
 0x36d   :  { %v712_v36 = vadd.f32 %v696_v47, %v688_v29  ;;  %v713_v39 = vadd.f32 %v697_v49, %v689_v30  ;;  %v714_v56 = vadd.f32 %v698_v34, %v690_v32  ;;  %v6188_v57 = vadd.f32 %v5882_v20, %v707_v35 }
 0x36e   :  { %v6191_v40 = vadd.f32 %v5882_v20, %v708_v52  ;;  %v6194_v58 = vadd.f32 %v5882_v20, %v709_v38  ;;  %v6197_v59 = vadd.f32 %v5882_v20, %v710_v54  ;;  %v6200_v63 = vadd.f32 %v5882_v20, %v711_v33 }
 0x36f   :  { %v6203_v7 = vadd.f32 %v5882_v20, %v712_v36  ;;  %v731_v8 = vand.u32 2147483647, %v6188_v57  ;;  %v6208_v11 = vadd.f32 %v5882_v20, %v713_v39  ;;  %v6213_v23 = vadd.f32 %v5882_v20, %v714_v56 }
 0x370   :  { %v733_v10 = vand.u32 2147483647, %v6194_v58  ;;  %v732_v14 = vand.u32 2147483647, %v6191_v40  ;;  %v734_v22 = vand.u32 2147483647, %v6197_v59 }
 0x371   :  { %v739_v24 = vsub.f32 0.0, %v731_v8  ;;  %v735_v25 = vand.u32 2147483647, %v6200_v63  ;;  %v736_v26 = vand.u32 2147483647, %v6203_v7 }
 0x372   :  { %v741_v1 = vsub.f32 0.0, %v733_v10  ;;  %v740_v2 = vsub.f32 0.0, %v732_v14  ;;  %v742_v4 = vsub.f32 0.0, %v734_v22  ;;  %v737_v46 = vand.u32 2147483647, %v6208_v11 }
 0x373   :  { %v747_v5 = vmul.f32 1.442695, %v739_v24  ;;  %v743_v30 = vsub.f32 0.0, %v735_v25  ;;  %v744_v44 = vsub.f32 0.0, %v736_v26  ;;  %v738_v20 = vand.u32 2147483647, %v6213_v23 }
 0x374   :  { %v751_v29 = vmul.f32 1.442695, %v741_v1  ;;  %v749_v32 = vmul.f32 1.442695, %v740_v2  ;;  %v753_v41 = vmul.f32 1.442695, %v742_v4 }
 0x375   :  { %4848 = vpow2.f32 %v747_v5  ;;  %v755_v45 = vmul.f32 1.442695, %v743_v30  ;;  %v757_v47 = vmul.f32 1.442695, %v744_v44  ;;  %v745_v49 = vsub.f32 0.0, %v737_v46 }
 0x376   :  { %4850 = vpow2.f32 %v751_v29  ;;  %v746_v34 = vsub.f32 0.0, %v738_v20  ;;  %v723_v29 = vmin.f32 %v6188_v57, 0.0 }
 0x377   :  { %4852 = vpow2.f32 %v749_v32  ;;  %v759_v35 = vmul.f32 1.442695, %v745_v49 }
 0x378   :  { %4854 = vpow2.f32 %v753_v41  ;;  %v761_v50 = vmul.f32 1.442695, %v746_v34  ;;  %v725_v41 = vmin.f32 %v6194_v58, 0.0 }
 0x379   :  { %4856 = vpow2.f32 %v755_v45 }
 0x37a   :  { %4858 = vpow2.f32 %v757_v47 }
 0x37b   :  { %4860 = vpow2.f32 %v759_v35 }
 0x37c   :  { %4862 = vpow2.f32 %v761_v50  ;;  %v724_v50 = vmin.f32 %v6191_v40, 0.0 }
 0x382   :  { %v4849_v52 = vpop.eup %4848 }
 0x383   :  { %v4851_v38 = vpop.eup %4850  ;;  %v763_v54 = vadd.f32 1.0, %v4849_v52  ;;  %v726_v52 = vmin.f32 %v6197_v59, 0.0 }
 0x384   :  { %v4853_v33 = vpop.eup %4852  ;;  %v765_v36 = vadd.f32 1.0, %v4851_v38 }
 0x385   :  { %v4855_v39 = vpop.eup %4854  ;;  %4864 = vlog2.f32 %v763_v54  ;;  %v764_v56 = vadd.f32 1.0, %v4853_v33 }
 0x386   :  { %v4857_v8 = vpop.eup %4856  ;;  %4866 = vlog2.f32 %v765_v36  ;;  %v766_v10 = vadd.f32 1.0, %v4855_v39 }
 0x387   :  { %v4859_v14 = vpop.eup %4858  ;;  %4868 = vlog2.f32 %v764_v56  ;;  %v767_v22 = vadd.f32 1.0, %v4857_v8  ;;  %v727_v8 = vmin.f32 %v6200_v63, 0.0 }
 0x388   :  { %v4861_v24 = vpop.eup %4860  ;;  %4870 = vlog2.f32 %v766_v10  ;;  %v768_v1 = vadd.f32 1.0, %v4859_v14  ;;  %v728_v10 = vmin.f32 %v6203_v7, 0.0 }
 0x389   :  { %v4863_v25 = vpop.eup %4862  ;;  %4872 = vlog2.f32 %v767_v22  ;;  %v769_v2 = vadd.f32 1.0, %v4861_v24 }
 0x38a   :  { %4874 = vlog2.f32 %v768_v1  ;;  %v770_v4 = vadd.f32 1.0, %v4863_v25  ;;  %v729_v25 = vmin.f32 %v6208_v11, 0.0 }
 0x38b   :  { %4876 = vlog2.f32 %v769_v2  ;;  %v730_v2 = vmin.f32 %v6213_v23, 0.0 }
 0x38c   :  { %4878 = vlog2.f32 %v770_v4 }
 0x38d   :  { %4880 = vtanh.f32 %v6191_v40 }
 0x38e   :  { %4882 = vtanh.f32 %v6194_v58 }
 0x38f   :  { %4884 = vtanh.f32 %v6188_v57 }
 0x390   :  { %4886 = vtanh.f32 %v6197_v59 }
 0x391   :  { %4888 = vtanh.f32 %v6200_v63 }
 0x392   :  { %v4865_v26 = vpop.eup %4864  ;;  %4890 = vtanh.f32 %v6203_v7 }
 0x393   :  { %v4867_v5 = vpop.eup %4866  ;;  %v772_v30 = vmul.f32 0.6931472, %v4865_v26  ;;  %4892 = vtanh.f32 %v6208_v11 }
 0x394   :  { %v4869_v32 = vpop.eup %4868  ;;  %v776_v44 = vmul.f32 0.6931472, %v4867_v5  ;;  %4894 = vtanh.f32 %v6213_v23 }
 0x395   :  { %v4871_v45 = vpop.eup %4870  ;;  %v787_v46 = vsub.f32 %v723_v29, %v772_v30  ;;  %v774_v20 = vmul.f32 0.6931472, %v4869_v32 }
 0x396   :  { %v4873_v47 = vpop.eup %4872  ;;  %v789_v49 = vsub.f32 %v725_v41, %v776_v44  ;;  %v778_v34 = vmul.f32 0.6931472, %v4871_v45 }
 0x397   :  { %v4875_v35 = vpop.eup %4874  ;;  %803 = vrot.lane.b32.xlu0 %v787_v46, %s5758_s28  ;;  %v788_v38 = vsub.f32 %v724_v50, %v774_v20  ;;  %v780_v54 = vmul.f32 0.6931472, %v4873_v47 }
 0x398   :  { %807 = vrot.lane.b32.xlu1 %v789_v49, %s5758_s28  ;;  %v4877_v33 = vpop.eup %4876  ;;  %v790_v36 = vsub.f32 %v726_v52, %v778_v34  ;;  %v782_v39 = vmul.f32 0.6931472, %v4875_v35 }
 0x399   :  { %v4879_v56 = vpop.eup %4878  ;;  %v791_v14 = vsub.f32 %v727_v8, %v780_v54  ;;  %v784_v22 = vmul.f32 0.6931472, %v4877_v33 }
 0x39a   :  { %v792_v24 = vsub.f32 %v728_v10, %v782_v39  ;;  %v786_v1 = vmul.f32 0.6931472, %v4879_v56 }
 0x39b   :  { %805 = vrot.lane.b32.xlu0 %v788_v38, %s5758_s28  ;;  %v793_v4 = vsub.f32 %v729_v25, %v784_v22 }
 0x39c   :  { %809 = vrot.lane.b32.xlu1 %v790_v36, %s5758_s28  ;;  %v794_v26 = vsub.f32 %v730_v2, %v786_v1 }
 0x39f   :  { %811 = vrot.lane.b32.xlu0 %v791_v14, %s5758_s28 }
 0x3a0   :  { %813 = vrot.lane.b32.xlu1 %v792_v24, %s5758_s28 }
 0x3a3   :  { %815 = vrot.lane.b32.xlu0 %v793_v4, %s5758_s28 }
 0x3a4   :  { %817 = vrot.lane.b32.xlu1 %v794_v26, %s5758_s28 }
 0x3a7   :  { %1013 = vrot.lane.b32.xlu0 %v6116_v28, %s5759_s0  ;;  %v4881_v28 = vpop.eup %4880 }
 0x3a8   :  { %1015 = vrot.lane.b32.xlu1 %v6123_v37, %s5759_s0 }
 0x3ab   :  { %1011 = vrot.lane.b32.xlu0 %v6125_v51, %s5759_s0 }
 0x3ac   :  { %1017 = vrot.lane.b32.xlu1 %v6118_v48, %s5759_s0  ;;  %v4883_v48 = vpop.eup %4882 }
 0x3af   :  { %1019 = vrot.lane.b32.xlu0 %v6121_v43, %s5759_s0  ;;  %v4885_v43 = vpop.eup %4884 }
 0x3b0   :  { %1021 = vrot.lane.b32.xlu1 %v6128_v55, %s5759_s0  ;;  %v4887_v37 = vpop.eup %4886 }
 0x3b1   :  { %v4889_v51 = vpop.eup %4888 }
 0x3b2   :  { %v4891_v55 = vpop.eup %4890 }
 0x3b3   :  { %1023 = vrot.lane.b32.xlu0 %v6136_v3, %s5759_s0  ;;  %v4893_v3 = vpop.eup %4892 }
 0x3b4   :  { %1025 = vrot.lane.b32.xlu1 %v6140_v9, %s5759_s0  ;;  %v4895_v9 = vpop.eup %4894 }
 0x3b7   :  { %973 = vrot.lane.b32.xlu0 %v4881_v28, %s5757_s27 }
 0x3b8   :  { %975 = vrot.lane.b32.xlu1 %v4883_v48, %s5757_s27 }
 0x3bb   :  { %971 = vrot.lane.b32.xlu0 %v4885_v43, %s5757_s27 }
 0x3bc   :  { %977 = vrot.lane.b32.xlu1 %v4887_v37, %s5757_s27 }
 0x3bf   :  { %979 = vrot.lane.b32.xlu0 %v4889_v51, %s5757_s27 }
 0x3c0   :  { %981 = vrot.lane.b32.xlu1 %v4891_v55, %s5757_s27 }
 0x3c3   :  { %983 = vrot.lane.b32.xlu0 %v4893_v3, %s5757_s27 }
 0x3c4   :  { %985 = vrot.lane.b32.xlu1 %v4895_v9, %s5757_s27 }
 0x409   :  { %v804_v5 = vpop.permute.xlu0 %803 }
 0x40a   :  { %v827_v29 = vadd.f32 %v804_v5, %v5978_v53  ;;  %v808_v30 = vpop.permute.xlu1 %807 }
 0x40b   :  { %v829_v32 = vadd.f32 %v808_v30, %v5995_v61 }
 0x40c   :  { %v6270_v41 = vmax.f32 %v6188_v57, %v827_v29 }
 0x40d   :  { %v806_v44 = vpop.permute.xlu0 %805  ;;  %v6274_v20 = vmax.f32 %v6194_v58, %v829_v32 }
 0x40e   :  { %v828_v45 = vadd.f32 %v806_v44, %v5990_v60  ;;  %v810_v46 = vpop.permute.xlu1 %809  ;;  %v891_v49 = vsub.f32 %v6188_v57, %v6270_v41  ;;  %v915_v61 = vsub.f32 %v827_v29, %v6270_v41 }
 0x40f   :  { %v830_v47 = vadd.f32 %v810_v46, %v6000_v62  ;;  %v917_v52 = vsub.f32 %v829_v32, %v6274_v20  ;;  %v893_v36 = vsub.f32 %v6194_v58, %v6274_v20 }
 0x410   :  { %v6284_v35 = vmax.f32 %v6191_v40, %v828_v45  ;;  %v899_v54 = vmul.f32 1.442695, %v891_v49 }
 0x411   :  { %v6280_v53 = vmax.f32 %v6197_v59, %v830_v47  ;;  %v812_v34 = vpop.permute.xlu0 %811  ;;  %v927_v24 = vmul.f32 1.442695, %v917_v52  ;;  %v903_v26 = vmul.f32 1.442695, %v893_v36 }
 0x412   :  { %v831_v60 = vadd.f32 %v812_v34, %v6015_v13  ;;  %v814_v50 = vpop.permute.xlu1 %813  ;;  %v923_v13 = vmul.f32 1.442695, %v915_v61  ;;  %v892_v10 = vsub.f32 %v6191_v40, %v6284_v35  ;;  %4896 = vpow2.f32 %v899_v54 }
 0x413   :  { %v918_v38 = vsub.f32 %v830_v47, %v6280_v53  ;;  %v832_v62 = vadd.f32 %v814_v50, %v6023_v19  ;;  %v894_v1 = vsub.f32 %v6197_v59, %v6280_v53  ;;  %v916_v2 = vsub.f32 %v828_v45, %v6284_v35 }
 0x414   :  { %v6291_v33 = vmax.f32 %v6200_v63, %v831_v60 }
 0x415   :  { %v929_v39 = vmul.f32 1.442695, %v918_v38  ;;  %v6296_v56 = vmax.f32 %v6203_v7, %v832_v62  ;;  %v816_v8 = vpop.permute.xlu0 %815  ;;  %v905_v55 = vmul.f32 1.442695, %v894_v1  ;;  %v925_v3 = vmul.f32 1.442695, %v916_v2 }
 0x416   :  { %v919_v14 = vsub.f32 %v831_v60, %v6291_v33  ;;  %v833_v19 = vadd.f32 %v816_v8, %v6035_v27  ;;  %v818_v22 = vpop.permute.xlu1 %817  ;;  %v901_v27 = vmul.f32 1.442695, %v892_v10  ;;  %v895_v37 = vsub.f32 %v6200_v63, %v6291_v33 }
 0x417   :  { %v834_v25 = vadd.f32 %v818_v22, %v6041_v31  ;;  %4898 = vpow2.f32 %v929_v39  ;;  %v920_v28 = vsub.f32 %v832_v62, %v6296_v56  ;;  %v896_v45 = vsub.f32 %v6203_v7, %v6296_v56 }
 0x418   :  { %v931_v4 = vmul.f32 1.442695, %v919_v14  ;;  %4900 = vpow2.f32 %v923_v13  ;;  %v6315_v31 = vmax.f32 %v6208_v11, %v833_v19  ;;  %v907_v30 = vmul.f32 1.442695, %v895_v37 }
 0x419   :  { %v6308_v48 = vmax.f32 %v6213_v23, %v834_v25  ;;  %v6310_v43 = vpop.permute.xlu0 %1013  ;;  %4902 = vpow2.f32 %v927_v24  ;;  %v933_v9 = vmul.f32 1.442695, %v920_v28  ;;  %v909_v50 = vmul.f32 1.442695, %v896_v45 }
 0x41a   :  { %v6317_v51 = vpop.permute.xlu1 %1015  ;;  %4904 = vpow2.f32 %v931_v4  ;;  %v921_v32 = vsub.f32 %v833_v19, %v6315_v31  ;;  %v897_v46 = vsub.f32 %v6208_v11, %v6315_v31 }
 0x41b   :  { %4906 = vpow2.f32 %v903_v26  ;;  %v922_v5 = vsub.f32 %v834_v25, %v6308_v48  ;;  %v898_v61 = vsub.f32 %v6213_v23, %v6308_v48 }
 0x41c   :  { %4908 = vpow2.f32 %v901_v27  ;;  %v935_v34 = vmul.f32 1.442695, %v921_v32  ;;  %v911_v52 = vmul.f32 1.442695, %v897_v46 }
 0x41d   :  { %v1012_v29 = vpop.permute.xlu0 %1011  ;;  %4910 = vpow2.f32 %v905_v55  ;;  %v937_v47 = vmul.f32 1.442695, %v922_v5  ;;  %v913_v36 = vmul.f32 1.442695, %v898_v61 }
 0x41e   :  { %v1018_v44 = vpop.permute.xlu1 %1017  ;;  %4912 = vpow2.f32 %v925_v3 }
 0x41f   :  { %4914 = vpow2.f32 %v933_v9  ;;  %v4897_v38 = vpop.eup %4896 }
 0x420   :  { %4916 = vpow2.f32 %v907_v30 }
 0x421   :  { %v1020_v49 = vpop.permute.xlu0 %1019  ;;  %4918 = vpow2.f32 %v937_v47 }
 0x422   :  { %v1022_v60 = vpop.permute.xlu1 %1021  ;;  %4920 = vpow2.f32 %v935_v34 }
 0x423   :  { %4922 = vpow2.f32 %v909_v50 }
 0x424   :  { %v4899_v54 = vpop.eup %4898  ;;  %4924 = vpow2.f32 %v911_v52 }
 0x425   :  { %v6327_v62 = vpop.permute.xlu0 %1023  ;;  %v4901_v8 = vpop.eup %4900  ;;  %v1038_v14 = vmul.f32 %v4899_v54, %v1018_v44  ;;  %4926 = vpow2.f32 %v913_v36 }
 0x426   :  { %v1026_v39 = vpop.permute.xlu1 %1025  ;;  %v4903_v13 = vpop.eup %4902  ;;  %v1035_v25 = vmul.f32 %v4901_v8, %v1012_v29  ;;  %v947_v5 = vmul.f32 %v4901_v8, %v6068_v12  ;;  %v950_v29 = vmul.f32 %v4899_v54, %v507_v6 }
 0x427   :  { %v4905_v10 = vpop.eup %4904  ;;  %v949_v2 = vmul.f32 %v4903_v13, %v506_v15 }
 0x428   :  { %v4907_v22 = vpop.eup %4906  ;;  %v1039_v28 = vmul.f32 %v4905_v10, %v1020_v49  ;;  %v1043_v45 = vadd.f32 %v4897_v38, %v1035_v25 }
 0x429   :  { %v974_v19 = vpop.permute.xlu0 %973  ;;  %v4909_v1 = vpop.eup %4908 }
 0x42a   :  { %v976_v24 = vpop.permute.xlu1 %975  ;;  %v4911_v26 = vpop.eup %4910  ;;  %v996_v49 = vmul.f32 %v4909_v1, %v974_v19 }
 0x42b   :  { %v997_v4 = vmul.f32 %v4907_v22, %v976_v24  ;;  %v4913_v27 = vpop.eup %4912  ;;  %v1046_v37 = vadd.f32 %v4911_v26, %v1038_v14  ;;  %v951_v14 = vmul.f32 %v4905_v10, %v508_v17 }
 0x42c   :  { %v4915_v9 = vpop.eup %4914  ;;  %v1036_v15 = vmul.f32 %v4913_v27, %v6310_v43  ;;  %v1037_v43 = vmul.f32 %v4903_v13, %v6317_v51 }
 0x42d   :  { %v6331_v55 = vadd.f32 %v997_v4, %v949_v2  ;;  %v972_v3 = vpop.permute.xlu0 %971  ;;  %v4917_v44 = vpop.eup %4916  ;;  %4928 = vrcp.f32 %v1046_v37  ;;  %v1040_v61 = vmul.f32 %v4915_v9, %v1022_v60 }
 0x42e   :  { %v995_v30 = vmul.f32 %v4897_v38, %v972_v3  ;;  %v978_v32 = vpop.permute.xlu1 %977  ;;  %v1047_v47 = vadd.f32 %v4917_v44, %v1039_v28  ;;  %v4919_v36 = vpop.eup %4918  ;;  %v948_v38 = vmul.f32 %v4913_v27, %v505_v16  ;;  %4930 = vrcp.f32 %v1043_v45 }
 0x42f   :  { %v998_v46 = vmul.f32 %v4911_v26, %v978_v32  ;;  %1063 = vrot.lane.b32.xlu1 %v6331_v55, %s5758_s28  ;;  %v4921_v8 = vpop.eup %4920  ;;  %v1044_v19 = vadd.f32 %v4909_v1, %v1036_v15  ;;  %v1042_v2 = vmul.f32 %v4919_v36, %v1026_v39  ;;  %v1045_v1 = vadd.f32 %v4907_v22, %v1037_v43 }
 0x430   :  { %v6339_v34 = vadd.f32 %v995_v30, %v947_v5  ;;  %v4923_v60 = vpop.eup %4922  ;;  %4932 = vrcp.f32 %v1047_v47  ;;  %v6352_v24 = vadd.f32 %v996_v49, %v948_v38  ;;  %v953_v51 = vmul.f32 %v4921_v8, %v510_v42 }
 0x431   :  { %v6341_v50 = vadd.f32 %v998_v46, %v950_v29  ;;  %v980_v52 = vpop.permute.xlu0 %979  ;;  %v4925_v16 = vpop.eup %4924  ;;  %v1048_v25 = vadd.f32 %v4923_v60, %v1040_v61  ;;  %v952_v27 = vmul.f32 %v4915_v9, %v509_v21  ;;  %4934 = vrcp.f32 %v1044_v19 }
 0x432   :  { %v999_v6 = vmul.f32 %v4917_v44, %v980_v52  ;;  %1059 = vrot.lane.b32.xlu0 %v6339_v34, %s5758_s28  ;;  %v982_v54 = vpop.permute.xlu1 %981  ;;  %v4927_v10 = vpop.eup %4926  ;;  %v1041_v39 = vmul.f32 %v4921_v8, %v6327_v62  ;;  %v954_v30 = vmul.f32 %v4919_v36, %v511_v18  ;;  %v4546_v46 = vmul.f32 -1.442695, %v6191_v40 }
 0x433   :  { %1065 = vrot.lane.b32.xlu1 %v6341_v50, %s5758_s28  ;;  %v1000_v26 = vmul.f32 %v4923_v60, %v982_v54  ;;  %4936 = vrcp.f32 %v1048_v25  ;;  %v1050_v42 = vadd.f32 %v4927_v10, %v1042_v2  ;;  %v4547_v15 = vmul.f32 -1.442695, %v6194_v58 }
 0x434   :  { %v6354_v4 = vadd.f32 %v999_v6, %v951_v14  ;;  %4938 = vrcp.f32 %v1045_v1  ;;  %v1049_v21 = vadd.f32 %v4925_v16, %v1041_v39  ;;  %v4545_v47 = vmul.f32 -1.442695, %v6188_v57 }
 0x435   :  { %v984_v28 = vpop.permute.xlu0 %983  ;;  %v6367_v5 = vadd.f32 %v1000_v26, %v952_v27  ;;  %4940 = vrcp.f32 %v1050_v42  ;;  %v4548_v49 = vmul.f32 -1.442695, %v6197_v59  ;;  %v4549_v61 = vmul.f32 -1.442695, %v6200_v63 }
 0x436   :  { %v1001_v13 = vmul.f32 %v4925_v16, %v984_v28  ;;  %1061 = vrot.lane.b32.xlu0 %v6352_v24, %s5758_s28  ;;  %v986_v17 = vpop.permute.xlu1 %985  ;;  %4942 = vrcp.f32 %v1049_v21  ;;  %v4550_v52 = vmul.f32 -1.442695, %v6203_v7  ;;  %v4552_v36 = vmul.f32 -1.442695, %v6213_v23 }
 0x437   :  { %1067 = vrot.lane.b32.xlu1 %v6354_v4, %s5758_s28  ;;  %v1002_v3 = vmul.f32 %v4927_v10, %v986_v17  ;;  %4944 = vpow2.f32 %v4546_v46  ;;  %v4551_v38 = vmul.f32 -1.442695, %v6208_v11 }
 0x438   :  { %v6365_v37 = vadd.f32 %v1001_v13, %v953_v51  ;;  %4946 = vpow2.f32 %v4547_v15 }
 0x439   :  { %v6375_v22 = vadd.f32 %v1002_v3, %v954_v30  ;;  %4948 = vpow2.f32 %v4545_v47 }
 0x43a   :  { %1071 = vrot.lane.b32.xlu0 %v6365_v37, %s5758_s28  ;;  %v4929_v62 = vpop.eup %4928  ;;  %4950 = vpow2.f32 %v4548_v49 }
 0x43b   :  { %1069 = vrot.lane.b32.xlu1 %v6367_v5, %s5758_s28  ;;  %v4931_v9 = vpop.eup %4930  ;;  %4952 = vpow2.f32 %v4549_v61 }
 0x43c   :  { %4954 = vpow2.f32 %v4550_v52 }
 0x43d   :  { %v4933_v12 = vpop.eup %4932  ;;  %4956 = vpow2.f32 %v4552_v36 }
 0x43e   :  { %1073 = vrot.lane.b32.xlu0 %v6375_v22, %s5758_s28  ;;  %v4935_v18 = vpop.eup %4934  ;;  %4958 = vpow2.f32 %v4551_v38 }
 0x43f   :  { %1113 = vrot.lane.b32.xlu1 %v4929_v62, %s5758_s28 }
 0x440   :  { %v4937_v32 = vpop.eup %4936 }
 0x441   :  { %v4939_v44 = vpop.eup %4938 }
 0x442   :  { %1107 = vrot.lane.b32.xlu0 %v4931_v9, %s5758_s28  ;;  %v4941_v45 = vpop.eup %4940 }
 0x443   :  { %1115 = vrot.lane.b32.xlu1 %v4933_v12, %s5758_s28  ;;  %v4943_v29 = vpop.eup %4942 }
 0x444   :  { %v4945_v57 = vpop.eup %4944 }
 0x445   :  { %v4947_v58 = vpop.eup %4946  ;;  %v868_v8 = vadd.f32 1.0, %v4945_v57 }
 0x446   :  { %1109 = vrot.lane.b32.xlu0 %v4935_v18, %s5758_s28  ;;  %v4949_v59 = vpop.eup %4948  ;;  %v869_v7 = vadd.f32 1.0, %v4947_v58 }
 0x447   :  { %1117 = vrot.lane.b32.xlu1 %v4937_v32, %s5758_s28  ;;  %v4951_v54 = vpop.eup %4950  ;;  %v867_v60 = vadd.f32 1.0, %v4949_v59  ;;  %4960 = vrcp.f32 %v868_v8 }
 0x448   :  { %v4953_v43 = vpop.eup %4952  ;;  %v870_v19 = vadd.f32 1.0, %v4951_v54  ;;  %4962 = vrcp.f32 %v869_v7 }
 0x449   :  { %v4955_v14 = vpop.eup %4954  ;;  %v871_v11 = vadd.f32 1.0, %v4953_v43  ;;  %4964 = vrcp.f32 %v867_v60 }
 0x44a   :  { %1111 = vrot.lane.b32.xlu0 %v4939_v44, %s5758_s28  ;;  %v4957_v16 = vpop.eup %4956  ;;  %v872_v26 = vadd.f32 1.0, %v4955_v14  ;;  %4966 = vrcp.f32 %v870_v19 }
 0x44b   :  { %1121 = vrot.lane.b32.xlu1 %v4941_v45, %s5758_s28  ;;  %v4959_v2 = vpop.eup %4958  ;;  %v874_v51 = vadd.f32 1.0, %v4957_v16  ;;  %4968 = vrcp.f32 %v871_v11 }
 0x44c   :  { %v873_v13 = vadd.f32 1.0, %v4959_v2  ;;  %4970 = vrcp.f32 %v872_v26 }
 0x44d   :  { %4972 = vrcp.f32 %v874_v51 }
 0x44e   :  { %1119 = vrot.lane.b32.xlu0 %v4943_v29, %s5758_s28  ;;  %4974 = vrcp.f32 %v873_v13 }
 0x454   :  { %v4961_v3 = vpop.eup %4960 }
 0x455   :  { %v4963_v42 = vpop.eup %4962 }
 0x456   :  { %v4965_v21 = vpop.eup %4964 }
 0x457   :  { %v4967_v9 = vpop.eup %4966 }
 0x458   :  { %v4969_v32 = vpop.eup %4968 }
 0x459   :  { %v4971_v45 = vpop.eup %4970 }
 0x45a   :  { %v4973_v36 = vpop.eup %4972 }
 0x45b   :  { %v4975_v59 = vpop.eup %4974 }
 0x4a1   :  { %v1064_v40 = vpop.permute.xlu1 %1063 }
 0x4a2   :  { %v1085_v29 = vmul.f32 %v4963_v42, %v1064_v40  ;;  %v1238_v42 = vld [vmem:[%s8062_s1 + $0x2] sm:$0x1] }
 0x4a4   :  { %v1060_v6 = vpop.permute.xlu0 %1059 }
 0x4a5   :  { %v1066_v63 = vpop.permute.xlu1 %1065  ;;  %v1083_v15 = vmul.f32 %v4965_v21, %v1060_v6  ;;  %v1240_v21 = vld [vmem:[%s8062_s1 + $0x12] sm:$0x1] }
 0x4a6   :  { %v1086_v44 = vmul.f32 %v4967_v9, %v1066_v63 }
 0x4a8   :  { %v1062_v23 = vpop.permute.xlu0 %1061 }
 0x4a9   :  { %v1068_v25 = vpop.permute.xlu1 %1067  ;;  %v1084_v30 = vmul.f32 %v4961_v3, %v1062_v23  ;;  %v6458_v3 = vld [vmem:[%s8060_s2] sm:$0xff] }
 0x4aa   :  { %v1087_v46 = vmul.f32 %v4969_v32, %v1068_v25  ;;  %v1243_v32 = vld [vmem:[%s8062_s1 + $0x2a] sm:$0x1] }
 0x4ac   :  { %v1072_v28 = vpop.permute.xlu0 %1071 }
 0x4ad   :  { %v1070_v17 = vpop.permute.xlu1 %1069  ;;  %v1089_v40 = vmul.f32 %v4975_v59, %v1072_v28 }
 0x4ae   :  { %v1088_v47 = vmul.f32 %v4971_v45, %v1070_v17  ;;  %v1245_v45 = vld [vmem:[%s8062_s1 + $0x3a] sm:$0x1] }
 0x4b0   :  { %v1074_v10 = vpop.permute.xlu0 %1073 }
 0x4b1   :  { %v1114_v1 = vpop.permute.xlu1 %1113  ;;  %v1090_v54 = vmul.f32 %v4973_v36, %v1074_v10 }
 0x4b2   :  { %v6397_v49 = vmul.f32 %v1114_v1, %v1086_v44  ;;  %v6435_v1 = vld [vmem:[%s8060_s2 + $0x18] sm:$0xff]  ;;  %v1244_v44 = vld [vmem:[%s8062_s1 + $0x32] sm:$0x1] }
 0x4b4   :  { %v1108_v27 = vpop.permute.xlu0 %1107  ;;  %v1151_v43 = vrot.slane %v6397_v49, 5 }
 0x4b5   :  { %v1116_v39 = vpop.permute.xlu1 %1115  ;;  %v6404_v8 = vmul.f32 %v1108_v27, %v1083_v15  ;;  %v6444_v27 = vld [vmem:[%s8060_s2 + $0x10] sm:$0xff] }
 0x4b6   :  { %v6400_v38 = vmul.f32 %v1116_v39, %v1087_v46  ;;  %v6451_v39 = vld [vmem:[%s8060_s2 + $0x8] sm:$0xff] }
 0x4b8   :  { %v1110_v62 = vpop.permute.xlu0 %1109  ;;  %v1153_v19 = vrot.slane %v6400_v38, 4 }
 0x4b9   :  { %v6395_v12 = vmul.f32 %v1110_v62, %v1084_v30  ;;  %v1118_v18 = vpop.permute.xlu1 %1117  ;;  %v1239_v30 = vld [vmem:[%s8062_s1 + $0xa] sm:$0x1]  ;;  %v1241_v62 = vld [vmem:[%s8062_s1 + $0x1a] sm:$0x1] }
 0x4ba   :  { %v6406_v63 = vmul.f32 %v1118_v18, %v1088_v47  ;;  %v1242_v18 = vld [vmem:[%s8062_s1 + $0x22] sm:$0x1] }
 0x4bb   :  { %v1147_v61 = vrot.slane %v6395_v12, 7 }
 0x4bc   :  { %v1112_v52 = vpop.permute.xlu0 %1111  ;;  %v1155_v11 = vrot.slane %v6406_v63, 3 }
 0x4bd   :  { %v6402_v57 = vmul.f32 %v1112_v52, %v1085_v29  ;;  %v1122_v58 = vpop.permute.xlu1 %1121  ;;  %v1148_v7 = vsel %vm249_vm2, %v1147_v61, %v6404_v8 }
 0x4be   :  { %v6412_v14 = vmul.f32 %v1122_v58, %v1090_v54 }
 0x4bf   :  { %v1149_v6 = vrot.slane %v6402_v57, 6 }
 0x4c0   :  { %v1120_v60 = vpop.permute.xlu0 %1119  ;;  %v1159_v28 = vrot.slane %v6412_v14, 1 }
 0x4c1   :  { %v1150_v23 = vsel %vm252_vm3, %v1149_v6, %v1148_v7  ;;  %v6416_v16 = vmul.f32 %v1120_v60, %v1089_v40 }
 0x4c2   :  { %v1152_v25 = vsel %vm255_vm4, %v1151_v43, %v1150_v23  ;;  %v6489_v23 = vld [vmem:[%s8063_s3] ss:$0 sm:$0xff] }
 0x4c3   :  { %v1157_v2 = vrot.slane %v6416_v16, 2  ;;  %v1154_v26 = vsel %vm258_vm5, %v1153_v19, %v1152_v25 }
 0x4c4   :  { %v1156_v51 = vsel %vm261_vm6, %v1155_v11, %v1154_v26 }
 0x4c5   :  { %v1158_v13 = vsel %vm264_vm7, %v1157_v2, %v1156_v51 }
 0x4c6   :  { %v1160_v17 = vsel %vm267_vm8, %v1159_v28, %v1158_v13 }
 0x4c7   :  { %1161 = vrot.lane.b32.xlu0 %v1160_v17, %s5759_s0 }
 0x539   :  { %v1162_v10 = vpop.permute.xlu0 %1161 }
 0x53a   :  { %4553 = vst.msk [vmem:[%s8065_s5 + $0x8] sm:$0xff] %vm29_vm0, %v1162_v10  ;;  %4686 = vmatmul.mubr.msk.f32.vlgmr.msra.gmra.mxu0 %vm29_vm0, %v1162_v10 }
 0x53b   :  { %4700 = vmatpush3.msra.mxu0 %v6435_v1  ;;  %4707 = vmatprep.mubr.msk.f32.mxu0 %vm5756_vm1, %v5755_v0 }
 0x53c   :  { %4701 = vmatprep.subr.mxu0 %v5755_v0 }
 0x53d   :  { %4702 = vmatpush3.msra.mxu0 %v6444_v27 }
 0x53e   :  { %4703 = vmatprep.subr.mxu0 %v5755_v0 }
 0x53f   :  { %4704 = vmatpush3.msra.mxu0 %v6451_v39 }
 0x540   :  { %4705 = vmatprep.subr.mxu0 %v5755_v0 }
 0x541   :  { %4706 = vmatpush3.msra.mxu0 %v6458_v3 }
 0x542   :  { %4721 = vmatprep.subr.mxu0 %v5755_v0 }
 0x5fa   :  { %v1234_v9 = vpop.f32.mrf.mxu0 }
 0x5fb   :  { %v1247_v29 = vrot.slane %v1234_v9, 1  ;;  %v1248_v46 = vrot.slane %v1234_v9, 2  ;;  %v1249_v15 = vrot.slane %v1234_v9, 3  ;;  %v1250_v47 = vrot.slane %v1234_v9, 4 }
 0x5fc   :  { %v1251_v61 = vrot.slane %v1234_v9, 5  ;;  %v1252_v52 = vrot.slane %v1234_v9, 6  ;;  %v1253_v36 = vrot.slane %v1234_v9, 7  ;;  %v1262_v58 = vadd.f32 %v1238_v42, %v1234_v9  ;;  %v4687_v59 = vpop.f32.mrf.mxu0 }
 0x5fd   :  { %v1263_v54 = vadd.f32 %v1247_v29, %v1239_v30  ;;  %v1264_v40 = vadd.f32 %v1248_v46, %v1240_v21  ;;  %v1265_v6 = vadd.f32 %v1249_v15, %v1241_v62  ;;  %v1266_v43 = vadd.f32 %v1250_v47, %v1242_v18 }
 0x5fe   :  { %v1267_v7 = vadd.f32 %v1251_v61, %v1243_v32  ;;  %v1268_v60 = vadd.f32 %v1252_v52, %v1244_v44  ;;  %v1269_v19 = vadd.f32 %v1253_v36, %v1245_v45  ;;  %v6492_v11 = vadd.f32 %v6489_v23, %v1262_v58 }
 0x5ff   :  { %v6495_v25 = vadd.f32 %v6489_v23, %v1263_v54  ;;  %v6498_v2 = vadd.f32 %v6489_v23, %v1264_v40  ;;  %v6501_v26 = vadd.f32 %v6489_v23, %v1265_v6  ;;  %v6504_v28 = vadd.f32 %v6489_v23, %v1266_v43 }
 0x600   :  { %v6507_v51 = vadd.f32 %v6489_v23, %v1267_v7  ;;  %v1286_v13 = vand.u32 2147483647, %v6492_v11  ;;  %v6512_v10 = vadd.f32 %v6489_v23, %v1268_v60  ;;  %v6517_v21 = vadd.f32 %v6489_v23, %v1269_v19 }
 0x601   :  { %v1288_v17 = vand.u32 2147483647, %v6498_v2  ;;  %v1287_v42 = vand.u32 2147483647, %v6495_v25  ;;  %v1289_v30 = vand.u32 2147483647, %v6501_v26 }
 0x602   :  { %v1294_v62 = vsub.f32 0.0, %v1286_v13  ;;  %v1290_v18 = vand.u32 2147483647, %v6504_v28  ;;  %v1291_v45 = vand.u32 2147483647, %v6507_v51 }
 0x603   :  { %v1296_v9 = vsub.f32 0.0, %v1288_v17  ;;  %v1295_v32 = vsub.f32 0.0, %v1287_v42  ;;  %v1297_v44 = vsub.f32 0.0, %v1289_v30  ;;  %v1292_v58 = vand.u32 2147483647, %v6512_v10 }
 0x604   :  { %v1302_v29 = vmul.f32 1.442695, %v1294_v62  ;;  %v1298_v15 = vsub.f32 0.0, %v1290_v18  ;;  %v1299_v52 = vsub.f32 0.0, %v1291_v45  ;;  %v1293_v59 = vand.u32 2147483647, %v6517_v21 }
 0x605   :  { %v1306_v46 = vmul.f32 1.442695, %v1296_v9  ;;  %v1304_v47 = vmul.f32 1.442695, %v1295_v32  ;;  %v1308_v61 = vmul.f32 1.442695, %v1297_v44 }
 0x606   :  { %4976 = vpow2.f32 %v1302_v29  ;;  %v1310_v36 = vmul.f32 1.442695, %v1298_v15  ;;  %v1312_v54 = vmul.f32 1.442695, %v1299_v52  ;;  %v1300_v40 = vsub.f32 0.0, %v1292_v58 }
 0x607   :  { %4978 = vpow2.f32 %v1306_v46  ;;  %v1301_v6 = vsub.f32 0.0, %v1293_v59 }
 0x608   :  { %4980 = vpow2.f32 %v1304_v47  ;;  %v1314_v43 = vmul.f32 1.442695, %v1300_v40 }
 0x609   :  { %4982 = vpow2.f32 %v1308_v61  ;;  %v1316_v7 = vmul.f32 1.442695, %v1301_v6 }
 0x60a   :  { %4984 = vpow2.f32 %v1310_v36  ;;  %v1278_v36 = vmin.f32 %v6492_v11, 0.0 }
 0x60b   :  { %4986 = vpow2.f32 %v1312_v54  ;;  %v1280_v54 = vmin.f32 %v6498_v2, 0.0 }
 0x60c   :  { %4988 = vpow2.f32 %v1314_v43 }
 0x60d   :  { %4990 = vpow2.f32 %v1316_v7 }
 0x613   :  { %v4977_v60 = vpop.eup %4976 }
 0x614   :  { %v4979_v19 = vpop.eup %4978  ;;  %v1318_v13 = vadd.f32 1.0, %v4977_v60 }
 0x615   :  { %v4981_v17 = vpop.eup %4980  ;;  %v1320_v42 = vadd.f32 1.0, %v4979_v19 }
 0x616   :  { %v4983_v30 = vpop.eup %4982  ;;  %4992 = vlog2.f32 %v1318_v13  ;;  %v1319_v62 = vadd.f32 1.0, %v4981_v17 }
 0x617   :  { %v4985_v9 = vpop.eup %4984  ;;  %4994 = vlog2.f32 %v1320_v42  ;;  %v1321_v18 = vadd.f32 1.0, %v4983_v30  ;;  %v1279_v42 = vmin.f32 %v6495_v25, 0.0  ;;  %v1281_v30 = vmin.f32 %v6501_v26, 0.0 }
 0x618   :  { %v4987_v32 = vpop.eup %4986  ;;  %4996 = vlog2.f32 %v1319_v62  ;;  %v1322_v44 = vadd.f32 1.0, %v4985_v9 }
 0x619   :  { %v4989_v45 = vpop.eup %4988  ;;  %4998 = vlog2.f32 %v1321_v18  ;;  %v1323_v29 = vadd.f32 1.0, %v4987_v32 }
 0x61a   :  { %v4991_v46 = vpop.eup %4990  ;;  %5000 = vlog2.f32 %v1322_v44  ;;  %v1324_v15 = vadd.f32 1.0, %v4989_v45 }
 0x61b   :  { %5002 = vlog2.f32 %v1323_v29  ;;  %v1325_v47 = vadd.f32 1.0, %v4991_v46  ;;  %v1282_v29 = vmin.f32 %v6504_v28, 0.0  ;;  %v1283_v46 = vmin.f32 %v6507_v51, 0.0 }
 0x61c   :  { %5004 = vlog2.f32 %v1324_v15 }
 0x61d   :  { %5006 = vlog2.f32 %v1325_v47 }
 0x61e   :  { %5008 = vtanh.f32 %v6495_v25 }
 0x61f   :  { %5010 = vtanh.f32 %v6498_v2 }
 0x620   :  { %5012 = vtanh.f32 %v6492_v11 }
 0x621   :  { %5014 = vtanh.f32 %v6501_v26 }
 0x622   :  { %5016 = vtanh.f32 %v6504_v28 }
 0x623   :  { %v4993_v61 = vpop.eup %4992  ;;  %5018 = vtanh.f32 %v6507_v51 }
 0x624   :  { %v4995_v52 = vpop.eup %4994  ;;  %v1327_v58 = vmul.f32 0.6931472, %v4993_v61  ;;  %5020 = vtanh.f32 %v6512_v10 }
 0x625   :  { %v4997_v59 = vpop.eup %4996  ;;  %v1331_v40 = vmul.f32 0.6931472, %v4995_v52  ;;  %5022 = vtanh.f32 %v6517_v21 }
 0x626   :  { %v4999_v6 = vpop.eup %4998  ;;  %v1342_v43 = vsub.f32 %v1278_v36, %v1327_v58  ;;  %v1329_v7 = vmul.f32 0.6931472, %v4997_v59  ;;  %v1284_v36 = vmin.f32 %v6512_v10, 0.0  ;;  %v1285_v58 = vmin.f32 %v6517_v21, 0.0 }
 0x627   :  { %v5001_v60 = vpop.eup %5000  ;;  %v1344_v19 = vsub.f32 %v1280_v54, %v1331_v40  ;;  %v1333_v13 = vmul.f32 0.6931472, %v4999_v6 }
 0x628   :  { %v5003_v17 = vpop.eup %5002  ;;  %1358 = vrot.lane.b32.xlu1 %v1342_v43, %s5758_s28  ;;  %v1343_v62 = vsub.f32 %v1279_v42, %v1329_v7  ;;  %v1335_v9 = vmul.f32 0.6931472, %v5001_v60 }
 0x629   :  { %1362 = vrot.lane.b32.xlu0 %v1344_v19, %s5758_s28  ;;  %v5005_v18 = vpop.eup %5004  ;;  %v1345_v32 = vsub.f32 %v1281_v30, %v1333_v13  ;;  %v1337_v44 = vmul.f32 0.6931472, %v5003_v17 }
 0x62a   :  { %v5007_v45 = vpop.eup %5006  ;;  %v1346_v15 = vsub.f32 %v1282_v29, %v1335_v9  ;;  %v1339_v47 = vmul.f32 0.6931472, %v5005_v18 }
 0x62b   :  { %v1347_v61 = vsub.f32 %v1283_v46, %v1337_v44  ;;  %v1341_v52 = vmul.f32 0.6931472, %v5007_v45 }
 0x62c   :  { %1360 = vrot.lane.b32.xlu1 %v1343_v62, %s5758_s28  ;;  %v1348_v59 = vsub.f32 %v1284_v36, %v1339_v47 }
 0x62d   :  { %1364 = vrot.lane.b32.xlu0 %v1345_v32, %s5758_s28  ;;  %v1349_v54 = vsub.f32 %v1285_v58, %v1341_v52 }
 0x630   :  { %1366 = vrot.lane.b32.xlu1 %v1346_v15, %s5758_s28 }
 0x631   :  { %1368 = vrot.lane.b32.xlu0 %v1347_v61, %s5758_s28 }
 0x634   :  { %1370 = vrot.lane.b32.xlu1 %v1348_v59, %s5758_s28 }
 0x635   :  { %1372 = vrot.lane.b32.xlu0 %v1349_v54, %s5758_s28 }
 0x638   :  { %1560 = vrot.lane.b32.xlu1 %v6395_v12, %s5759_s0  ;;  %v5009_v12 = vpop.eup %5008 }
 0x639   :  { %1562 = vrot.lane.b32.xlu0 %v6402_v57, %s5759_s0 }
 0x63c   :  { %1558 = vrot.lane.b32.xlu1 %v6404_v8, %s5759_s0 }
 0x63d   :  { %1564 = vrot.lane.b32.xlu0 %v6397_v49, %s5759_s0  ;;  %v5011_v49 = vpop.eup %5010 }
 0x640   :  { %1566 = vrot.lane.b32.xlu1 %v6400_v38, %s5759_s0  ;;  %v5013_v38 = vpop.eup %5012 }
 0x641   :  { %1568 = vrot.lane.b32.xlu0 %v6406_v63, %s5759_s0  ;;  %v5015_v57 = vpop.eup %5014 }
 0x642   :  { %v5017_v8 = vpop.eup %5016 }
 0x643   :  { %v5019_v63 = vpop.eup %5018 }
 0x644   :  { %1570 = vrot.lane.b32.xlu1 %v6416_v16, %s5759_s0 }
 0x645   :  { %1572 = vrot.lane.b32.xlu0 %v6412_v14, %s5759_s0  ;;  %v5021_v14 = vpop.eup %5020 }
 0x646   :  { %v5023_v16 = vpop.eup %5022 }
 0x648   :  { %1520 = vrot.lane.b32.xlu1 %v5009_v12, %s5757_s27 }
 0x649   :  { %1522 = vrot.lane.b32.xlu0 %v5011_v49, %s5757_s27 }
 0x64c   :  { %1518 = vrot.lane.b32.xlu1 %v5013_v38, %s5757_s27 }
 0x64d   :  { %1524 = vrot.lane.b32.xlu0 %v5015_v57, %s5757_s27 }
 0x650   :  { %1526 = vrot.lane.b32.xlu1 %v5017_v8, %s5757_s27 }
 0x651   :  { %1528 = vrot.lane.b32.xlu0 %v5019_v63, %s5757_s27 }
 0x654   :  { %1530 = vrot.lane.b32.xlu1 %v5021_v14, %s5757_s27 }
 0x655   :  { %1532 = vrot.lane.b32.xlu0 %v5023_v16, %s5757_s27 }
 0x69a   :  { %v1359_v40 = vpop.permute.xlu1 %1358 }
 0x69b   :  { %v1382_v6 = vadd.f32 %v1359_v40, %v6270_v41  ;;  %v1363_v43 = vpop.permute.xlu0 %1362 }
 0x69c   :  { %v1384_v7 = vadd.f32 %v1363_v43, %v6274_v20 }
 0x69d   :  { %v6574_v60 = vmax.f32 %v6492_v11, %v1382_v6 }
 0x69e   :  { %v1361_v19 = vpop.permute.xlu1 %1360  ;;  %v6578_v42 = vmax.f32 %v6498_v2, %v1384_v7 }
 0x69f   :  { %v1383_v13 = vadd.f32 %v1361_v19, %v6284_v35  ;;  %v1365_v17 = vpop.permute.xlu0 %1364  ;;  %v1446_v62 = vsub.f32 %v6492_v11, %v6574_v60  ;;  %v1470_v20 = vsub.f32 %v1382_v6, %v6574_v60 }
 0x6a0   :  { %v1385_v30 = vadd.f32 %v1365_v17, %v6280_v53  ;;  %v1472_v44 = vsub.f32 %v1384_v7, %v6578_v42  ;;  %v1448_v15 = vsub.f32 %v6498_v2, %v6578_v42 }
 0x6a1   :  { %v6588_v18 = vmax.f32 %v6495_v25, %v1383_v13  ;;  %v1454_v29 = vmul.f32 1.442695, %v1446_v62 }
 0x6a2   :  { %v6584_v41 = vmax.f32 %v6501_v26, %v1385_v30  ;;  %v1367_v9 = vpop.permute.xlu1 %1366  ;;  %v1482_v54 = vmul.f32 1.442695, %v1472_v44  ;;  %v1458_v8 = vmul.f32 1.442695, %v1448_v15 }
 0x6a3   :  { %v1386_v35 = vadd.f32 %v1367_v9, %v6291_v33  ;;  %v1369_v32 = vpop.permute.xlu0 %1368  ;;  %v1478_v33 = vmul.f32 1.442695, %v1470_v20  ;;  %v1447_v36 = vsub.f32 %v6495_v25, %v6588_v18  ;;  %5024 = vpow2.f32 %v1454_v29 }
 0x6a4   :  { %v1473_v45 = vsub.f32 %v1385_v30, %v6584_v41  ;;  %v1387_v53 = vadd.f32 %v1369_v32, %v6296_v56  ;;  %v1449_v12 = vsub.f32 %v6501_v26, %v6584_v41  ;;  %v1471_v38 = vsub.f32 %v1383_v13, %v6588_v18 }
 0x6a5   :  { %v6595_v46 = vmax.f32 %v6504_v28, %v1386_v35 }
 0x6a6   :  { %v1484_v47 = vmul.f32 1.442695, %v1473_v45  ;;  %v6600_v61 = vmax.f32 %v6507_v51, %v1387_v53  ;;  %v1371_v52 = vpop.permute.xlu1 %1370  ;;  %v1460_v43 = vmul.f32 1.442695, %v1449_v12  ;;  %v1480_v7 = vmul.f32 1.442695, %v1471_v38 }
 0x6a7   :  { %v1474_v58 = vsub.f32 %v1386_v35, %v6595_v46  ;;  %v1388_v56 = vadd.f32 %v1371_v52, %v6315_v31  ;;  %v1373_v59 = vpop.permute.xlu0 %1372  ;;  %v1456_v31 = vmul.f32 1.442695, %v1447_v36  ;;  %v1450_v40 = vsub.f32 %v6504_v28, %v6595_v46 }
 0x6a8   :  { %v1389_v49 = vadd.f32 %v1373_v59, %v6308_v48  ;;  %5026 = vpow2.f32 %v1484_v47  ;;  %v1475_v63 = vsub.f32 %v1387_v53, %v6600_v61  ;;  %v1451_v20 = vsub.f32 %v6507_v51, %v6600_v61 }
 0x6a9   :  { %v1486_v57 = vmul.f32 1.442695, %v1474_v58  ;;  %5028 = vpow2.f32 %v1478_v33  ;;  %v6619_v48 = vmax.f32 %v6512_v10, %v1388_v56  ;;  %v1462_v30 = vmul.f32 1.442695, %v1450_v40 }
 0x6aa   :  { %v6612_v14 = vmax.f32 %v6517_v21, %v1389_v49  ;;  %v6614_v16 = vpop.permute.xlu1 %1560  ;;  %5030 = vpow2.f32 %v1482_v54  ;;  %v1488_v19 = vmul.f32 1.442695, %v1475_v63  ;;  %v1464_v15 = vmul.f32 1.442695, %v1451_v20 }
 0x6ab   :  { %v6621_v6 = vpop.permute.xlu0 %1562  ;;  %5032 = vpow2.f32 %v1486_v57  ;;  %v1476_v62 = vsub.f32 %v1388_v56, %v6619_v48  ;;  %v1452_v35 = vsub.f32 %v6512_v10, %v6619_v48 }
 0x6ac   :  { %5034 = vpow2.f32 %v1458_v8  ;;  %v1477_v13 = vsub.f32 %v1389_v49, %v6612_v14  ;;  %v1453_v53 = vsub.f32 %v6517_v21, %v6612_v14 }
 0x6ad   :  { %5036 = vpow2.f32 %v1456_v31  ;;  %v1490_v45 = vmul.f32 1.442695, %v1476_v62  ;;  %v1466_v47 = vmul.f32 1.442695, %v1452_v35 }
 0x6ae   :  { %v1559_v17 = vpop.permute.xlu1 %1558  ;;  %5038 = vpow2.f32 %v1460_v43  ;;  %v1492_v32 = vmul.f32 1.442695, %v1477_v13  ;;  %v1468_v58 = vmul.f32 1.442695, %v1453_v53 }
 0x6af   :  { %v1565_v9 = vpop.permute.xlu0 %1564  ;;  %5040 = vpow2.f32 %v1480_v7 }
 0x6b0   :  { %5042 = vpow2.f32 %v1488_v19  ;;  %v5025_v52 = vpop.eup %5024 }
 0x6b1   :  { %5044 = vpow2.f32 %v1462_v30 }
 0x6b2   :  { %v1567_v44 = vpop.permute.xlu1 %1566  ;;  %5046 = vpow2.f32 %v1492_v32 }
 0x6b3   :  { %v1569_v29 = vpop.permute.xlu0 %1568  ;;  %5048 = vpow2.f32 %v1490_v45 }
 0x6b4   :  { %5050 = vpow2.f32 %v1464_v15 }
 0x6b5   :  { %v5027_v36 = vpop.eup %5026  ;;  %5052 = vpow2.f32 %v1466_v47 }
 0x6b6   :  { %v6631_v33 = vpop.permute.xlu1 %1570  ;;  %v5029_v59 = vpop.eup %5028  ;;  %v1585_v49 = vmul.f32 %v5027_v36, %v1565_v9  ;;  %5054 = vpow2.f32 %v1468_v58  ;;  %v1497_v47 = vmul.f32 %v5027_v36, %v6341_v50 }
 0x6b7   :  { %v1573_v56 = vpop.permute.xlu0 %1572  ;;  %v5031_v54 = vpop.eup %5030  ;;  %v1582_v31 = vmul.f32 %v5029_v59, %v1559_v17  ;;  %v1494_v32 = vmul.f32 %v5029_v59, %v6339_v34 }
 0x6b8   :  { %v5033_v12 = vpop.eup %5032  ;;  %v1496_v40 = vmul.f32 %v5031_v54, %v6331_v55 }
 0x6b9   :  { %v5035_v57 = vpop.eup %5034  ;;  %v1586_v19 = vmul.f32 %v5033_v12, %v1567_v44  ;;  %v1590_v15 = vadd.f32 %v5025_v52, %v1582_v31 }
 0x6ba   :  { %v1521_v38 = vpop.permute.xlu1 %1520  ;;  %v5037_v63 = vpop.eup %5036 }
 0x6bb   :  { %v1523_v8 = vpop.permute.xlu0 %1522  ;;  %v5039_v7 = vpop.eup %5038  ;;  %v1543_v58 = vmul.f32 %v5037_v63, %v1521_v38  ;;  %v1498_v38 = vmul.f32 %v5033_v12, %v6354_v4 }
 0x6bc   :  { %v1544_v43 = vmul.f32 %v5035_v57, %v1523_v8  ;;  %v5041_v13 = vpop.eup %5040  ;;  %v1593_v30 = vadd.f32 %v5039_v7, %v1585_v49 }
 0x6bd   :  { %v5043_v35 = vpop.eup %5042  ;;  %v1583_v55 = vmul.f32 %v5041_v13, %v6614_v16  ;;  %v1584_v16 = vmul.f32 %v5031_v54, %v6621_v6 }
 0x6be   :  { %v6634_v62 = vadd.f32 %v1544_v43, %v1496_v40  ;;  %v1519_v20 = vpop.permute.xlu1 %1518  ;;  %v5045_v53 = vpop.eup %5044  ;;  %5056 = vrcp.f32 %v1593_v30  ;;  %v1587_v8 = vmul.f32 %v5043_v35, %v1569_v29 }
 0x6bf   :  { %v1542_v9 = vmul.f32 %v5025_v52, %v1519_v20  ;;  %v1525_v45 = vpop.permute.xlu0 %1524  ;;  %v1594_v44 = vadd.f32 %v5045_v53, %v1586_v19  ;;  %v5047_v59 = vpop.eup %5046  ;;  %v1495_v52 = vmul.f32 %v5041_v13, %v6352_v24  ;;  %5058 = vrcp.f32 %v1590_v15 }
 0x6c0   :  { %v1545_v17 = vmul.f32 %v5039_v7, %v1525_v45  ;;  %1610 = vrot.lane.b32.xlu0 %v6634_v62, %s5758_s28  ;;  %v5049_v36 = vpop.eup %5048  ;;  %v1591_v43 = vadd.f32 %v5037_v63, %v1583_v55  ;;  %v1589_v13 = vmul.f32 %v5047_v59, %v1573_v56  ;;  %v1499_v63 = vmul.f32 %v5043_v35, %v6367_v5 }
 0x6c1   :  { %v6641_v49 = vadd.f32 %v1542_v9, %v1494_v32  ;;  %v5051_v29 = vpop.eup %5050  ;;  %5060 = vrcp.f32 %v1594_v44  ;;  %v6652_v7 = vadd.f32 %v1543_v58, %v1495_v52  ;;  %v1500_v6 = vmul.f32 %v5049_v36, %v6365_v37 }
 0x6c2   :  { %v6643_v40 = vadd.f32 %v1545_v17, %v1497_v47  ;;  %v1527_v34 = vpop.permute.xlu1 %1526  ;;  %v5053_v24 = vpop.eup %5052  ;;  %v1595_v19 = vadd.f32 %v5051_v29, %v1587_v8  ;;  %v1592_v9 = vadd.f32 %v5035_v57, %v1584_v16  ;;  %5062 = vrcp.f32 %v1591_v43 }
 0x6c3   :  { %v1546_v31 = vmul.f32 %v5045_v53, %v1527_v34  ;;  %1606 = vrot.lane.b32.xlu1 %v6641_v49, %s5758_s28  ;;  %v1529_v50 = vpop.permute.xlu0 %1528  ;;  %v5055_v12 = vpop.eup %5054  ;;  %v1588_v56 = vmul.f32 %v5049_v36, %v6631_v33  ;;  %v1501_v47 = vmul.f32 %v5047_v59, %v6375_v22  ;;  %v4556_v34 = vmul.f32 -1.442695, %v6495_v25 }
 0x6c4   :  { %1612 = vrot.lane.b32.xlu0 %v6643_v40, %s5758_s28  ;;  %v1547_v20 = vmul.f32 %v5051_v29, %v1529_v50  ;;  %5064 = vrcp.f32 %v1595_v19  ;;  %v1597_v37 = vadd.f32 %v5055_v12, %v1589_v13  ;;  %v4557_v59 = vmul.f32 -1.442695, %v6498_v2 }
 0x6c5   :  { %v6654_v30 = vadd.f32 %v1546_v31, %v1498_v38  ;;  %5066 = vrcp.f32 %v1592_v9  ;;  %v1596_v5 = vadd.f32 %v5053_v24, %v1588_v56  ;;  %v4555_v52 = vmul.f32 -1.442695, %v6492_v11 }
 0x6c6   :  { %v1531_v32 = vpop.permute.xlu1 %1530  ;;  %v6665_v15 = vadd.f32 %v1547_v20, %v1499_v63  ;;  %5068 = vrcp.f32 %v1597_v37  ;;  %v4558_v31 = vmul.f32 -1.442695, %v6501_v26  ;;  %v4559_v50 = vmul.f32 -1.442695, %v6504_v28 }
 0x6c7   :  { %v1548_v54 = vmul.f32 %v5053_v24, %v1531_v32  ;;  %1608 = vrot.lane.b32.xlu1 %v6652_v7, %s5758_s28  ;;  %v1533_v4 = vpop.permute.xlu0 %1532  ;;  %5070 = vrcp.f32 %v1596_v5  ;;  %v4560_v36 = vmul.f32 -1.442695, %v6507_v51  ;;  %v4562_v16 = vmul.f32 -1.442695, %v6517_v21 }
 0x6c8   :  { %1614 = vrot.lane.b32.xlu0 %v6654_v30, %s5758_s28  ;;  %v1549_v53 = vmul.f32 %v5055_v12, %v1533_v4  ;;  %5072 = vpow2.f32 %v4556_v34  ;;  %v4561_v38 = vmul.f32 -1.442695, %v6512_v10 }
 0x6c9   :  { %v6663_v45 = vadd.f32 %v1548_v54, %v1500_v6  ;;  %5074 = vpow2.f32 %v4557_v59 }
 0x6ca   :  { %v6672_v57 = vadd.f32 %v1549_v53, %v1501_v47  ;;  %5076 = vpow2.f32 %v4555_v52 }
 0x6cb   :  { %1618 = vrot.lane.b32.xlu1 %v6663_v45, %s5758_s28  ;;  %v5057_v33 = vpop.eup %5056  ;;  %5078 = vpow2.f32 %v4558_v31 }
 0x6cc   :  { %1616 = vrot.lane.b32.xlu0 %v6665_v15, %s5758_s28  ;;  %v5059_v35 = vpop.eup %5058  ;;  %5080 = vpow2.f32 %v4559_v50 }
 0x6cd   :  { %5082 = vpow2.f32 %v4560_v36 }
 0x6ce   :  { %v5061_v22 = vpop.eup %5060  ;;  %5084 = vpow2.f32 %v4562_v16 }
 0x6cf   :  { %1620 = vrot.lane.b32.xlu1 %v6672_v57, %s5758_s28  ;;  %v5063_v17 = vpop.eup %5062  ;;  %5086 = vpow2.f32 %v4561_v38 }
 0x6d0   :  { %1660 = vrot.lane.b32.xlu0 %v5057_v33, %s5758_s28 }
 0x6d1   :  { %v5065_v55 = vpop.eup %5064 }
 0x6d2   :  { %v5067_v44 = vpop.eup %5066 }
 0x6d3   :  { %1654 = vrot.lane.b32.xlu1 %v5059_v35, %s5758_s28  ;;  %v5069_v58 = vpop.eup %5068 }
 0x6d4   :  { %1662 = vrot.lane.b32.xlu0 %v5061_v22, %s5758_s28  ;;  %v5071_v8 = vpop.eup %5070 }
 0x6d5   :  { %v5073_v11 = vpop.eup %5072 }
 0x6d6   :  { %v5075_v2 = vpop.eup %5074  ;;  %v1423_v24 = vadd.f32 1.0, %v5073_v11 }
 0x6d7   :  { %1656 = vrot.lane.b32.xlu1 %v5063_v17, %s5758_s28  ;;  %v5077_v26 = vpop.eup %5076  ;;  %v1424_v51 = vadd.f32 1.0, %v5075_v2 }
 0x6d8   :  { %1664 = vrot.lane.b32.xlu0 %v5065_v55, %s5758_s28  ;;  %v5079_v43 = vpop.eup %5078  ;;  %v1422_v20 = vadd.f32 1.0, %v5077_v26  ;;  %5088 = vrcp.f32 %v1423_v24 }
 0x6d9   :  { %v5081_v19 = vpop.eup %5080  ;;  %v1425_v32 = vadd.f32 1.0, %v5079_v43  ;;  %5090 = vrcp.f32 %v1424_v51 }
 0x6da   :  { %v5083_v13 = vpop.eup %5082  ;;  %v1426_v10 = vadd.f32 1.0, %v5081_v19  ;;  %5092 = vrcp.f32 %v1422_v20 }
 0x6db   :  { %1658 = vrot.lane.b32.xlu1 %v5067_v44, %s5758_s28  ;;  %v5085_v6 = vpop.eup %5084  ;;  %v1427_v12 = vadd.f32 1.0, %v5083_v13  ;;  %5094 = vrcp.f32 %v1425_v32 }
 0x6dc   :  { %1668 = vrot.lane.b32.xlu0 %v5069_v58, %s5758_s28  ;;  %v5087_v4 = vpop.eup %5086  ;;  %v1429_v63 = vadd.f32 1.0, %v5085_v6  ;;  %5096 = vrcp.f32 %v1426_v10 }
 0x6dd   :  { %v1428_v56 = vadd.f32 1.0, %v5087_v4  ;;  %5098 = vrcp.f32 %v1427_v12 }
 0x6de   :  { %5100 = vrcp.f32 %v1429_v63 }
 0x6df   :  { %1666 = vrot.lane.b32.xlu1 %v5071_v8, %s5758_s28  ;;  %5102 = vrcp.f32 %v1428_v56 }
 0x6e5   :  { %v5089_v35 = vpop.eup %5088 }
 0x6e6   :  { %v5091_v22 = vpop.eup %5090 }
 0x6e7   :  { %v5093_v55 = vpop.eup %5092 }
 0x6e8   :  { %v5095_v58 = vpop.eup %5094 }
 0x6e9   :  { %v5097_v59 = vpop.eup %5096 }
 0x6ea   :  { %v5099_v31 = vpop.eup %5098 }
 0x6eb   :  { %v5101_v43 = vpop.eup %5100 }
 0x6ec   :  { %v5103_v13 = vpop.eup %5102 }
 0x732   :  { %v1611_v25 = vpop.permute.xlu0 %1610 }
 0x733   :  { %v1632_v50 = vmul.f32 %v5091_v22, %v1611_v25 }
 0x735   :  { %v1607_v29 = vpop.permute.xlu1 %1606 }
 0x736   :  { %v1613_v28 = vpop.permute.xlu0 %1612  ;;  %v1630_v16 = vmul.f32 %v5093_v55, %v1607_v29 }
 0x737   :  { %v1633_v52 = vmul.f32 %v5095_v58, %v1613_v28 }
 0x739   :  { %v1609_v21 = vpop.permute.xlu1 %1608 }
 0x73a   :  { %v1615_v54 = vpop.permute.xlu0 %1614  ;;  %v1631_v17 = vmul.f32 %v5089_v35, %v1609_v21 }
 0x73b   :  { %v1634_v36 = vmul.f32 %v5097_v59, %v1615_v54 }
 0x73d   :  { %v1619_v9 = vpop.permute.xlu1 %1618 }
 0x73e   :  { %v1617_v53 = vpop.permute.xlu0 %1616  ;;  %v1636_v25 = vmul.f32 %v5103_v13, %v1619_v9 }
 0x73f   :  { %v1635_v38 = vmul.f32 %v5099_v31, %v1617_v53 }
 0x741   :  { %v1621_v37 = vpop.permute.xlu1 %1620 }
 0x742   :  { %v1661_v47 = vpop.permute.xlu0 %1660  ;;  %v1637_v20 = vmul.f32 %v5101_v43, %v1621_v37 }
 0x743   :  { %v6694_v11 = vmul.f32 %v1661_v47, %v1633_v52  ;;  %v1790_v52 = vld [vmem:[%s8062_s1 + $0x2b] sm:$0x1] }
 0x745   :  { %v1655_v5 = vpop.permute.xlu1 %1654  ;;  %v1698_v21 = vrot.slane %v6694_v11, 5 }
 0x746   :  { %v1663_v33 = vpop.permute.xlu0 %1662  ;;  %v6701_v32 = vmul.f32 %v1655_v5, %v1630_v16 }
 0x747   :  { %v6697_v24 = vmul.f32 %v1663_v33, %v1634_v36 }
 0x749   :  { %v1657_v44 = vpop.permute.xlu1 %1656  ;;  %v1700_v4 = vrot.slane %v6697_v24, 4 }
 0x74a   :  { %v6692_v8 = vmul.f32 %v1657_v44, %v1631_v17  ;;  %v1665_v34 = vpop.permute.xlu0 %1664  ;;  %v1786_v17 = vld [vmem:[%s8062_s1 + $0xb] sm:$0x1] }
 0x74b   :  { %v6703_v28 = vmul.f32 %v1665_v34, %v1635_v38 }
 0x74c   :  { %v1694_v2 = vrot.slane %v6692_v8, 7 }
 0x74d   :  { %v1659_v26 = vpop.permute.xlu1 %1658  ;;  %v1702_v56 = vrot.slane %v6703_v28, 3 }
 0x74e   :  { %v6699_v19 = vmul.f32 %v1659_v26, %v1632_v50  ;;  %v1669_v51 = vpop.permute.xlu0 %1668  ;;  %v1695_v6 = vsel %vm249_vm2, %v1694_v2, %v6701_v32  ;;  %v1791_v2 = vld [vmem:[%s8062_s1 + $0x33] sm:$0x1] }
 0x74f   :  { %v6709_v10 = vmul.f32 %v1669_v51, %v1637_v20  ;;  %v1792_v20 = vld [vmem:[%s8062_s1 + $0x3b] sm:$0x1] }
 0x750   :  { %v1696_v29 = vrot.slane %v6699_v19, 6 }
 0x751   :  { %v1667_v54 = vpop.permute.xlu1 %1666  ;;  %v1706_v47 = vrot.slane %v6709_v10, 1 }
 0x752   :  { %v1697_v12 = vsel %vm252_vm3, %v1696_v29, %v1695_v6  ;;  %v6713_v63 = vmul.f32 %v1667_v54, %v1636_v25 }
 0x753   :  { %v1699_v9 = vsel %vm255_vm4, %v1698_v21, %v1697_v12 }
 0x754   :  { %v1704_v53 = vrot.slane %v6713_v63, 2  ;;  %v1701_v37 = vsel %vm258_vm5, %v1700_v4, %v1699_v9 }
 0x755   :  { %v1703_v5 = vsel %vm261_vm6, %v1702_v56, %v1701_v37 }
 0x756   :  { %v1705_v33 = vsel %vm264_vm7, %v1704_v53, %v1703_v5 }
 0x757   :  { %v1707_v35 = vsel %vm267_vm8, %v1706_v47, %v1705_v33 }
 0x758   :  { %1708 = vrot.lane.b32.xlu1 %v1707_v35, %s5759_s0 }
 0x7ca   :  { %v1709_v22 = vpop.permute.xlu1 %1708 }
 0x7cb   :  { %4563 = vst.msk [vmem:[%s8065_s5 + $0x10] sm:$0xff] %vm29_vm0, %v1709_v22  ;;  %4697 = vmatmul.mubr.msk.f32.vlgmr.msra.gmra.mxu1 %vm29_vm0, %v1709_v22 }
 0x7cc   :  { %4711 = vmatpush3.msra.mxu1 %v6435_v1  ;;  %4718 = vmatprep.mubr.msk.f32.mxu1 %vm5756_vm1, %v5755_v0  ;;  %v1785_v1 = vld [vmem:[%s8062_s1 + $0x3] sm:$0x1] }
 0x7cd   :  { %4712 = vmatprep.subr.mxu1 %v5755_v0 }
 0x7ce   :  { %4713 = vmatpush3.msra.mxu1 %v6444_v27  ;;  %v1787_v27 = vld [vmem:[%s8062_s1 + $0x13] sm:$0x1] }
 0x7cf   :  { %4714 = vmatprep.subr.mxu1 %v5755_v0 }
 0x7d0   :  { %4715 = vmatpush3.msra.mxu1 %v6451_v39  ;;  %v1788_v39 = vld [vmem:[%s8062_s1 + $0x1b] sm:$0x1] }
 0x7d1   :  { %4716 = vmatprep.subr.mxu1 %v5755_v0 }
 0x7d2   :  { %4717 = vmatpush3.msra.mxu1 %v6458_v3  ;;  %v1789_v3 = vld [vmem:[%s8062_s1 + $0x23] sm:$0x1] }
 0x7d3   :  { %4732 = vmatprep.subr.mxu1 %v5755_v0 }
 0x88b   :  { %v1781_v55 = vpop.f32.mrf.mxu1 }
 0x88c   :  { %v1794_v44 = vrot.slane %v1781_v55, 1  ;;  %v1795_v58 = vrot.slane %v1781_v55, 2  ;;  %v1796_v34 = vrot.slane %v1781_v55, 3  ;;  %v1797_v59 = vrot.slane %v1781_v55, 4 }
 0x88d   :  { %v1798_v31 = vrot.slane %v1781_v55, 5  ;;  %v1799_v50 = vrot.slane %v1781_v55, 6  ;;  %v1800_v36 = vrot.slane %v1781_v55, 7  ;;  %v1809_v16 = vadd.f32 %v1785_v1, %v1781_v55  ;;  %v4698_v38 = vpop.f32.mrf.mxu1 }
 0x88e   :  { %v1810_v26 = vadd.f32 %v1794_v44, %v1786_v17  ;;  %v1811_v43 = vadd.f32 %v1795_v58, %v1787_v27  ;;  %v1812_v51 = vadd.f32 %v1796_v34, %v1788_v39  ;;  %v1813_v13 = vadd.f32 %v1797_v59, %v1789_v3 }
 0x88f   :  { %v6764_v25 = vadd.f32 %v6489_v23, %v1809_v16  ;;  %v1814_v29 = vadd.f32 %v1798_v31, %v1790_v52  ;;  %v1815_v4 = vadd.f32 %v1799_v50, %v1791_v2  ;;  %v1816_v12 = vadd.f32 %v1800_v36, %v1792_v20 }
 0x890   :  { %v6767_v21 = vadd.f32 %v6489_v23, %v1810_v26  ;;  %v6770_v6 = vadd.f32 %v6489_v23, %v1811_v43  ;;  %v6773_v54 = vadd.f32 %v6489_v23, %v1812_v51  ;;  %v6776_v56 = vadd.f32 %v6489_v23, %v1813_v13 }
 0x891   :  { %v1833_v9 = vand.u32 2147483647, %v6764_v25  ;;  %v6782_v47 = vadd.f32 %v6489_v23, %v1814_v29  ;;  %v6786_v35 = vadd.f32 %v6489_v23, %v1815_v4  ;;  %v6789_v17 = vadd.f32 %v6489_v23, %v1816_v12 }
 0x892   :  { %v1835_v53 = vand.u32 2147483647, %v6770_v6  ;;  %v1834_v37 = vand.u32 2147483647, %v6767_v21  ;;  %v1836_v33 = vand.u32 2147483647, %v6773_v54 }
 0x893   :  { %v1841_v5 = vsub.f32 0.0, %v1833_v9  ;;  %v1837_v39 = vand.u32 2147483647, %v6776_v56  ;;  %v1838_v59 = vand.u32 2147483647, %v6782_v47 }
 0x894   :  { %v1843_v22 = vsub.f32 0.0, %v1835_v53  ;;  %v1842_v1 = vsub.f32 0.0, %v1834_v37  ;;  %v1844_v27 = vsub.f32 0.0, %v1836_v33  ;;  %v1839_v52 = vand.u32 2147483647, %v6786_v35 }
 0x895   :  { %v1849_v55 = vmul.f32 1.442695, %v1841_v5  ;;  %v1845_v34 = vsub.f32 0.0, %v1837_v39  ;;  %v1846_v50 = vsub.f32 0.0, %v1838_v59  ;;  %v1840_v36 = vand.u32 2147483647, %v6789_v17 }
 0x896   :  { %v1853_v3 = vmul.f32 1.442695, %v1843_v22  ;;  %v1851_v44 = vmul.f32 1.442695, %v1842_v1  ;;  %v1855_v58 = vmul.f32 1.442695, %v1844_v27 }
 0x897   :  { %5104 = vpow2.f32 %v1849_v55  ;;  %v1857_v31 = vmul.f32 1.442695, %v1845_v34  ;;  %v1847_v23 = vsub.f32 0.0, %v1839_v52  ;;  %v1859_v16 = vmul.f32 1.442695, %v1846_v50 }
 0x898   :  { %5106 = vpow2.f32 %v1853_v3  ;;  %v1848_v38 = vsub.f32 0.0, %v1840_v36  ;;  %v1827_v59 = vmin.f32 %v6770_v6, 0.0 }
 0x899   :  { %5108 = vpow2.f32 %v1851_v44  ;;  %v1861_v2 = vmul.f32 1.442695, %v1847_v23  ;;  %v1825_v44 = vmin.f32 %v6764_v25, 0.0 }
 0x89a   :  { %5110 = vpow2.f32 %v1855_v58  ;;  %v1863_v26 = vmul.f32 1.442695, %v1848_v38 }
 0x89b   :  { %5112 = vpow2.f32 %v1857_v31 }
 0x89c   :  { %5114 = vpow2.f32 %v1859_v16 }
 0x89d   :  { %5116 = vpow2.f32 %v1861_v2 }
 0x89e   :  { %5118 = vpow2.f32 %v1863_v26  ;;  %v1826_v26 = vmin.f32 %v6767_v21, 0.0 }
 0x8a4   :  { %v5105_v43 = vpop.eup %5104 }
 0x8a5   :  { %v5107_v51 = vpop.eup %5106  ;;  %v1865_v13 = vadd.f32 1.0, %v5105_v43  ;;  %v1828_v43 = vmin.f32 %v6773_v54, 0.0 }
 0x8a6   :  { %v5109_v20 = vpop.eup %5108  ;;  %v1867_v29 = vadd.f32 1.0, %v5107_v51 }
 0x8a7   :  { %v5111_v4 = vpop.eup %5110  ;;  %5120 = vlog2.f32 %v1865_v13  ;;  %v1866_v12 = vadd.f32 1.0, %v5109_v20 }
 0x8a8   :  { %v5113_v9 = vpop.eup %5112  ;;  %5122 = vlog2.f32 %v1867_v29  ;;  %v1868_v53 = vadd.f32 1.0, %v5111_v4 }
 0x8a9   :  { %v5115_v37 = vpop.eup %5114  ;;  %5124 = vlog2.f32 %v1866_v12  ;;  %v1869_v5 = vadd.f32 1.0, %v5113_v9  ;;  %v1829_v9 = vmin.f32 %v6776_v56, 0.0 }
 0x8aa   :  { %v5117_v33 = vpop.eup %5116  ;;  %5126 = vlog2.f32 %v1868_v53  ;;  %v1870_v22 = vadd.f32 1.0, %v5115_v37  ;;  %v1830_v53 = vmin.f32 %v6782_v47, 0.0 }
 0x8ab   :  { %v5119_v1 = vpop.eup %5118  ;;  %5128 = vlog2.f32 %v1869_v5  ;;  %v1871_v55 = vadd.f32 1.0, %v5117_v33 }
 0x8ac   :  { %5130 = vlog2.f32 %v1870_v22  ;;  %v1872_v27 = vadd.f32 1.0, %v5119_v1  ;;  %v1831_v1 = vmin.f32 %v6786_v35, 0.0 }
 0x8ad   :  { %5132 = vlog2.f32 %v1871_v55  ;;  %v1832_v55 = vmin.f32 %v6789_v17, 0.0 }
 0x8ae   :  { %5134 = vlog2.f32 %v1872_v27 }
 0x8af   :  { %5136 = vtanh.f32 %v6767_v21 }
 0x8b0   :  { %5138 = vtanh.f32 %v6770_v6 }
 0x8b1   :  { %5140 = vtanh.f32 %v6764_v25 }
 0x8b2   :  { %5142 = vtanh.f32 %v6773_v54 }
 0x8b3   :  { %5144 = vtanh.f32 %v6776_v56 }
 0x8b4   :  { %v5121_v39 = vpop.eup %5120  ;;  %5146 = vtanh.f32 %v6782_v47 }
 0x8b5   :  { %v5123_v3 = vpop.eup %5122  ;;  %v1874_v58 = vmul.f32 0.6931472, %v5121_v39  ;;  %5148 = vtanh.f32 %v6786_v35 }
 0x8b6   :  { %v5125_v34 = vpop.eup %5124  ;;  %v1878_v52 = vmul.f32 0.6931472, %v5123_v3  ;;  %5150 = vtanh.f32 %v6789_v17 }
 0x8b7   :  { %v5127_v31 = vpop.eup %5126  ;;  %v1889_v50 = vsub.f32 %v1825_v44, %v1874_v58  ;;  %v1876_v36 = vmul.f32 0.6931472, %v5125_v34 }
 0x8b8   :  { %v5129_v23 = vpop.eup %5128  ;;  %v1891_v16 = vsub.f32 %v1827_v59, %v1878_v52  ;;  %v1880_v38 = vmul.f32 0.6931472, %v5127_v31 }
 0x8b9   :  { %v5131_v2 = vpop.eup %5130  ;;  %1905 = vrot.lane.b32.xlu0 %v1889_v50, %s5758_s28  ;;  %v1890_v51 = vsub.f32 %v1826_v26, %v1876_v36  ;;  %v1882_v13 = vmul.f32 0.6931472, %v5129_v23 }
 0x8ba   :  { %1909 = vrot.lane.b32.xlu1 %v1891_v16, %s5758_s28  ;;  %v5133_v20 = vpop.eup %5132  ;;  %v1892_v29 = vsub.f32 %v1828_v43, %v1880_v38  ;;  %v1884_v4 = vmul.f32 0.6931472, %v5131_v2 }
 0x8bb   :  { %v5135_v12 = vpop.eup %5134  ;;  %v1893_v37 = vsub.f32 %v1829_v9, %v1882_v13  ;;  %v1886_v5 = vmul.f32 0.6931472, %v5133_v20 }
 0x8bc   :  { %v1894_v33 = vsub.f32 %v1830_v53, %v1884_v4  ;;  %v1888_v22 = vmul.f32 0.6931472, %v5135_v12 }
 0x8bd   :  { %1907 = vrot.lane.b32.xlu0 %v1890_v51, %s5758_s28  ;;  %v1895_v27 = vsub.f32 %v1831_v1, %v1886_v5 }
 0x8be   :  { %1911 = vrot.lane.b32.xlu1 %v1892_v29, %s5758_s28  ;;  %v1896_v39 = vsub.f32 %v1832_v55, %v1888_v22 }
 0x8c1   :  { %1913 = vrot.lane.b32.xlu0 %v1893_v37, %s5758_s28 }
 0x8c2   :  { %1915 = vrot.lane.b32.xlu1 %v1894_v33, %s5758_s28 }
 0x8c5   :  { %1917 = vrot.lane.b32.xlu0 %v1895_v27, %s5758_s28 }
 0x8c6   :  { %1919 = vrot.lane.b32.xlu1 %v1896_v39, %s5758_s28 }
 0x8c9   :  { %2107 = vrot.lane.b32.xlu0 %v6692_v8, %s5759_s0  ;;  %v5137_v8 = vpop.eup %5136 }
 0x8ca   :  { %2109 = vrot.lane.b32.xlu1 %v6699_v19, %s5759_s0 }
 0x8cd   :  { %2105 = vrot.lane.b32.xlu0 %v6701_v32, %s5759_s0 }
 0x8ce   :  { %2111 = vrot.lane.b32.xlu1 %v6694_v11, %s5759_s0  ;;  %v5139_v11 = vpop.eup %5138 }
 0x8d1   :  { %2113 = vrot.lane.b32.xlu0 %v6697_v24, %s5759_s0  ;;  %v5141_v24 = vpop.eup %5140 }
 0x8d2   :  { %2115 = vrot.lane.b32.xlu1 %v6703_v28, %s5759_s0  ;;  %v5143_v19 = vpop.eup %5142 }
 0x8d3   :  { %v5145_v32 = vpop.eup %5144 }
 0x8d4   :  { %v5147_v28 = vpop.eup %5146 }
 0x8d5   :  { %2117 = vrot.lane.b32.xlu0 %v6713_v63, %s5759_s0 }
 0x8d6   :  { %2119 = vrot.lane.b32.xlu1 %v6709_v10, %s5759_s0  ;;  %v5149_v10 = vpop.eup %5148 }
 0x8d7   :  { %v5151_v63 = vpop.eup %5150 }
 0x8d9   :  { %2067 = vrot.lane.b32.xlu0 %v5137_v8, %s5757_s27 }
 0x8da   :  { %2069 = vrot.lane.b32.xlu1 %v5139_v11, %s5757_s27 }
 0x8dd   :  { %2065 = vrot.lane.b32.xlu0 %v5141_v24, %s5757_s27 }
 0x8de   :  { %2071 = vrot.lane.b32.xlu1 %v5143_v19, %s5757_s27 }
 0x8e1   :  { %2073 = vrot.lane.b32.xlu0 %v5145_v32, %s5757_s27 }
 0x8e2   :  { %2075 = vrot.lane.b32.xlu1 %v5147_v28, %s5757_s27 }
 0x8e5   :  { %2077 = vrot.lane.b32.xlu0 %v5149_v10, %s5757_s27 }
 0x8e6   :  { %2079 = vrot.lane.b32.xlu1 %v5151_v63, %s5757_s27 }
 0x92b   :  { %v1906_v3 = vpop.permute.xlu0 %1905 }
 0x92c   :  { %v1929_v44 = vadd.f32 %v1906_v3, %v6574_v60  ;;  %v1910_v58 = vpop.permute.xlu1 %1909 }
 0x92d   :  { %v1931_v34 = vadd.f32 %v1910_v58, %v6578_v42 }
 0x92e   :  { %v6846_v59 = vmax.f32 %v6764_v25, %v1929_v44 }
 0x92f   :  { %v1908_v52 = vpop.permute.xlu0 %1907  ;;  %v6850_v36 = vmax.f32 %v6770_v6, %v1931_v34 }
 0x930   :  { %v1930_v31 = vadd.f32 %v1908_v52, %v6588_v18  ;;  %v1912_v50 = vpop.permute.xlu1 %1911  ;;  %v1993_v16 = vsub.f32 %v6764_v25, %v6846_v59  ;;  %v2017_v42 = vsub.f32 %v1929_v44, %v6846_v59 }
 0x931   :  { %v1932_v23 = vadd.f32 %v1912_v50, %v6584_v41  ;;  %v2019_v43 = vsub.f32 %v1931_v34, %v6850_v36  ;;  %v1995_v29 = vsub.f32 %v6770_v6, %v6850_v36 }
 0x932   :  { %v6860_v2 = vmax.f32 %v6767_v21, %v1930_v31  ;;  %v2001_v13 = vmul.f32 1.442695, %v1993_v16 }
 0x933   :  { %v6856_v60 = vmax.f32 %v6773_v54, %v1932_v23  ;;  %v1914_v38 = vpop.permute.xlu0 %1913  ;;  %v2029_v33 = vmul.f32 1.442695, %v2019_v43  ;;  %v2005_v39 = vmul.f32 1.442695, %v1995_v29 }
 0x934   :  { %v1933_v18 = vadd.f32 %v1914_v38, %v6595_v46  ;;  %v1916_v26 = vpop.permute.xlu1 %1915  ;;  %v2025_v46 = vmul.f32 1.442695, %v2017_v42  ;;  %v1994_v53 = vsub.f32 %v6767_v21, %v6860_v2  ;;  %5152 = vpow2.f32 %v2001_v13 }
 0x935   :  { %v2020_v51 = vsub.f32 %v1932_v23, %v6856_v60  ;;  %v1934_v41 = vadd.f32 %v1916_v26, %v6600_v61  ;;  %v1996_v22 = vsub.f32 %v6773_v54, %v6856_v60  ;;  %v2018_v55 = vsub.f32 %v1930_v31, %v6860_v2 }
 0x936   :  { %v6867_v20 = vmax.f32 %v6776_v56, %v1933_v18 }
 0x937   :  { %v2031_v4 = vmul.f32 1.442695, %v2020_v51  ;;  %v6872_v12 = vmax.f32 %v6782_v47, %v1934_v41  ;;  %v1918_v9 = vpop.permute.xlu0 %1917  ;;  %v2007_v28 = vmul.f32 1.442695, %v1996_v22  ;;  %v2027_v10 = vmul.f32 1.442695, %v2018_v55 }
 0x938   :  { %v2021_v37 = vsub.f32 %v1933_v18, %v6867_v20  ;;  %v1935_v61 = vadd.f32 %v1918_v9, %v6619_v48  ;;  %v1920_v5 = vpop.permute.xlu1 %1919  ;;  %v2003_v48 = vmul.f32 1.442695, %v1994_v53  ;;  %v1997_v19 = vsub.f32 %v6776_v56, %v6867_v20 }
 0x939   :  { %v1936_v1 = vadd.f32 %v1920_v5, %v6612_v14  ;;  %5154 = vpow2.f32 %v2031_v4  ;;  %v2022_v8 = vsub.f32 %v1934_v41, %v6872_v12  ;;  %v1998_v31 = vsub.f32 %v6782_v47, %v6872_v12 }
 0x93a   :  { %v2033_v27 = vmul.f32 1.442695, %v2021_v37  ;;  %5156 = vpow2.f32 %v2025_v46  ;;  %v6891_v14 = vmax.f32 %v6786_v35, %v1935_v61  ;;  %v2009_v58 = vmul.f32 1.442695, %v1997_v19 }
 0x93b   :  { %v6884_v11 = vmax.f32 %v6789_v17, %v1936_v1  ;;  %v6886_v24 = vpop.permute.xlu0 %2107  ;;  %5158 = vpow2.f32 %v2029_v33  ;;  %v2035_v63 = vmul.f32 1.442695, %v2022_v8  ;;  %v2011_v26 = vmul.f32 1.442695, %v1998_v31 }
 0x93c   :  { %v6893_v32 = vpop.permute.xlu1 %2109  ;;  %5160 = vpow2.f32 %v2033_v27  ;;  %v2023_v34 = vsub.f32 %v1935_v61, %v6891_v14  ;;  %v1999_v50 = vsub.f32 %v6786_v35, %v6891_v14 }
 0x93d   :  { %5162 = vpow2.f32 %v2005_v39  ;;  %v2024_v3 = vsub.f32 %v1936_v1, %v6884_v11  ;;  %v2000_v42 = vsub.f32 %v6789_v17, %v6884_v11 }
 0x93e   :  { %5164 = vpow2.f32 %v2003_v48  ;;  %v2037_v38 = vmul.f32 1.442695, %v2023_v34  ;;  %v2013_v43 = vmul.f32 1.442695, %v1999_v50 }
 0x93f   :  { %v2106_v44 = vpop.permute.xlu0 %2105  ;;  %5166 = vpow2.f32 %v2007_v28  ;;  %v2039_v23 = vmul.f32 1.442695, %v2024_v3  ;;  %v2015_v29 = vmul.f32 1.442695, %v2000_v42 }
 0x940   :  { %v2112_v52 = vpop.permute.xlu1 %2111  ;;  %5168 = vpow2.f32 %v2027_v10 }
 0x941   :  { %5170 = vpow2.f32 %v2035_v63  ;;  %v5153_v51 = vpop.eup %5152 }
 0x942   :  { %5172 = vpow2.f32 %v2009_v58 }
 0x943   :  { %v2114_v16 = vpop.permute.xlu0 %2113  ;;  %5174 = vpow2.f32 %v2039_v23 }
 0x944   :  { %v2116_v18 = vpop.permute.xlu1 %2115  ;;  %5176 = vpow2.f32 %v2037_v38 }
 0x945   :  { %5178 = vpow2.f32 %v2011_v26 }
 0x946   :  { %v5155_v13 = vpop.eup %5154  ;;  %5180 = vpow2.f32 %v2013_v43 }
 0x947   :  { %v6903_v41 = vpop.permute.xlu0 %2117  ;;  %v5157_v9 = vpop.eup %5156  ;;  %v2132_v37 = vmul.f32 %v5155_v13, %v2112_v52  ;;  %5182 = vpow2.f32 %v2015_v29  ;;  %v2044_v50 = vmul.f32 %v5155_v13, %v6643_v40 }
 0x948   :  { %v2120_v4 = vpop.permute.xlu1 %2119  ;;  %v5159_v46 = vpop.eup %5158  ;;  %v2129_v1 = vmul.f32 %v5157_v9, %v2106_v44  ;;  %v2041_v3 = vmul.f32 %v5157_v9, %v6641_v49 }
 0x949   :  { %v5161_v53 = vpop.eup %5160  ;;  %v2043_v55 = vmul.f32 %v5159_v46, %v6634_v62 }
 0x94a   :  { %v5163_v5 = vpop.eup %5162  ;;  %v2133_v8 = vmul.f32 %v5161_v53, %v2114_v16  ;;  %v2137_v31 = vadd.f32 %v5153_v51, %v2129_v1  ;;  %v2045_v9 = vmul.f32 %v5161_v53, %v6654_v30 }
 0x94b   :  { %v2068_v61 = vpop.permute.xlu0 %2067  ;;  %v5165_v22 = vpop.eup %5164 }
 0x94c   :  { %v2070_v33 = vpop.permute.xlu1 %2069  ;;  %v5167_v39 = vpop.eup %5166  ;;  %v2090_v16 = vmul.f32 %v5165_v22, %v2068_v61 }
 0x94d   :  { %v2091_v27 = vmul.f32 %v5163_v5, %v2070_v33  ;;  %v5169_v48 = vpop.eup %5168  ;;  %v2140_v19 = vadd.f32 %v5167_v39, %v2132_v37 }
 0x94e   :  { %v5171_v63 = vpop.eup %5170  ;;  %v2130_v62 = vmul.f32 %v5169_v48, %v6886_v24  ;;  %v2131_v24 = vmul.f32 %v5159_v46, %v6893_v32 }
 0x94f   :  { %v6906_v28 = vadd.f32 %v2091_v27, %v2043_v55  ;;  %v2066_v10 = vpop.permute.xlu0 %2065  ;;  %v5173_v52 = vpop.eup %5172  ;;  %5184 = vrcp.f32 %v2140_v19  ;;  %v2134_v42 = vmul.f32 %v5171_v63, %v2116_v18 }
 0x950   :  { %v2089_v58 = vmul.f32 %v5153_v51, %v2066_v10  ;;  %v2072_v34 = vpop.permute.xlu1 %2071  ;;  %v2141_v23 = vadd.f32 %v5173_v52, %v2133_v8  ;;  %v5175_v43 = vpop.eup %5174  ;;  %v2042_v51 = vmul.f32 %v5169_v48, %v6652_v7  ;;  %5186 = vrcp.f32 %v2137_v31 }
 0x951   :  { %v2092_v44 = vmul.f32 %v5167_v39, %v2072_v34  ;;  %2157 = vrot.lane.b32.xlu1 %v6906_v28, %s5758_s28  ;;  %v5177_v13 = vpop.eup %5176  ;;  %v2138_v37 = vadd.f32 %v5165_v22, %v2130_v62  ;;  %v2136_v1 = vmul.f32 %v5175_v43, %v2120_v4  ;;  %v2139_v8 = vadd.f32 %v5163_v5, %v2131_v24 }
 0x952   :  { %v6913_v38 = vadd.f32 %v2089_v58, %v2041_v3  ;;  %v5179_v18 = vpop.eup %5178  ;;  %5188 = vrcp.f32 %v2141_v23  ;;  %v6924_v61 = vadd.f32 %v2090_v16, %v2042_v51  ;;  %v2047_v32 = vmul.f32 %v5177_v13, %v6663_v45 }
 0x953   :  { %v6915_v26 = vadd.f32 %v2092_v44, %v2044_v50  ;;  %v2074_v49 = vpop.permute.xlu0 %2073  ;;  %v5181_v7 = vpop.eup %5180  ;;  %v2142_v33 = vadd.f32 %v5179_v18, %v2134_v42  ;;  %v2046_v22 = vmul.f32 %v5171_v63, %v6665_v15  ;;  %5190 = vrcp.f32 %v2138_v37 }
 0x954   :  { %v2093_v29 = vmul.f32 %v5173_v52, %v2074_v49  ;;  %2153 = vrot.lane.b32.xlu0 %v6913_v38, %s5758_s28  ;;  %v2076_v40 = vpop.permute.xlu1 %2075  ;;  %v5183_v53 = vpop.eup %5182  ;;  %v2135_v4 = vmul.f32 %v5177_v13, %v6903_v41  ;;  %v2048_v3 = vmul.f32 %v5175_v43, %v6672_v57  ;;  %v4566_v44 = vmul.f32 -1.442695, %v6767_v21 }
 0x955   :  { %2159 = vrot.lane.b32.xlu1 %v6915_v26, %s5758_s28  ;;  %v2094_v27 = vmul.f32 %v5179_v18, %v2076_v40  ;;  %5192 = vrcp.f32 %v2142_v33  ;;  %v2144_v45 = vadd.f32 %v5183_v53, %v2136_v1  ;;  %v4567_v62 = vmul.f32 -1.442695, %v6770_v6 }
 0x956   :  { %v6926_v55 = vadd.f32 %v2093_v29, %v2045_v9  ;;  %5194 = vrcp.f32 %v2139_v8  ;;  %v2143_v15 = vadd.f32 %v5181_v7, %v2135_v4  ;;  %v4565_v23 = vmul.f32 -1.442695, %v6764_v25 }
 0x957   :  { %v2078_v39 = vpop.permute.xlu0 %2077  ;;  %v6937_v10 = vadd.f32 %v2094_v27, %v2046_v22  ;;  %5196 = vrcp.f32 %v2144_v45  ;;  %v4568_v16 = vmul.f32 -1.442695, %v6773_v54  ;;  %v4569_v42 = vmul.f32 -1.442695, %v6776_v56 }
 0x958   :  { %v2095_v46 = vmul.f32 %v5181_v7, %v2078_v39  ;;  %2155 = vrot.lane.b32.xlu0 %v6924_v61, %s5758_s28  ;;  %v2080_v30 = vpop.permute.xlu1 %2079  ;;  %5198 = vrcp.f32 %v2143_v15  ;;  %v4570_v49 = vmul.f32 -1.442695, %v6782_v47  ;;  %v4572_v43 = vmul.f32 -1.442695, %v6789_v17 }
 0x959   :  { %2161 = vrot.lane.b32.xlu1 %v6926_v55, %s5758_s28  ;;  %v2096_v19 = vmul.f32 %v5183_v53, %v2080_v30  ;;  %5200 = vpow2.f32 %v4566_v44  ;;  %v4571_v51 = vmul.f32 -1.442695, %v6786_v35 }
 0x95a   :  { %v6935_v48 = vadd.f32 %v2095_v46, %v2047_v32  ;;  %5202 = vpow2.f32 %v4567_v62 }
 0x95b   :  { %v6944_v5 = vadd.f32 %v2096_v19, %v2048_v3  ;;  %5204 = vpow2.f32 %v4565_v23 }
 0x95c   :  { %2165 = vrot.lane.b32.xlu0 %v6935_v48, %s5758_s28  ;;  %v5185_v41 = vpop.eup %5184  ;;  %5206 = vpow2.f32 %v4568_v16 }
 0x95d   :  { %2163 = vrot.lane.b32.xlu1 %v6937_v10, %s5758_s28  ;;  %v5187_v63 = vpop.eup %5186  ;;  %5208 = vpow2.f32 %v4569_v42 }
 0x95e   :  { %5210 = vpow2.f32 %v4570_v49 }
 0x95f   :  { %v5189_v57 = vpop.eup %5188  ;;  %5212 = vpow2.f32 %v4572_v43 }
 0x960   :  { %2167 = vrot.lane.b32.xlu0 %v6944_v5, %s5758_s28  ;;  %v5191_v58 = vpop.eup %5190  ;;  %5214 = vpow2.f32 %v4571_v51 }
 0x961   :  { %2207 = vrot.lane.b32.xlu1 %v5185_v41, %s5758_s28 }
 0x962   :  { %v5193_v34 = vpop.eup %5192 }
 0x963   :  { %v5195_v52 = vpop.eup %5194 }
 0x964   :  { %2201 = vrot.lane.b32.xlu0 %v5187_v63, %s5758_s28  ;;  %v5197_v31 = vpop.eup %5196 }
 0x965   :  { %2209 = vrot.lane.b32.xlu1 %v5189_v57, %s5758_s28  ;;  %v5199_v50 = vpop.eup %5198 }
 0x966   :  { %v5201_v25 = vpop.eup %5200 }
 0x967   :  { %v5203_v6 = vpop.eup %5202  ;;  %v1970_v13 = vadd.f32 1.0, %v5201_v25 }
 0x968   :  { %2203 = vrot.lane.b32.xlu0 %v5191_v58, %s5758_s28  ;;  %v5205_v54 = vpop.eup %5204  ;;  %v1971_v47 = vadd.f32 1.0, %v5203_v6 }
 0x969   :  { %2211 = vrot.lane.b32.xlu1 %v5193_v34, %s5758_s28  ;;  %v5207_v40 = vpop.eup %5206  ;;  %v1969_v18 = vadd.f32 1.0, %v5205_v54  ;;  %5216 = vrcp.f32 %v1970_v13 }
 0x96a   :  { %v5209_v24 = vpop.eup %5208  ;;  %v1972_v37 = vadd.f32 1.0, %v5207_v40  ;;  %5218 = vrcp.f32 %v1971_v47 }
 0x96b   :  { %v5211_v9 = vpop.eup %5210  ;;  %v1973_v35 = vadd.f32 1.0, %v5209_v24  ;;  %5220 = vrcp.f32 %v1969_v18 }
 0x96c   :  { %2205 = vrot.lane.b32.xlu0 %v5195_v52, %s5758_s28  ;;  %v5213_v7 = vpop.eup %5212  ;;  %v1974_v27 = vadd.f32 1.0, %v5211_v9  ;;  %5222 = vrcp.f32 %v1972_v37 }
 0x96d   :  { %2215 = vrot.lane.b32.xlu1 %v5197_v31, %s5758_s28  ;;  %v5215_v1 = vpop.eup %5214  ;;  %v1976_v32 = vadd.f32 1.0, %v5213_v7  ;;  %5224 = vrcp.f32 %v1973_v35 }
 0x96e   :  { %v1975_v46 = vadd.f32 1.0, %v5215_v1  ;;  %5226 = vrcp.f32 %v1974_v27 }
 0x96f   :  { %5228 = vrcp.f32 %v1976_v32 }
 0x970   :  { %2213 = vrot.lane.b32.xlu0 %v5199_v50, %s5758_s28  ;;  %5230 = vrcp.f32 %v1975_v46 }
 0x976   :  { %v5217_v19 = vpop.eup %5216 }
 0x977   :  { %v5219_v45 = vpop.eup %5218 }
 0x978   :  { %v5221_v15 = vpop.eup %5220 }
 0x979   :  { %v5223_v63 = vpop.eup %5222 }
 0x97a   :  { %v5225_v34 = vpop.eup %5224 }
 0x97b   :  { %v5227_v31 = vpop.eup %5226 }
 0x97c   :  { %v5229_v43 = vpop.eup %5228 }
 0x97d   :  { %v5231_v54 = vpop.eup %5230 }
 0x9c3   :  { %v2158_v21 = vpop.permute.xlu1 %2157 }
 0x9c4   :  { %v2179_v50 = vmul.f32 %v5219_v45, %v2158_v21  ;;  %v2332_v45 = vld [vmem:[%s8062_s1 + $0x4] sm:$0x1] }
 0x9c6   :  { %v2154_v29 = vpop.permute.xlu0 %2153 }
 0x9c7   :  { %v2160_v56 = vpop.permute.xlu1 %2159  ;;  %v2177_v62 = vmul.f32 %v5221_v15, %v2154_v29 }
 0x9c8   :  { %v2180_v52 = vmul.f32 %v5223_v63, %v2160_v56  ;;  %v2335_v63 = vld [vmem:[%s8062_s1 + $0x1c] sm:$0x1] }
 0x9ca   :  { %v2156_v17 = vpop.permute.xlu0 %2155 }
 0x9cb   :  { %v2162_v33 = vpop.permute.xlu1 %2161  ;;  %v2178_v3 = vmul.f32 %v5217_v19, %v2156_v17  ;;  %v7027_v19 = vld [vmem:[%s8060_s2] sm:$0xff] }
 0x9cc   :  { %v2181_v44 = vmul.f32 %v5225_v34, %v2162_v33 }
 0x9ce   :  { %v2166_v39 = vpop.permute.xlu0 %2165 }
 0x9cf   :  { %v2164_v30 = vpop.permute.xlu1 %2163  ;;  %v2183_v21 = vmul.f32 %v5231_v54, %v2166_v39 }
 0x9d0   :  { %v2182_v23 = vmul.f32 %v5227_v31, %v2164_v30 }
 0x9d2   :  { %v2168_v53 = vpop.permute.xlu0 %2167 }
 0x9d3   :  { %v2208_v8 = vpop.permute.xlu1 %2207  ;;  %v2184_v40 = vmul.f32 %v5229_v43, %v2168_v53 }
 0x9d4   :  { %v6966_v16 = vmul.f32 %v2208_v8, %v2180_v52  ;;  %v7004_v8 = vld [vmem:[%s8060_s2 + $0x18] sm:$0xff] }
 0x9d6   :  { %v2202_v22 = vpop.permute.xlu0 %2201  ;;  %v2245_v24 = vrot.slane %v6966_v16, 5 }
 0x9d7   :  { %v2210_v4 = vpop.permute.xlu1 %2209  ;;  %v6973_v13 = vmul.f32 %v2202_v22, %v2177_v62  ;;  %v7013_v22 = vld [vmem:[%s8060_s2 + $0x10] sm:$0xff] }
 0x9d8   :  { %v6969_v51 = vmul.f32 %v2210_v4, %v2181_v44  ;;  %v7020_v4 = vld [vmem:[%s8060_s2 + $0x8] sm:$0xff] }
 0x9d9   :  { %v2337_v44 = vld [vmem:[%s8062_s1 + $0x2c] sm:$0x1] }
 0x9da   :  { %v2204_v41 = vpop.permute.xlu0 %2203  ;;  %v2247_v37 = vrot.slane %v6969_v51, 4 }
 0x9db   :  { %v6964_v57 = vmul.f32 %v2204_v41, %v2178_v3  ;;  %v2212_v58 = vpop.permute.xlu1 %2211  ;;  %v2333_v3 = vld [vmem:[%s8062_s1 + $0xc] sm:$0x1]  ;;  %v2334_v41 = vld [vmem:[%s8062_s1 + $0x14] sm:$0x1] }
 0x9dc   :  { %v6975_v56 = vmul.f32 %v2212_v58, %v2182_v23  ;;  %v2336_v58 = vld [vmem:[%s8062_s1 + $0x24] sm:$0x1] }
 0x9dd   :  { %v2241_v42 = vrot.slane %v6964_v57, 7 }
 0x9de   :  { %v2206_v49 = vpop.permute.xlu0 %2205  ;;  %v2249_v35 = vrot.slane %v6975_v56, 3 }
 0x9df   :  { %v6971_v25 = vmul.f32 %v2206_v49, %v2179_v50  ;;  %v2216_v6 = vpop.permute.xlu1 %2215  ;;  %v2242_v47 = vsel %vm249_vm2, %v2241_v42, %v6973_v13 }
 0x9e0   :  { %v6981_v9 = vmul.f32 %v2216_v6, %v2184_v40  ;;  %v2338_v6 = vld [vmem:[%s8062_s1 + $0x34] sm:$0x1] }
 0x9e1   :  { %v2243_v29 = vrot.slane %v6971_v25, 6 }
 0x9e2   :  { %v2214_v18 = vpop.permute.xlu0 %2213  ;;  %v2253_v39 = vrot.slane %v6981_v9, 1 }
 0x9e3   :  { %v2244_v17 = vsel %vm252_vm3, %v2243_v29, %v2242_v47  ;;  %v6985_v7 = vmul.f32 %v2214_v18, %v2183_v21  ;;  %v7057_v47 = vld [vmem:[%s8063_s3] ss:$0 sm:$0xff] }
 0x9e4   :  { %v2246_v33 = vsel %vm255_vm4, %v2245_v24, %v2244_v17  ;;  %v2339_v24 = vld [vmem:[%s8062_s1 + $0x3c] sm:$0x1] }
 0x9e5   :  { %v2251_v1 = vrot.slane %v6985_v7, 2  ;;  %v2248_v27 = vsel %vm258_vm5, %v2247_v37, %v2246_v33 }
 0x9e6   :  { %v2250_v32 = vsel %vm261_vm6, %v2249_v35, %v2248_v27 }
 0x9e7   :  { %v2252_v46 = vsel %vm264_vm7, %v2251_v1, %v2250_v32 }
 0x9e8   :  { %v2254_v30 = vsel %vm267_vm8, %v2253_v39, %v2252_v46 }
 0x9e9   :  { %2255 = vrot.lane.b32.xlu0 %v2254_v30, %s5759_s0 }
 0xa5b   :  { %v2256_v53 = vpop.permute.xlu0 %2255 }
 0xa5c   :  { %4573 = vst.msk [vmem:[%s8065_s5 + $0x18] sm:$0xff] %vm29_vm0, %v2256_v53  ;;  %4708 = vmatmul.mubr.msk.f32.vlgmr.msra.gmra.mxu0 %vm29_vm0, %v2256_v53 }
 0xa5d   :  { %4722 = vmatpush3.msra.mxu0 %v7004_v8  ;;  %4729 = vmatprep.mubr.msk.f32.mxu0 %vm5756_vm1, %v5755_v0 }
 0xa5e   :  { %4723 = vmatprep.subr.mxu0 %v5755_v0 }
 0xa5f   :  { %4724 = vmatpush3.msra.mxu0 %v7013_v22 }
 0xa60   :  { %4725 = vmatprep.subr.mxu0 %v5755_v0 }
 0xa61   :  { %4726 = vmatpush3.msra.mxu0 %v7020_v4 }
 0xa62   :  { %4727 = vmatprep.subr.mxu0 %v5755_v0 }
 0xa63   :  { %4728 = vmatpush3.msra.mxu0 %v7027_v19 }
 0xb1c   :  { %v2328_v15 = vpop.f32.mrf.mxu0 }
 0xb1d   :  { %v2341_v34 = vrot.slane %v2328_v15, 1  ;;  %v2342_v52 = vrot.slane %v2328_v15, 2  ;;  %v2343_v31 = vrot.slane %v2328_v15, 3  ;;  %v2344_v50 = vrot.slane %v2328_v15, 4 }
 0xb1e   :  { %v2345_v62 = vrot.slane %v2328_v15, 5  ;;  %v2346_v23 = vrot.slane %v2328_v15, 6  ;;  %v2347_v42 = vrot.slane %v2328_v15, 7  ;;  %v2356_v49 = vadd.f32 %v2332_v45, %v2328_v15  ;;  %v4709_v43 = vpop.f32.mrf.mxu0 }
 0xb1f   :  { %v2357_v54 = vadd.f32 %v2341_v34, %v2333_v3  ;;  %v2358_v40 = vadd.f32 %v2342_v52, %v2334_v41  ;;  %v2359_v21 = vadd.f32 %v2343_v31, %v2335_v63  ;;  %v2360_v29 = vadd.f32 %v2344_v50, %v2336_v58 }
 0xb20   :  { %v7060_v18 = vadd.f32 %v7057_v47, %v2356_v49  ;;  %v2361_v37 = vadd.f32 %v2345_v62, %v2337_v44  ;;  %v2362_v1 = vadd.f32 %v2346_v23, %v2338_v6  ;;  %v2363_v27 = vadd.f32 %v2347_v42, %v2339_v24 }
 0xb21   :  { %v7063_v17 = vadd.f32 %v7057_v47, %v2357_v54  ;;  %v7066_v35 = vadd.f32 %v7057_v47, %v2358_v40  ;;  %v7069_v33 = vadd.f32 %v7057_v47, %v2359_v21  ;;  %v7072_v39 = vadd.f32 %v7057_v47, %v2360_v29 }
 0xb22   :  { %v2380_v32 = vand.u32 2147483647, %v7060_v18  ;;  %v7078_v53 = vadd.f32 %v7057_v47, %v2361_v37  ;;  %v7082_v15 = vadd.f32 %v7057_v47, %v2362_v1  ;;  %v7085_v58 = vadd.f32 %v7057_v47, %v2363_v27 }
 0xb23   :  { %v2382_v46 = vand.u32 2147483647, %v7066_v35  ;;  %v2381_v30 = vand.u32 2147483647, %v7063_v17  ;;  %v2383_v3 = vand.u32 2147483647, %v7069_v33 }
 0xb24   :  { %v2388_v45 = vsub.f32 0.0, %v2380_v32  ;;  %v2384_v31 = vand.u32 2147483647, %v7072_v39  ;;  %v2385_v42 = vand.u32 2147483647, %v7078_v53 }
 0xb25   :  { %v2390_v41 = vsub.f32 0.0, %v2382_v46  ;;  %v2389_v63 = vsub.f32 0.0, %v2381_v30  ;;  %v2391_v52 = vsub.f32 0.0, %v2383_v3  ;;  %v2386_v49 = vand.u32 2147483647, %v7082_v15 }
 0xb26   :  { %v2396_v34 = vmul.f32 1.442695, %v2388_v45  ;;  %v2392_v23 = vsub.f32 0.0, %v2384_v31  ;;  %v2393_v6 = vsub.f32 0.0, %v2385_v42  ;;  %v2387_v54 = vand.u32 2147483647, %v7085_v58 }
 0xb27   :  { %v2400_v50 = vmul.f32 1.442695, %v2390_v41  ;;  %v2398_v44 = vmul.f32 1.442695, %v2389_v63  ;;  %v2402_v62 = vmul.f32 1.442695, %v2391_v52 }
 0xb28   :  { %5232 = vpow2.f32 %v2396_v34  ;;  %v2404_v43 = vmul.f32 1.442695, %v2392_v23  ;;  %v2394_v40 = vsub.f32 0.0, %v2386_v49  ;;  %v2406_v21 = vmul.f32 1.442695, %v2393_v6 }
 0xb29   :  { %5234 = vpow2.f32 %v2400_v50  ;;  %v2395_v29 = vsub.f32 0.0, %v2387_v54 }
 0xb2a   :  { %5236 = vpow2.f32 %v2398_v44  ;;  %v2408_v24 = vmul.f32 1.442695, %v2394_v40  ;;  %v2374_v40 = vmin.f32 %v7066_v35, 0.0 }
 0xb2b   :  { %5238 = vpow2.f32 %v2402_v62  ;;  %v2410_v37 = vmul.f32 1.442695, %v2395_v29 }
 0xb2c   :  { %5240 = vpow2.f32 %v2404_v43  ;;  %v2372_v43 = vmin.f32 %v7060_v18, 0.0 }
 0xb2d   :  { %5242 = vpow2.f32 %v2406_v21 }
 0xb2e   :  { %5244 = vpow2.f32 %v2408_v24 }
 0xb2f   :  { %5246 = vpow2.f32 %v2410_v37 }
 0xb35   :  { %v5233_v1 = vpop.eup %5232 }
 0xb36   :  { %v5235_v27 = vpop.eup %5234  ;;  %v2412_v32 = vadd.f32 1.0, %v5233_v1 }
 0xb37   :  { %v5237_v46 = vpop.eup %5236  ;;  %v2414_v30 = vadd.f32 1.0, %v5235_v27 }
 0xb38   :  { %v5239_v45 = vpop.eup %5238  ;;  %5248 = vlog2.f32 %v2412_v32  ;;  %v2413_v3 = vadd.f32 1.0, %v5237_v46 }
 0xb39   :  { %v5241_v41 = vpop.eup %5240  ;;  %5250 = vlog2.f32 %v2414_v30  ;;  %v2415_v63 = vadd.f32 1.0, %v5239_v45  ;;  %v2373_v30 = vmin.f32 %v7063_v17, 0.0  ;;  %v2375_v45 = vmin.f32 %v7069_v33, 0.0 }
 0xb3a   :  { %v5243_v34 = vpop.eup %5242  ;;  %5252 = vlog2.f32 %v2413_v3  ;;  %v2416_v52 = vadd.f32 1.0, %v5241_v41 }
 0xb3b   :  { %v5245_v31 = vpop.eup %5244  ;;  %5254 = vlog2.f32 %v2415_v63  ;;  %v2417_v50 = vadd.f32 1.0, %v5243_v34 }
 0xb3c   :  { %v5247_v44 = vpop.eup %5246  ;;  %5256 = vlog2.f32 %v2416_v52  ;;  %v2418_v62 = vadd.f32 1.0, %v5245_v31 }
 0xb3d   :  { %5258 = vlog2.f32 %v2417_v50  ;;  %v2419_v23 = vadd.f32 1.0, %v5247_v44  ;;  %v2376_v50 = vmin.f32 %v7072_v39, 0.0  ;;  %v2377_v44 = vmin.f32 %v7078_v53, 0.0 }
 0xb3e   :  { %5260 = vlog2.f32 %v2418_v62 }
 0xb3f   :  { %5262 = vlog2.f32 %v2419_v23 }
 0xb40   :  { %5264 = vtanh.f32 %v7063_v17 }
 0xb41   :  { %5266 = vtanh.f32 %v7066_v35 }
 0xb42   :  { %5268 = vtanh.f32 %v7060_v18 }
 0xb43   :  { %5270 = vtanh.f32 %v7069_v33 }
 0xb44   :  { %5272 = vtanh.f32 %v7072_v39 }
 0xb45   :  { %v5249_v42 = vpop.eup %5248  ;;  %5274 = vtanh.f32 %v7078_v53 }
 0xb46   :  { %v5251_v49 = vpop.eup %5250  ;;  %v2421_v6 = vmul.f32 0.6931472, %v5249_v42  ;;  %5276 = vtanh.f32 %v7082_v15 }
 0xb47   :  { %v5253_v54 = vpop.eup %5252  ;;  %v2425_v21 = vmul.f32 0.6931472, %v5251_v49  ;;  %5278 = vtanh.f32 %v7085_v58 }
 0xb48   :  { %v5255_v29 = vpop.eup %5254  ;;  %v2436_v24 = vsub.f32 %v2372_v43, %v2421_v6  ;;  %v2423_v37 = vmul.f32 0.6931472, %v5253_v54  ;;  %v2378_v43 = vmin.f32 %v7082_v15, 0.0  ;;  %v2379_v6 = vmin.f32 %v7085_v58, 0.0 }
 0xb49   :  { %v5257_v1 = vpop.eup %5256  ;;  %v2438_v27 = vsub.f32 %v2374_v40, %v2425_v21  ;;  %v2427_v32 = vmul.f32 0.6931472, %v5255_v29 }
 0xb4a   :  { %v5259_v46 = vpop.eup %5258  ;;  %2452 = vrot.lane.b32.xlu1 %v2436_v24, %s5758_s28  ;;  %v2437_v3 = vsub.f32 %v2373_v30, %v2423_v37  ;;  %v2429_v41 = vmul.f32 0.6931472, %v5257_v1 }
 0xb4b   :  { %2456 = vrot.lane.b32.xlu0 %v2438_v27, %s5758_s28  ;;  %v5261_v63 = vpop.eup %5260  ;;  %v2439_v34 = vsub.f32 %v2375_v45, %v2427_v32  ;;  %v2431_v52 = vmul.f32 0.6931472, %v5259_v46 }
 0xb4c   :  { %v5263_v31 = vpop.eup %5262  ;;  %v2440_v62 = vsub.f32 %v2376_v50, %v2429_v41  ;;  %v2433_v23 = vmul.f32 0.6931472, %v5261_v63 }
 0xb4d   :  { %v2441_v42 = vsub.f32 %v2377_v44, %v2431_v52  ;;  %v2435_v49 = vmul.f32 0.6931472, %v5263_v31 }
 0xb4e   :  { %2454 = vrot.lane.b32.xlu1 %v2437_v3, %s5758_s28  ;;  %v2442_v54 = vsub.f32 %v2378_v43, %v2433_v23 }
 0xb4f   :  { %2458 = vrot.lane.b32.xlu0 %v2439_v34, %s5758_s28  ;;  %v2443_v40 = vsub.f32 %v2379_v6, %v2435_v49 }
 0xb52   :  { %2460 = vrot.lane.b32.xlu1 %v2440_v62, %s5758_s28 }
 0xb53   :  { %2462 = vrot.lane.b32.xlu0 %v2441_v42, %s5758_s28 }
 0xb56   :  { %2464 = vrot.lane.b32.xlu1 %v2442_v54, %s5758_s28 }
 0xb57   :  { %2466 = vrot.lane.b32.xlu0 %v2443_v40, %s5758_s28 }
 0xb5a   :  { %2654 = vrot.lane.b32.xlu1 %v6964_v57, %s5759_s0  ;;  %v5265_v57 = vpop.eup %5264 }
 0xb5b   :  { %2656 = vrot.lane.b32.xlu0 %v6971_v25, %s5759_s0 }
 0xb5e   :  { %2652 = vrot.lane.b32.xlu1 %v6973_v13, %s5759_s0 }
 0xb5f   :  { %2658 = vrot.lane.b32.xlu0 %v6966_v16, %s5759_s0  ;;  %v5267_v16 = vpop.eup %5266 }
 0xb62   :  { %2660 = vrot.lane.b32.xlu1 %v6969_v51, %s5759_s0  ;;  %v5269_v51 = vpop.eup %5268 }
 0xb63   :  { %2662 = vrot.lane.b32.xlu0 %v6975_v56, %s5759_s0  ;;  %v5271_v25 = vpop.eup %5270 }
 0xb64   :  { %v5273_v13 = vpop.eup %5272 }
 0xb65   :  { %v5275_v56 = vpop.eup %5274 }
 0xb66   :  { %2664 = vrot.lane.b32.xlu1 %v6985_v7, %s5759_s0 }
 0xb67   :  { %2666 = vrot.lane.b32.xlu0 %v6981_v9, %s5759_s0  ;;  %v5277_v9 = vpop.eup %5276 }
 0xb68   :  { %v5279_v7 = vpop.eup %5278 }
 0xb6a   :  { %2614 = vrot.lane.b32.xlu1 %v5265_v57, %s5757_s27 }
 0xb6b   :  { %2616 = vrot.lane.b32.xlu0 %v5267_v16, %s5757_s27 }
 0xb6e   :  { %2612 = vrot.lane.b32.xlu1 %v5269_v51, %s5757_s27 }
 0xb6f   :  { %2618 = vrot.lane.b32.xlu0 %v5271_v25, %s5757_s27 }
 0xb72   :  { %2620 = vrot.lane.b32.xlu1 %v5273_v13, %s5757_s27 }
 0xb73   :  { %2622 = vrot.lane.b32.xlu0 %v5275_v56, %s5757_s27 }
 0xb76   :  { %2624 = vrot.lane.b32.xlu1 %v5277_v9, %s5757_s27 }
 0xb77   :  { %2626 = vrot.lane.b32.xlu0 %v5279_v7, %s5757_s27 }
 0xbbc   :  { %v2453_v21 = vpop.permute.xlu1 %2452 }
 0xbbd   :  { %v2476_v29 = vadd.f32 %v2453_v21, %v6846_v59  ;;  %v2457_v24 = vpop.permute.xlu0 %2456 }
 0xbbe   :  { %v2478_v37 = vadd.f32 %v2457_v24, %v6850_v36 }
 0xbbf   :  { %v7142_v1 = vmax.f32 %v7060_v18, %v2476_v29 }
 0xbc0   :  { %v2455_v27 = vpop.permute.xlu1 %2454  ;;  %v7146_v30 = vmax.f32 %v7066_v35, %v2478_v37 }
 0xbc1   :  { %v2477_v32 = vadd.f32 %v2455_v27, %v6860_v2  ;;  %v2459_v46 = vpop.permute.xlu0 %2458  ;;  %v2540_v3 = vsub.f32 %v7060_v18, %v7142_v1  ;;  %v2564_v36 = vsub.f32 %v2476_v29, %v7142_v1 }
 0xbc2   :  { %v2479_v45 = vadd.f32 %v2459_v46, %v6856_v60  ;;  %v2566_v52 = vsub.f32 %v2478_v37, %v7146_v30  ;;  %v2542_v62 = vsub.f32 %v7066_v35, %v7146_v30 }
 0xbc3   :  { %v7156_v63 = vmax.f32 %v7063_v17, %v2477_v32  ;;  %v2548_v50 = vmul.f32 1.442695, %v2540_v3 }
 0xbc4   :  { %v7152_v59 = vmax.f32 %v7069_v33, %v2479_v45  ;;  %v2461_v41 = vpop.permute.xlu1 %2460  ;;  %v2576_v40 = vmul.f32 1.442695, %v2566_v52  ;;  %v2552_v13 = vmul.f32 1.442695, %v2542_v62 }
 0xbc5   :  { %v2480_v2 = vadd.f32 %v2461_v41, %v6867_v20  ;;  %v2463_v34 = vpop.permute.xlu0 %2462  ;;  %v2572_v20 = vmul.f32 1.442695, %v2564_v36  ;;  %v2541_v43 = vsub.f32 %v7063_v17, %v7156_v63  ;;  %5280 = vpow2.f32 %v2548_v50 }
 0xbc6   :  { %v2567_v31 = vsub.f32 %v2479_v45, %v7152_v59  ;;  %v2481_v60 = vadd.f32 %v2463_v34, %v6872_v12  ;;  %v2543_v57 = vsub.f32 %v7069_v33, %v7152_v59  ;;  %v2565_v51 = vsub.f32 %v2477_v32, %v7156_v63 }
 0xbc7   :  { %v7163_v44 = vmax.f32 %v7072_v39, %v2480_v2 }
 0xbc8   :  { %v2578_v23 = vmul.f32 1.442695, %v2567_v31  ;;  %v7168_v42 = vmax.f32 %v7078_v53, %v2481_v60  ;;  %v2465_v49 = vpop.permute.xlu1 %2464  ;;  %v2554_v24 = vmul.f32 1.442695, %v2543_v57  ;;  %v2574_v37 = vmul.f32 1.442695, %v2565_v51 }
 0xbc9   :  { %v2568_v6 = vsub.f32 %v2480_v2, %v7163_v44  ;;  %v2482_v12 = vadd.f32 %v2465_v49, %v6891_v14  ;;  %v2467_v54 = vpop.permute.xlu0 %2466  ;;  %v2550_v14 = vmul.f32 1.442695, %v2541_v43  ;;  %v2544_v21 = vsub.f32 %v7072_v39, %v7163_v44 }
 0xbca   :  { %v2483_v16 = vadd.f32 %v2467_v54, %v6884_v11  ;;  %5282 = vpow2.f32 %v2578_v23  ;;  %v2569_v56 = vsub.f32 %v2481_v60, %v7168_v42  ;;  %v2545_v36 = vsub.f32 %v7078_v53, %v7168_v42 }
 0xbcb   :  { %v2580_v25 = vmul.f32 1.442695, %v2568_v6  ;;  %5284 = vpow2.f32 %v2572_v20  ;;  %v7187_v11 = vmax.f32 %v7082_v15, %v2482_v12  ;;  %v2556_v45 = vmul.f32 1.442695, %v2544_v21 }
 0xbcc   :  { %v7180_v9 = vmax.f32 %v7085_v58, %v2483_v16  ;;  %v7182_v7 = vpop.permute.xlu1 %2654  ;;  %5286 = vpow2.f32 %v2576_v40  ;;  %v2582_v27 = vmul.f32 1.442695, %v2569_v56  ;;  %v2558_v62 = vmul.f32 1.442695, %v2545_v36 }
 0xbcd   :  { %v7189_v29 = vpop.permute.xlu0 %2656  ;;  %5288 = vpow2.f32 %v2580_v25  ;;  %v2570_v3 = vsub.f32 %v2482_v12, %v7187_v11  ;;  %v2546_v2 = vsub.f32 %v7082_v15, %v7187_v11 }
 0xbce   :  { %5290 = vpow2.f32 %v2552_v13  ;;  %v2571_v32 = vsub.f32 %v2483_v16, %v7180_v9  ;;  %v2547_v60 = vsub.f32 %v7085_v58, %v7180_v9 }
 0xbcf   :  { %5292 = vpow2.f32 %v2550_v14  ;;  %v2584_v31 = vmul.f32 1.442695, %v2570_v3  ;;  %v2560_v23 = vmul.f32 1.442695, %v2546_v2 }
 0xbd0   :  { %v2653_v46 = vpop.permute.xlu1 %2652  ;;  %5294 = vpow2.f32 %v2554_v24  ;;  %v2586_v34 = vmul.f32 1.442695, %v2571_v32  ;;  %v2562_v6 = vmul.f32 1.442695, %v2547_v60 }
 0xbd1   :  { %v2659_v41 = vpop.permute.xlu0 %2658  ;;  %5296 = vpow2.f32 %v2574_v37 }
 0xbd2   :  { %5298 = vpow2.f32 %v2582_v27  ;;  %v5281_v49 = vpop.eup %5280 }
 0xbd3   :  { %5300 = vpow2.f32 %v2556_v45 }
 0xbd4   :  { %v2661_v52 = vpop.permute.xlu1 %2660  ;;  %5302 = vpow2.f32 %v2586_v34 }
 0xbd5   :  { %v2663_v50 = vpop.permute.xlu0 %2662  ;;  %5304 = vpow2.f32 %v2584_v31 }
 0xbd6   :  { %5306 = vpow2.f32 %v2558_v62 }
 0xbd7   :  { %v5283_v43 = vpop.eup %5282  ;;  %5308 = vpow2.f32 %v2560_v23 }
 0xbd8   :  { %v7199_v20 = vpop.permute.xlu1 %2664  ;;  %v5285_v54 = vpop.eup %5284  ;;  %v2679_v16 = vmul.f32 %v5283_v43, %v2659_v41  ;;  %5310 = vpow2.f32 %v2562_v6  ;;  %v2591_v23 = vmul.f32 %v5283_v43, %v6915_v26 }
 0xbd9   :  { %v2667_v12 = vpop.permute.xlu0 %2666  ;;  %v5287_v40 = vpop.eup %5286  ;;  %v2676_v14 = vmul.f32 %v5285_v54, %v2653_v46  ;;  %v2588_v34 = vmul.f32 %v5285_v54, %v6913_v38 }
 0xbda   :  { %v5289_v57 = vpop.eup %5288  ;;  %v2590_v21 = vmul.f32 %v5287_v40, %v6906_v28 }
 0xbdb   :  { %v5291_v25 = vpop.eup %5290  ;;  %v2680_v27 = vmul.f32 %v5289_v57, %v2661_v52  ;;  %v2684_v62 = vadd.f32 %v5281_v49, %v2676_v14 }
 0xbdc   :  { %v2615_v51 = vpop.permute.xlu1 %2614  ;;  %v5293_v56 = vpop.eup %5292 }
 0xbdd   :  { %v2617_v13 = vpop.permute.xlu0 %2616  ;;  %v5295_v37 = vpop.eup %5294  ;;  %v2637_v6 = vmul.f32 %v5293_v56, %v2615_v51  ;;  %v2592_v51 = vmul.f32 %v5289_v57, %v6926_v55 }
 0xbde   :  { %v2638_v24 = vmul.f32 %v5291_v25, %v2617_v13  ;;  %v5297_v32 = vpop.eup %5296  ;;  %v2687_v45 = vadd.f32 %v5295_v37, %v2679_v16 }
 0xbdf   :  { %v5299_v2 = vpop.eup %5298  ;;  %v2677_v28 = vmul.f32 %v5297_v32, %v7182_v7  ;;  %v2678_v7 = vmul.f32 %v5287_v40, %v7189_v29 }
 0xbe0   :  { %v7202_v3 = vadd.f32 %v2638_v24, %v2590_v21  ;;  %v2613_v36 = vpop.permute.xlu1 %2612  ;;  %v5301_v60 = vpop.eup %5300  ;;  %5312 = vrcp.f32 %v2687_v45  ;;  %v2681_v13 = vmul.f32 %v5299_v2, %v2663_v50 }
 0xbe1   :  { %v2636_v41 = vmul.f32 %v5281_v49, %v2613_v36  ;;  %v2619_v31 = vpop.permute.xlu0 %2618  ;;  %v2688_v52 = vadd.f32 %v5301_v60, %v2680_v27  ;;  %v5303_v54 = vpop.eup %5302  ;;  %v2589_v49 = vmul.f32 %v5297_v32, %v6924_v61  ;;  %5314 = vrcp.f32 %v2684_v62 }
 0xbe2   :  { %v2639_v46 = vmul.f32 %v5295_v37, %v2619_v31  ;;  %2704 = vrot.lane.b32.xlu0 %v7202_v3, %s5758_s28  ;;  %v5305_v43 = vpop.eup %5304  ;;  %v2685_v24 = vadd.f32 %v5293_v56, %v2677_v28  ;;  %v2683_v32 = vmul.f32 %v5303_v54, %v2667_v12  ;;  %v2593_v56 = vmul.f32 %v5299_v2, %v6937_v10 }
 0xbe3   :  { %v7209_v16 = vadd.f32 %v2636_v41, %v2588_v34  ;;  %v5307_v50 = vpop.eup %5306  ;;  %5316 = vrcp.f32 %v2688_v52  ;;  %v7220_v37 = vadd.f32 %v2637_v6, %v2589_v49  ;;  %v2594_v29 = vmul.f32 %v5305_v43, %v6935_v48 }
 0xbe4   :  { %v7211_v21 = vadd.f32 %v2639_v46, %v2591_v23  ;;  %v2621_v38 = vpop.permute.xlu1 %2620  ;;  %v5309_v61 = vpop.eup %5308  ;;  %v2689_v27 = vadd.f32 %v5307_v50, %v2681_v13  ;;  %v2686_v41 = vadd.f32 %v5291_v25, %v2678_v7  ;;  %5318 = vrcp.f32 %v2685_v24 }
 0xbe5   :  { %v2640_v14 = vmul.f32 %v5301_v60, %v2621_v38  ;;  %2700 = vrot.lane.b32.xlu1 %v7209_v16, %s5758_s28  ;;  %v2623_v26 = vpop.permute.xlu0 %2622  ;;  %v5311_v57 = vpop.eup %5310  ;;  %v2682_v12 = vmul.f32 %v5305_v43, %v7199_v20  ;;  %v2595_v23 = vmul.f32 %v5303_v54, %v6944_v5  ;;  %v4576_v38 = vmul.f32 -1.442695, %v7063_v17 }
 0xbe6   :  { %2706 = vrot.lane.b32.xlu0 %v7211_v21, %s5758_s28  ;;  %v2641_v36 = vmul.f32 %v5307_v50, %v2623_v26  ;;  %5320 = vrcp.f32 %v2689_v27  ;;  %v2691_v48 = vadd.f32 %v5311_v57, %v2683_v32  ;;  %v4577_v54 = vmul.f32 -1.442695, %v7066_v35 }
 0xbe7   :  { %v7222_v45 = vadd.f32 %v2640_v14, %v2592_v51  ;;  %5322 = vrcp.f32 %v2686_v41  ;;  %v2690_v10 = vadd.f32 %v5309_v61, %v2682_v12  ;;  %v4575_v49 = vmul.f32 -1.442695, %v7060_v18 }
 0xbe8   :  { %v2625_v34 = vpop.permute.xlu1 %2624  ;;  %v7233_v62 = vadd.f32 %v2641_v36, %v2593_v56  ;;  %5324 = vrcp.f32 %v2691_v48  ;;  %v4578_v14 = vmul.f32 -1.442695, %v7069_v33  ;;  %v4579_v26 = vmul.f32 -1.442695, %v7072_v39 }
 0xbe9   :  { %v2642_v40 = vmul.f32 %v5309_v61, %v2625_v34  ;;  %2702 = vrot.lane.b32.xlu1 %v7220_v37, %s5758_s28  ;;  %v2627_v55 = vpop.permute.xlu0 %2626  ;;  %5326 = vrcp.f32 %v2690_v10  ;;  %v4580_v43 = vmul.f32 -1.442695, %v7078_v53  ;;  %v4582_v7 = vmul.f32 -1.442695, %v7085_v58 }
 0xbea   :  { %2708 = vrot.lane.b32.xlu0 %v7222_v45, %s5758_s28  ;;  %v2643_v60 = vmul.f32 %v5311_v57, %v2627_v55  ;;  %5328 = vpow2.f32 %v4576_v38  ;;  %v4581_v51 = vmul.f32 -1.442695, %v7082_v15 }
 0xbeb   :  { %v7231_v31 = vadd.f32 %v2642_v40, %v2594_v29  ;;  %5330 = vpow2.f32 %v4577_v54 }
 0xbec   :  { %v7240_v25 = vadd.f32 %v2643_v60, %v2595_v23  ;;  %5332 = vpow2.f32 %v4575_v49 }
 0xbed   :  { %2712 = vrot.lane.b32.xlu1 %v7231_v31, %s5758_s28  ;;  %v5313_v20 = vpop.eup %5312  ;;  %5334 = vpow2.f32 %v4578_v14 }
 0xbee   :  { %2710 = vrot.lane.b32.xlu0 %v7233_v62, %s5758_s28  ;;  %v5315_v2 = vpop.eup %5314  ;;  %5336 = vpow2.f32 %v4579_v26 }
 0xbef   :  { %5338 = vpow2.f32 %v4580_v43 }
 0xbf0   :  { %v5317_v5 = vpop.eup %5316  ;;  %5340 = vpow2.f32 %v4582_v7 }
 0xbf1   :  { %2714 = vrot.lane.b32.xlu1 %v7240_v25, %s5758_s28  ;;  %v5319_v46 = vpop.eup %5318  ;;  %5342 = vpow2.f32 %v4581_v51 }
 0xbf2   :  { %2754 = vrot.lane.b32.xlu0 %v5313_v20, %s5758_s28 }
 0xbf3   :  { %v5321_v28 = vpop.eup %5320 }
 0xbf4   :  { %v5323_v52 = vpop.eup %5322 }
 0xbf5   :  { %2748 = vrot.lane.b32.xlu1 %v5315_v2, %s5758_s28  ;;  %v5325_v6 = vpop.eup %5324 }
 0xbf6   :  { %2756 = vrot.lane.b32.xlu0 %v5317_v5, %s5758_s28  ;;  %v5327_v13 = vpop.eup %5326 }
 0xbf7   :  { %v5329_v18 = vpop.eup %5328 }
 0xbf8   :  { %v5331_v35 = vpop.eup %5330  ;;  %v2517_v61 = vadd.f32 1.0, %v5329_v18 }
 0xbf9   :  { %2750 = vrot.lane.b32.xlu1 %v5319_v46, %s5758_s28  ;;  %v5333_v33 = vpop.eup %5332  ;;  %v2518_v53 = vadd.f32 1.0, %v5331_v35 }
 0xbfa   :  { %2758 = vrot.lane.b32.xlu0 %v5321_v28, %s5758_s28  ;;  %v5335_v24 = vpop.eup %5334  ;;  %v2516_v36 = vadd.f32 1.0, %v5333_v33  ;;  %5344 = vrcp.f32 %v2517_v61 }
 0xbfb   :  { %v5337_v27 = vpop.eup %5336  ;;  %v2519_v34 = vadd.f32 1.0, %v5335_v24  ;;  %5346 = vrcp.f32 %v2518_v53 }
 0xbfc   :  { %v5339_v32 = vpop.eup %5338  ;;  %v2520_v15 = vadd.f32 1.0, %v5337_v27  ;;  %5348 = vrcp.f32 %v2516_v36 }
 0xbfd   :  { %2752 = vrot.lane.b32.xlu1 %v5323_v52, %s5758_s28  ;;  %v5341_v29 = vpop.eup %5340  ;;  %v2521_v57 = vadd.f32 1.0, %v5339_v32  ;;  %5350 = vrcp.f32 %v2519_v34 }
 0xbfe   :  { %2762 = vrot.lane.b32.xlu0 %v5325_v6, %s5758_s28  ;;  %v5343_v55 = vpop.eup %5342  ;;  %v2523_v56 = vadd.f32 1.0, %v5341_v29  ;;  %5352 = vrcp.f32 %v2520_v15 }
 0xbff   :  { %v2522_v12 = vadd.f32 1.0, %v5343_v55  ;;  %5354 = vrcp.f32 %v2521_v57 }
 0xc00   :  { %5356 = vrcp.f32 %v2523_v56 }
 0xc01   :  { %2760 = vrot.lane.b32.xlu1 %v5327_v13, %s5758_s28  ;;  %5358 = vrcp.f32 %v2522_v12 }
 0xc07   :  { %v5345_v2 = vpop.eup %5344 }
 0xc08   :  { %v5347_v5 = vpop.eup %5346 }
 0xc09   :  { %v5349_v28 = vpop.eup %5348 }
 0xc0a   :  { %v5351_v6 = vpop.eup %5350 }
 0xc0b   :  { %v5353_v54 = vpop.eup %5352 }
 0xc0c   :  { %v5355_v14 = vpop.eup %5354 }
 0xc0d   :  { %v5357_v24 = vpop.eup %5356 }
 0xc0e   :  { %v5359_v32 = vpop.eup %5358 }
 0xc54   :  { %v2705_v17 = vpop.permute.xlu0 %2704 }
 0xc55   :  { %v2726_v26 = vmul.f32 %v5347_v5, %v2705_v17 }
 0xc57   :  { %v2701_v50 = vpop.permute.xlu1 %2700 }
 0xc58   :  { %v2707_v39 = vpop.permute.xlu0 %2706  ;;  %v2724_v7 = vmul.f32 %v5349_v28, %v2701_v50 }
 0xc59   :  { %v2727_v49 = vmul.f32 %v5351_v6, %v2707_v39 }
 0xc5b   :  { %v2703_v58 = vpop.permute.xlu1 %2702 }
 0xc5c   :  { %v2709_v40 = vpop.permute.xlu0 %2708  ;;  %v2725_v46 = vmul.f32 %v5345_v2, %v2703_v58 }
 0xc5d   :  { %v2728_v43 = vmul.f32 %v5353_v54, %v2709_v40  ;;  %v2884_v54 = vld [vmem:[%s8062_s1 + $0x2d] sm:$0x1] }
 0xc5f   :  { %v2713_v41 = vpop.permute.xlu1 %2712 }
 0xc60   :  { %v2711_v60 = vpop.permute.xlu0 %2710  ;;  %v2730_v17 = vmul.f32 %v5359_v32, %v2713_v41  ;;  %v2886_v32 = vld [vmem:[%s8062_s1 + $0x3d] sm:$0x1] }
 0xc61   :  { %v2729_v51 = vmul.f32 %v5355_v14, %v2711_v60 }
 0xc63   :  { %v2715_v48 = vpop.permute.xlu1 %2714 }
 0xc64   :  { %v2755_v23 = vpop.permute.xlu0 %2754  ;;  %v2731_v36 = vmul.f32 %v5357_v24, %v2715_v48 }
 0xc65   :  { %v7262_v18 = vmul.f32 %v2755_v23, %v2727_v49 }
 0xc67   :  { %v2749_v10 = vpop.permute.xlu1 %2748  ;;  %v2792_v58 = vrot.slane %v7262_v18, 5 }
 0xc68   :  { %v2757_v20 = vpop.permute.xlu0 %2756  ;;  %v7269_v34 = vmul.f32 %v2749_v10, %v2724_v7 }
 0xc69   :  { %v7265_v61 = vmul.f32 %v2757_v20, %v2728_v43 }
 0xc6b   :  { %v2751_v52 = vpop.permute.xlu1 %2750  ;;  %v2794_v55 = vrot.slane %v7265_v61, 4 }
 0xc6c   :  { %v7260_v13 = vmul.f32 %v2751_v52, %v2725_v46  ;;  %v2759_v38 = vpop.permute.xlu0 %2758  ;;  %v2879_v46 = vld [vmem:[%s8062_s1 + $0x5] sm:$0x1] }
 0xc6d   :  { %v7271_v39 = vmul.f32 %v2759_v38, %v2729_v51  ;;  %v2885_v51 = vld [vmem:[%s8062_s1 + $0x35] sm:$0x1] }
 0xc6e   :  { %v2788_v35 = vrot.slane %v7260_v13, 7 }
 0xc6f   :  { %v2753_v33 = vpop.permute.xlu1 %2752  ;;  %v2796_v12 = vrot.slane %v7271_v39, 3 }
 0xc70   :  { %v7267_v27 = vmul.f32 %v2753_v33, %v2726_v26  ;;  %v2763_v53 = vpop.permute.xlu0 %2762  ;;  %v2789_v29 = vsel %vm249_vm2, %v2788_v35, %v7269_v34 }
 0xc71   :  { %v7277_v15 = vmul.f32 %v2763_v53, %v2731_v36 }
 0xc72   :  { %v2790_v50 = vrot.slane %v7267_v27, 6 }
 0xc73   :  { %v2761_v40 = vpop.permute.xlu1 %2760  ;;  %v2800_v23 = vrot.slane %v7277_v15, 1 }
 0xc74   :  { %v2791_v57 = vsel %vm252_vm3, %v2790_v50, %v2789_v29  ;;  %v7281_v56 = vmul.f32 %v2761_v40, %v2730_v17 }
 0xc75   :  { %v2793_v41 = vsel %vm255_vm4, %v2792_v58, %v2791_v57 }
 0xc76   :  { %v2798_v60 = vrot.slane %v7281_v56, 2  ;;  %v2795_v48 = vsel %vm258_vm5, %v2794_v55, %v2793_v41 }
 0xc77   :  { %v2797_v10 = vsel %vm261_vm6, %v2796_v12, %v2795_v48 }
 0xc78   :  { %v2799_v20 = vsel %vm264_vm7, %v2798_v60, %v2797_v10 }
 0xc79   :  { %v2801_v2 = vsel %vm267_vm8, %v2800_v23, %v2799_v20 }
 0xc7a   :  { %2802 = vrot.lane.b32.xlu1 %v2801_v2, %s5759_s0 }
 0xcec   :  { %v2803_v5 = vpop.permute.xlu1 %2802 }
 0xced   :  { %4583 = vst.msk [vmem:[%s8065_s5 + $0x20] sm:$0xff] %vm29_vm0, %v2803_v5  ;;  %4719 = vmatmul.mubr.msk.f32.vlgmr.msra.gmra.mxu1 %vm29_vm0, %v2803_v5 }
 0xcee   :  { %4733 = vmatpush3.msra.mxu1 %v7004_v8  ;;  %4740 = vmatprep.mubr.msk.f32.mxu1 %vm5756_vm1, %v5755_v0  ;;  %v2880_v8 = vld [vmem:[%s8062_s1 + $0xd] sm:$0x1] }
 0xcef   :  { %4734 = vmatprep.subr.mxu1 %v5755_v0 }
 0xcf0   :  { %4735 = vmatpush3.msra.mxu1 %v7013_v22  ;;  %v2881_v22 = vld [vmem:[%s8062_s1 + $0x15] sm:$0x1] }
 0xcf1   :  { %4736 = vmatprep.subr.mxu1 %v5755_v0 }
 0xcf2   :  { %4737 = vmatpush3.msra.mxu1 %v7020_v4  ;;  %v2882_v4 = vld [vmem:[%s8062_s1 + $0x1d] sm:$0x1] }
 0xcf3   :  { %4738 = vmatprep.subr.mxu1 %v5755_v0  ;;  %v2883_v0 = vld [vmem:[%s8062_s1 + $0x25] sm:$0x1] }
 0xcf4   :  { %4739 = vmatpush3.msra.mxu1 %v7027_v19 }
 0xdad   :  { %v2875_v28 = vpop.f32.mrf.mxu1 }
 0xdae   :  { %v2888_v19 = vrot.slane %v2875_v28, 1  ;;  %v2889_v52 = vrot.slane %v2875_v28, 2  ;;  %v2890_v6 = vrot.slane %v2875_v28, 3  ;;  %v2891_v38 = vrot.slane %v2875_v28, 4 }
 0xdaf   :  { %v2892_v49 = vrot.slane %v2875_v28, 5  ;;  %v2893_v14 = vrot.slane %v2875_v28, 6  ;;  %v2894_v26 = vrot.slane %v2875_v28, 7  ;;  %v2903_v43 = vadd.f32 %v2879_v46, %v2875_v28  ;;  %v4720_v7 = vpop.f32.mrf.mxu1 }
 0xdb0   :  { %v2904_v35 = vadd.f32 %v2888_v19, %v2880_v8  ;;  %v2905_v33 = vadd.f32 %v2889_v52, %v2881_v22  ;;  %v2906_v24 = vadd.f32 %v2890_v6, %v2882_v4  ;;  %v2907_v53 = vadd.f32 %v2891_v38, %v2883_v0 }
 0xdb1   :  { %v7331_v36 = vadd.f32 %v7057_v47, %v2903_v43  ;;  %v2908_v17 = vadd.f32 %v2892_v49, %v2884_v54  ;;  %v2909_v40 = vadd.f32 %v2893_v14, %v2885_v51  ;;  %v2910_v55 = vadd.f32 %v2894_v26, %v2886_v32 }
 0xdb2   :  { %v7334_v50 = vadd.f32 %v7057_v47, %v2904_v35  ;;  %v7337_v58 = vadd.f32 %v7057_v47, %v2905_v33  ;;  %v7340_v29 = vadd.f32 %v7057_v47, %v2906_v24  ;;  %v7343_v57 = vadd.f32 %v7057_v47, %v2907_v53 }
 0xdb3   :  { %v2927_v12 = vand.u32 2147483647, %v7331_v36  ;;  %v7349_v48 = vadd.f32 %v7057_v47, %v2908_v17  ;;  %v7353_v20 = vadd.f32 %v7057_v47, %v2909_v40  ;;  %v7356_v46 = vadd.f32 %v7057_v47, %v2910_v55 }
 0xdb4   :  { %v2929_v41 = vand.u32 2147483647, %v7337_v58  ;;  %v2928_v60 = vand.u32 2147483647, %v7334_v50  ;;  %v2930_v10 = vand.u32 2147483647, %v7340_v29 }
 0xdb5   :  { %v2935_v23 = vsub.f32 0.0, %v2927_v12  ;;  %v2931_v22 = vand.u32 2147483647, %v7343_v57  ;;  %v2932_v6 = vand.u32 2147483647, %v7349_v48 }
 0xdb6   :  { %v2937_v2 = vsub.f32 0.0, %v2929_v41  ;;  %v2936_v5 = vsub.f32 0.0, %v2928_v60  ;;  %v2938_v28 = vsub.f32 0.0, %v2930_v10  ;;  %v2933_v38 = vand.u32 2147483647, %v7353_v20 }
 0xdb7   :  { %v2943_v8 = vmul.f32 1.442695, %v2935_v23  ;;  %v2939_v52 = vsub.f32 0.0, %v2931_v22  ;;  %v2940_v49 = vsub.f32 0.0, %v2932_v6  ;;  %v2934_v14 = vand.u32 2147483647, %v7356_v46 }
 0xdb8   :  { %v2947_v4 = vmul.f32 1.442695, %v2937_v2  ;;  %v2945_v0 = vmul.f32 1.442695, %v2936_v5  ;;  %v2949_v19 = vmul.f32 1.442695, %v2938_v28 }
 0xdb9   :  { %5360 = vpow2.f32 %v2943_v8  ;;  %v2951_v54 = vmul.f32 1.442695, %v2939_v52  ;;  %v2941_v47 = vsub.f32 0.0, %v2933_v38  ;;  %v2953_v26 = vmul.f32 1.442695, %v2940_v49 }
 0xdba   :  { %5362 = vpow2.f32 %v2947_v4  ;;  %v2942_v43 = vsub.f32 0.0, %v2934_v14  ;;  %v2919_v4 = vmin.f32 %v7331_v36, 0.0  ;;  %v2921_v52 = vmin.f32 %v7337_v58, 0.0 }
 0xdbb   :  { %5364 = vpow2.f32 %v2945_v0  ;;  %v2955_v7 = vmul.f32 1.442695, %v2941_v47 }
 0xdbc   :  { %5366 = vpow2.f32 %v2949_v19  ;;  %v2957_v51 = vmul.f32 1.442695, %v2942_v43 }
 0xdbd   :  { %5368 = vpow2.f32 %v2951_v54 }
 0xdbe   :  { %5370 = vpow2.f32 %v2953_v26 }
 0xdbf   :  { %5372 = vpow2.f32 %v2955_v7  ;;  %v2920_v7 = vmin.f32 %v7334_v50, 0.0 }
 0xdc0   :  { %5374 = vpow2.f32 %v2957_v51  ;;  %v2922_v51 = vmin.f32 %v7340_v29, 0.0 }
 0xdc6   :  { %v5361_v35 = vpop.eup %5360 }
 0xdc7   :  { %v5363_v33 = vpop.eup %5362  ;;  %v2959_v24 = vadd.f32 1.0, %v5361_v35 }
 0xdc8   :  { %v5365_v53 = vpop.eup %5364  ;;  %v2961_v32 = vadd.f32 1.0, %v5363_v33 }
 0xdc9   :  { %v5367_v17 = vpop.eup %5366  ;;  %5376 = vlog2.f32 %v2959_v24  ;;  %v2960_v40 = vadd.f32 1.0, %v5365_v53 }
 0xdca   :  { %v5369_v55 = vpop.eup %5368  ;;  %5378 = vlog2.f32 %v2961_v32  ;;  %v2962_v12 = vadd.f32 1.0, %v5367_v17 }
 0xdcb   :  { %v5371_v41 = vpop.eup %5370  ;;  %5380 = vlog2.f32 %v2960_v40  ;;  %v2963_v60 = vadd.f32 1.0, %v5369_v55  ;;  %v2923_v40 = vmin.f32 %v7343_v57, 0.0  ;;  %v2924_v55 = vmin.f32 %v7349_v48, 0.0 }
 0xdcc   :  { %v5373_v23 = vpop.eup %5372  ;;  %5382 = vlog2.f32 %v2962_v12  ;;  %v2964_v10 = vadd.f32 1.0, %v5371_v41 }
 0xdcd   :  { %v5375_v2 = vpop.eup %5374  ;;  %5384 = vlog2.f32 %v2963_v60  ;;  %v2965_v5 = vadd.f32 1.0, %v5373_v23 }
 0xdce   :  { %5386 = vlog2.f32 %v2964_v10  ;;  %v2966_v8 = vadd.f32 1.0, %v5375_v2  ;;  %v2925_v10 = vmin.f32 %v7353_v20, 0.0  ;;  %v2926_v2 = vmin.f32 %v7356_v46, 0.0 }
 0xdcf   :  { %5388 = vlog2.f32 %v2965_v5 }
 0xdd0   :  { %5390 = vlog2.f32 %v2966_v8 }
 0xdd1   :  { %5392 = vtanh.f32 %v7334_v50 }
 0xdd2   :  { %5394 = vtanh.f32 %v7337_v58 }
 0xdd3   :  { %5396 = vtanh.f32 %v7331_v36 }
 0xdd4   :  { %5398 = vtanh.f32 %v7340_v29 }
 0xdd5   :  { %5400 = vtanh.f32 %v7343_v57 }
 0xdd6   :  { %v5377_v28 = vpop.eup %5376  ;;  %5402 = vtanh.f32 %v7349_v48 }
 0xdd7   :  { %v5379_v22 = vpop.eup %5378  ;;  %v2968_v0 = vmul.f32 0.6931472, %v5377_v28  ;;  %5404 = vtanh.f32 %v7353_v20 }
 0xdd8   :  { %v5381_v19 = vpop.eup %5380  ;;  %v2972_v6 = vmul.f32 0.6931472, %v5379_v22  ;;  %5406 = vtanh.f32 %v7356_v46 }
 0xdd9   :  { %v5383_v38 = vpop.eup %5382  ;;  %v2983_v54 = vsub.f32 %v2919_v4, %v2968_v0  ;;  %v2970_v49 = vmul.f32 0.6931472, %v5381_v19 }
 0xdda   :  { %v5385_v14 = vpop.eup %5384  ;;  %v2985_v47 = vsub.f32 %v2921_v52, %v2972_v6  ;;  %v2974_v26 = vmul.f32 0.6931472, %v5383_v38 }
 0xddb   :  { %v5387_v43 = vpop.eup %5386  ;;  %2999 = vrot.lane.b32.xlu0 %v2983_v54, %s5758_s28  ;;  %v2984_v35 = vsub.f32 %v2920_v7, %v2970_v49  ;;  %v2976_v33 = vmul.f32 0.6931472, %v5385_v14 }
 0xddc   :  { %3003 = vrot.lane.b32.xlu1 %v2985_v47, %s5758_s28  ;;  %v5389_v24 = vpop.eup %5388  ;;  %v2986_v53 = vsub.f32 %v2922_v51, %v2974_v26  ;;  %v2978_v32 = vmul.f32 0.6931472, %v5387_v43 }
 0xddd   :  { %v5391_v17 = vpop.eup %5390  ;;  %v2987_v12 = vsub.f32 %v2923_v40, %v2976_v33  ;;  %v2980_v41 = vmul.f32 0.6931472, %v5389_v24 }
 0xdde   :  { %v2988_v60 = vsub.f32 %v2924_v55, %v2978_v32  ;;  %v2982_v23 = vmul.f32 0.6931472, %v5391_v17 }
 0xddf   :  { %3001 = vrot.lane.b32.xlu0 %v2984_v35, %s5758_s28  ;;  %v2989_v5 = vsub.f32 %v2925_v10, %v2980_v41 }
 0xde0   :  { %3005 = vrot.lane.b32.xlu1 %v2986_v53, %s5758_s28  ;;  %v2990_v8 = vsub.f32 %v2926_v2, %v2982_v23 }
 0xde3   :  { %3007 = vrot.lane.b32.xlu0 %v2987_v12, %s5758_s28 }
 0xde4   :  { %3009 = vrot.lane.b32.xlu1 %v2988_v60, %s5758_s28 }
 0xde7   :  { %3011 = vrot.lane.b32.xlu0 %v2989_v5, %s5758_s28 }
 0xde8   :  { %3013 = vrot.lane.b32.xlu1 %v2990_v8, %s5758_s28 }
 0xdeb   :  { %3201 = vrot.lane.b32.xlu0 %v7260_v13, %s5759_s0  ;;  %v5393_v13 = vpop.eup %5392 }
 0xdec   :  { %3203 = vrot.lane.b32.xlu1 %v7267_v27, %s5759_s0 }
 0xdef   :  { %3199 = vrot.lane.b32.xlu0 %v7269_v34, %s5759_s0 }
 0xdf0   :  { %3205 = vrot.lane.b32.xlu1 %v7262_v18, %s5759_s0  ;;  %v5395_v18 = vpop.eup %5394 }
 0xdf3   :  { %3207 = vrot.lane.b32.xlu0 %v7265_v61, %s5759_s0  ;;  %v5397_v61 = vpop.eup %5396 }
 0xdf4   :  { %3209 = vrot.lane.b32.xlu1 %v7271_v39, %s5759_s0  ;;  %v5399_v27 = vpop.eup %5398 }
 0xdf5   :  { %v5401_v34 = vpop.eup %5400 }
 0xdf6   :  { %v5403_v39 = vpop.eup %5402 }
 0xdf7   :  { %3211 = vrot.lane.b32.xlu0 %v7281_v56, %s5759_s0 }
 0xdf8   :  { %3213 = vrot.lane.b32.xlu1 %v7277_v15, %s5759_s0  ;;  %v5405_v15 = vpop.eup %5404 }
 0xdf9   :  { %v5407_v56 = vpop.eup %5406 }
 0xdfb   :  { %3161 = vrot.lane.b32.xlu0 %v5393_v13, %s5757_s27 }
 0xdfc   :  { %3163 = vrot.lane.b32.xlu1 %v5395_v18, %s5757_s27 }
 0xdff   :  { %3159 = vrot.lane.b32.xlu0 %v5397_v61, %s5757_s27 }
 0xe00   :  { %3165 = vrot.lane.b32.xlu1 %v5399_v27, %s5757_s27 }
 0xe03   :  { %3167 = vrot.lane.b32.xlu0 %v5401_v34, %s5757_s27 }
 0xe04   :  { %3169 = vrot.lane.b32.xlu1 %v5403_v39, %s5757_s27 }
 0xe07   :  { %3171 = vrot.lane.b32.xlu0 %v5405_v15, %s5757_s27 }
 0xe08   :  { %3173 = vrot.lane.b32.xlu1 %v5407_v56, %s5757_s27 }
 0xe4d   :  { %v3000_v28 = vpop.permute.xlu0 %2999 }
 0xe4e   :  { %v3023_v22 = vadd.f32 %v3000_v28, %v7142_v1  ;;  %v3004_v4 = vpop.permute.xlu1 %3003 }
 0xe4f   :  { %v3025_v0 = vadd.f32 %v3004_v4, %v7146_v30 }
 0xe50   :  { %v7413_v19 = vmax.f32 %v7331_v36, %v3023_v22 }
 0xe51   :  { %v3002_v52 = vpop.permute.xlu0 %3001  ;;  %v7417_v54 = vmax.f32 %v7337_v58, %v3025_v0 }
 0xe52   :  { %v3024_v6 = vadd.f32 %v3002_v52, %v7156_v63  ;;  %v3006_v38 = vpop.permute.xlu1 %3005  ;;  %v3087_v14 = vsub.f32 %v7331_v36, %v7413_v19  ;;  %v3111_v30 = vsub.f32 %v3023_v22, %v7413_v19 }
 0xe53   :  { %v3026_v49 = vadd.f32 %v3006_v38, %v7152_v59  ;;  %v3113_v7 = vsub.f32 %v3025_v0, %v7417_v54  ;;  %v3089_v24 = vsub.f32 %v7337_v58, %v7417_v54 }
 0xe54   :  { %v7427_v26 = vmax.f32 %v7334_v50, %v3024_v6  ;;  %v3095_v35 = vmul.f32 1.442695, %v3087_v14 }
 0xe55   :  { %v7423_v1 = vmax.f32 %v7340_v29, %v3026_v49  ;;  %v3008_v47 = vpop.permute.xlu0 %3007  ;;  %v3123_v41 = vmul.f32 1.442695, %v3113_v7  ;;  %v3099_v5 = vmul.f32 1.442695, %v3089_v24 }
 0xe56   :  { %v3027_v63 = vadd.f32 %v3008_v47, %v7163_v44  ;;  %v3010_v43 = vpop.permute.xlu1 %3009  ;;  %v3119_v44 = vmul.f32 1.442695, %v3111_v30  ;;  %v3088_v40 = vsub.f32 %v7334_v50, %v7427_v26  ;;  %5408 = vpow2.f32 %v3095_v35 }
 0xe57   :  { %v3114_v51 = vsub.f32 %v3026_v49, %v7423_v1  ;;  %v3028_v59 = vadd.f32 %v3010_v43, %v7168_v42  ;;  %v3090_v60 = vsub.f32 %v7340_v29, %v7423_v1  ;;  %v3112_v10 = vsub.f32 %v3024_v6, %v7427_v26 }
 0xe58   :  { %v7434_v33 = vmax.f32 %v7343_v57, %v3027_v63 }
 0xe59   :  { %v3125_v53 = vmul.f32 1.442695, %v3114_v51  ;;  %v7439_v32 = vmax.f32 %v7349_v48, %v3028_v59  ;;  %v3012_v17 = vpop.permute.xlu0 %3011  ;;  %v3101_v34 = vmul.f32 1.442695, %v3090_v60  ;;  %v3121_v39 = vmul.f32 1.442695, %v3112_v10 }
 0xe5a   :  { %v3115_v55 = vsub.f32 %v3027_v63, %v7434_v33  ;;  %v3029_v42 = vadd.f32 %v3012_v17, %v7187_v11  ;;  %v3014_v12 = vpop.permute.xlu1 %3013  ;;  %v3097_v11 = vmul.f32 1.442695, %v3088_v40  ;;  %v3091_v61 = vsub.f32 %v7343_v57, %v7434_v33 }
 0xe5b   :  { %v3030_v23 = vadd.f32 %v3014_v12, %v7180_v9  ;;  %5410 = vpow2.f32 %v3125_v53  ;;  %v3116_v8 = vsub.f32 %v3028_v59, %v7439_v32  ;;  %v3092_v52 = vsub.f32 %v7349_v48, %v7439_v32 }
 0xe5c   :  { %v3127_v2 = vmul.f32 1.442695, %v3115_v55  ;;  %5412 = vpow2.f32 %v3119_v44  ;;  %v7458_v9 = vmax.f32 %v7353_v20, %v3029_v42  ;;  %v3103_v22 = vmul.f32 1.442695, %v3091_v61 }
 0xe5d   :  { %v7451_v13 = vmax.f32 %v7356_v46, %v3030_v23  ;;  %v7453_v18 = vpop.permute.xlu0 %3201  ;;  %5414 = vpow2.f32 %v3123_v41  ;;  %v3129_v15 = vmul.f32 1.442695, %v3116_v8  ;;  %v3105_v63 = vmul.f32 1.442695, %v3092_v52 }
 0xe5e   :  { %v7460_v27 = vpop.permute.xlu1 %3203  ;;  %5416 = vpow2.f32 %v3127_v2  ;;  %v3117_v4 = vsub.f32 %v3029_v42, %v7458_v9  ;;  %v3093_v6 = vsub.f32 %v7353_v20, %v7458_v9 }
 0xe5f   :  { %5418 = vpow2.f32 %v3099_v5  ;;  %v3118_v56 = vsub.f32 %v3030_v23, %v7451_v13  ;;  %v3094_v47 = vsub.f32 %v7356_v46, %v7451_v13 }
 0xe60   :  { %5420 = vpow2.f32 %v3097_v11  ;;  %v3131_v14 = vmul.f32 1.442695, %v3117_v4  ;;  %v3107_v43 = vmul.f32 1.442695, %v3093_v6 }
 0xe61   :  { %v3200_v28 = vpop.permute.xlu0 %3199  ;;  %5422 = vpow2.f32 %v3101_v34  ;;  %v3133_v38 = vmul.f32 1.442695, %v3118_v56  ;;  %v3109_v35 = vmul.f32 1.442695, %v3094_v47 }
 0xe62   :  { %v3206_v0 = vpop.permute.xlu1 %3205  ;;  %5424 = vpow2.f32 %v3121_v39 }
 0xe63   :  { %5426 = vpow2.f32 %v3129_v15  ;;  %v5409_v7 = vpop.eup %5408 }
 0xe64   :  { %5428 = vpow2.f32 %v3103_v22 }
 0xe65   :  { %v3208_v49 = vpop.permute.xlu0 %3207  ;;  %5430 = vpow2.f32 %v3133_v38 }
 0xe66   :  { %v3210_v30 = vpop.permute.xlu1 %3209  ;;  %5432 = vpow2.f32 %v3131_v14 }
 0xe67   :  { %5434 = vpow2.f32 %v3105_v63 }
 0xe68   :  { %v5411_v59 = vpop.eup %5410  ;;  %5436 = vpow2.f32 %v3107_v43 }
 0xe69   :  { %v7470_v51 = vpop.permute.xlu0 %3211  ;;  %v5413_v53 = vpop.eup %5412  ;;  %v3226_v40 = vmul.f32 %v5411_v59, %v3206_v0  ;;  %5438 = vpow2.f32 %v3109_v35  ;;  %v3138_v52 = vmul.f32 %v5411_v59, %v7211_v21 }
 0xe6a   :  { %v3214_v24 = vpop.permute.xlu1 %3213  ;;  %v5415_v17 = vpop.eup %5414  ;;  %v3223_v60 = vmul.f32 %v5413_v53, %v3200_v28  ;;  %v3135_v15 = vmul.f32 %v5413_v53, %v7209_v16 }
 0xe6b   :  { %v5417_v44 = vpop.eup %5416  ;;  %v3137_v23 = vmul.f32 %v5415_v17, %v7202_v3 }
 0xe6c   :  { %v5419_v42 = vpop.eup %5418  ;;  %v3227_v5 = vmul.f32 %v5417_v44, %v3208_v49  ;;  %v3231_v0 = vadd.f32 %v5409_v7, %v3223_v60  ;;  %v3139_v35 = vmul.f32 %v5417_v44, %v7222_v45 }
 0xe6d   :  { %v3162_v55 = vpop.permute.xlu0 %3161  ;;  %v5421_v41 = vpop.eup %5420 }
 0xe6e   :  { %v3164_v12 = vpop.permute.xlu1 %3163  ;;  %v5423_v2 = vpop.eup %5422  ;;  %v3184_v38 = vmul.f32 %v5421_v41, %v3162_v55 }
 0xe6f   :  { %v3185_v10 = vmul.f32 %v5419_v42, %v3164_v12  ;;  %v5425_v8 = vpop.eup %5424  ;;  %v3234_v11 = vadd.f32 %v5423_v2, %v3226_v40 }
 0xe70   :  { %v5427_v39 = vpop.eup %5426  ;;  %v3224_v3 = vmul.f32 %v5425_v8, %v7453_v18  ;;  %v3136_v43 = vmul.f32 %v5425_v8, %v7220_v37  ;;  %v3225_v18 = vmul.f32 %v5415_v17, %v7460_v27 }
 0xe71   :  { %v7473_v61 = vadd.f32 %v3185_v10, %v3137_v23  ;;  %v3160_v34 = vpop.permute.xlu0 %3159  ;;  %v5429_v4 = vpop.eup %5428  ;;  %5440 = vrcp.f32 %v3234_v11  ;;  %v3228_v14 = vmul.f32 %v5427_v39, %v3210_v30 }
 0xe72   :  { %v3183_v56 = vmul.f32 %v5409_v7, %v3160_v34  ;;  %v3166_v22 = vpop.permute.xlu1 %3165  ;;  %v3235_v6 = vadd.f32 %v5429_v4, %v3227_v5  ;;  %v5431_v63 = vpop.eup %5430  ;;  %5442 = vrcp.f32 %v3231_v0  ;;  %v3232_v53 = vadd.f32 %v5421_v41, %v3224_v3 }
 0xe73   :  { %v3186_v28 = vmul.f32 %v5423_v2, %v3166_v22  ;;  %3251 = vrot.lane.b32.xlu1 %v7473_v61, %s5758_s28  ;;  %v5433_v59 = vpop.eup %5432  ;;  %v7491_v40 = vadd.f32 %v3184_v38, %v3136_v43  ;;  %v3230_v12 = vmul.f32 %v5431_v63, %v3214_v24  ;;  %v3233_v2 = vadd.f32 %v5419_v42, %v3225_v18 }
 0xe74   :  { %v7480_v49 = vadd.f32 %v3183_v56, %v3135_v15  ;;  %v5435_v30 = vpop.eup %5434  ;;  %5444 = vrcp.f32 %v3235_v6  ;;  %v3141_v27 = vmul.f32 %v5433_v59, %v7231_v31  ;;  %v3140_v41 = vmul.f32 %v5427_v39, %v7233_v62 }
 0xe75   :  { %v7482_v47 = vadd.f32 %v3186_v28, %v3138_v52  ;;  %v3168_v16 = vpop.permute.xlu0 %3167  ;;  %v5437_v37 = vpop.eup %5436  ;;  %v3236_v55 = vadd.f32 %v5435_v30, %v3228_v14  ;;  %5446 = vrcp.f32 %v3232_v53  ;;  %v3229_v24 = vmul.f32 %v5433_v59, %v7470_v51 }
 0xe76   :  { %v3187_v7 = vmul.f32 %v5429_v4, %v3168_v16  ;;  %3247 = vrot.lane.b32.xlu0 %v7480_v49, %s5758_s28  ;;  %v3170_v21 = vpop.permute.xlu1 %3169  ;;  %v5439_v44 = vpop.eup %5438  ;;  %v3142_v34 = vmul.f32 %v5431_v63, %v7240_v25  ;;  %v4586_v52 = vmul.f32 -1.442695, %v7334_v50  ;;  %v4587_v28 = vmul.f32 -1.442695, %v7337_v58 }
 0xe77   :  { %3253 = vrot.lane.b32.xlu1 %v7482_v47, %s5758_s28  ;;  %v3188_v23 = vmul.f32 %v5435_v30, %v3170_v21  ;;  %5448 = vrcp.f32 %v3236_v55  ;;  %v3238_v31 = vadd.f32 %v5439_v44, %v3230_v12  ;;  %v3237_v62 = vadd.f32 %v5437_v37, %v3229_v24 }
 0xe78   :  { %v7493_v60 = vadd.f32 %v3187_v7, %v3139_v35  ;;  %5450 = vrcp.f32 %v3233_v2  ;;  %v4585_v3 = vmul.f32 -1.442695, %v7331_v36  ;;  %v4588_v6 = vmul.f32 -1.442695, %v7340_v29 }
 0xe79   :  { %v3172_v10 = vpop.permute.xlu0 %3171  ;;  %v7504_v11 = vadd.f32 %v3188_v23, %v3140_v41  ;;  %5452 = vrcp.f32 %v3238_v31  ;;  %v4589_v38 = vmul.f32 -1.442695, %v7343_v57  ;;  %v4590_v14 = vmul.f32 -1.442695, %v7349_v48 }
 0xe7a   :  { %v3189_v17 = vmul.f32 %v5437_v37, %v3172_v10  ;;  %3249 = vrot.lane.b32.xlu0 %v7491_v40, %s5758_s28  ;;  %v3174_v45 = vpop.permute.xlu1 %3173  ;;  %5454 = vrcp.f32 %v3237_v62  ;;  %v4592_v16 = vmul.f32 -1.442695, %v7356_v46  ;;  %v4591_v63 = vmul.f32 -1.442695, %v7353_v20 }
 0xe7b   :  { %3255 = vrot.lane.b32.xlu1 %v7493_v60, %s5758_s28  ;;  %v3190_v8 = vmul.f32 %v5439_v44, %v3174_v45  ;;  %5456 = vpow2.f32 %v4586_v52 }
 0xe7c   :  { %v7502_v5 = vadd.f32 %v3189_v17, %v3141_v27  ;;  %5458 = vpow2.f32 %v4587_v28 }
 0xe7d   :  { %v7511_v42 = vadd.f32 %v3190_v8, %v3142_v34  ;;  %5460 = vpow2.f32 %v4585_v3 }
 0xe7e   :  { %3259 = vrot.lane.b32.xlu0 %v7502_v5, %s5758_s28  ;;  %v5441_v51 = vpop.eup %5440  ;;  %5462 = vpow2.f32 %v4588_v6 }
 0xe7f   :  { %3257 = vrot.lane.b32.xlu1 %v7504_v11, %s5758_s28  ;;  %v5443_v39 = vpop.eup %5442  ;;  %5464 = vpow2.f32 %v4589_v38 }
 0xe80   :  { %5466 = vpow2.f32 %v4590_v14 }
 0xe81   :  { %v5445_v25 = vpop.eup %5444  ;;  %5468 = vpow2.f32 %v4592_v16 }
 0xe82   :  { %3261 = vrot.lane.b32.xlu0 %v7511_v42, %s5758_s28  ;;  %v5447_v15 = vpop.eup %5446  ;;  %5470 = vpow2.f32 %v4591_v63 }
 0xe83   :  { %3301 = vrot.lane.b32.xlu1 %v5441_v51, %s5758_s28 }
 0xe84   :  { %v5449_v56 = vpop.eup %5448 }
 0xe85   :  { %v5451_v22 = vpop.eup %5450 }
 0xe86   :  { %3295 = vrot.lane.b32.xlu0 %v5443_v39, %s5758_s28  ;;  %v5453_v4 = vpop.eup %5452 }
 0xe87   :  { %3303 = vrot.lane.b32.xlu1 %v5445_v25, %s5758_s28  ;;  %v5455_v0 = vpop.eup %5454 }
 0xe88   :  { %v5457_v36 = vpop.eup %5456 }
 0xe89   :  { %v5459_v58 = vpop.eup %5458  ;;  %v3064_v21 = vadd.f32 1.0, %v5457_v36 }
 0xe8a   :  { %3297 = vrot.lane.b32.xlu0 %v5447_v15, %s5758_s28  ;;  %v5461_v29 = vpop.eup %5460  ;;  %v3065_v48 = vadd.f32 1.0, %v5459_v58 }
 0xe8b   :  { %3305 = vrot.lane.b32.xlu1 %v5449_v56, %s5758_s28  ;;  %v5463_v7 = vpop.eup %5462  ;;  %v3063_v35 = vadd.f32 1.0, %v5461_v29  ;;  %5472 = vrcp.f32 %v3064_v21 }
 0xe8c   :  { %v5465_v59 = vpop.eup %5464  ;;  %v3066_v30 = vadd.f32 1.0, %v5463_v7  ;;  %5474 = vrcp.f32 %v3065_v48 }
 0xe8d   :  { %v5467_v18 = vpop.eup %5466  ;;  %v3067_v20 = vadd.f32 1.0, %v5465_v59  ;;  %5476 = vrcp.f32 %v3063_v35 }
 0xe8e   :  { %3299 = vrot.lane.b32.xlu0 %v5451_v22, %s5758_s28  ;;  %v5469_v53 = vpop.eup %5468  ;;  %v3068_v12 = vadd.f32 1.0, %v5467_v18  ;;  %5478 = vrcp.f32 %v3066_v30 }
 0xe8f   :  { %3309 = vrot.lane.b32.xlu1 %v5453_v4, %s5758_s28  ;;  %v5471_v55 = vpop.eup %5470  ;;  %v3070_v10 = vadd.f32 1.0, %v5469_v53  ;;  %5480 = vrcp.f32 %v3067_v20 }
 0xe90   :  { %v3069_v27 = vadd.f32 1.0, %v5471_v55  ;;  %5482 = vrcp.f32 %v3068_v12 }
 0xe91   :  { %5484 = vrcp.f32 %v3070_v10 }
 0xe92   :  { %3307 = vrot.lane.b32.xlu0 %v5455_v0, %s5758_s28  ;;  %5486 = vrcp.f32 %v3069_v27 }
 0xe98   :  { %v5473_v24 = vpop.eup %5472 }
 0xe99   :  { %v5475_v8 = vpop.eup %5474 }
 0xe9a   :  { %v5477_v34 = vpop.eup %5476 }
 0xe9b   :  { %v5479_v51 = vpop.eup %5478 }
 0xe9c   :  { %v5481_v15 = vpop.eup %5480 }
 0xe9d   :  { %v5483_v22 = vpop.eup %5482 }
 0xe9e   :  { %v5485_v14 = vpop.eup %5484 }
 0xe9f   :  { %v5487_v58 = vpop.eup %5486 }
 0xee5   :  { %v3252_v50 = vpop.permute.xlu1 %3251 }
 0xee6   :  { %v3273_v4 = vmul.f32 %v5475_v8, %v3252_v50  ;;  %v3430_v8 = vld [vmem:[%s8062_s1 + $0x26] sm:$0x1] }
 0xee8   :  { %v3248_v43 = vpop.permute.xlu0 %3247 }
 0xee9   :  { %v3254_v57 = vpop.permute.xlu1 %3253  ;;  %v3271_v52 = vmul.f32 %v5477_v34, %v3248_v43 }
 0xeea   :  { %v3274_v56 = vmul.f32 %v5479_v51, %v3254_v57 }
 0xeec   :  { %v3250_v46 = vpop.permute.xlu0 %3249 }
 0xeed   :  { %v3256_v37 = vpop.permute.xlu1 %3255  ;;  %v3272_v31 = vmul.f32 %v5473_v24, %v3250_v46  ;;  %v3429_v24 = vld [vmem:[%s8062_s1 + $0x1e] sm:$0x1] }
 0xeee   :  { %v3275_v0 = vmul.f32 %v5481_v15, %v3256_v37 }
 0xef0   :  { %v3260_v23 = vpop.permute.xlu0 %3259 }
 0xef1   :  { %v3258_v17 = vpop.permute.xlu1 %3257  ;;  %v3277_v50 = vmul.f32 %v5487_v58, %v3260_v23  ;;  %v7595_v58 = vld [vmem:[%s8063_s3] ss:$0 sm:$0xff] }
 0xef2   :  { %v3276_v28 = vmul.f32 %v5483_v22, %v3258_v17 }
 0xef4   :  { %v3262_v45 = vpop.permute.xlu0 %3261 }
 0xef5   :  { %v3302_v44 = vpop.permute.xlu1 %3301  ;;  %v3278_v29 = vmul.f32 %v5485_v14, %v3262_v45  ;;  %v3426_v45 = vld [vmem:[%s8062_s1 + $0x6] sm:$0x1] }
 0xef6   :  { %v7533_v3 = vmul.f32 %v3302_v44, %v3274_v56  ;;  %v3427_v44 = vld [vmem:[%s8062_s1 + $0xe] sm:$0x1] }
 0xef8   :  { %v3296_v2 = vpop.permute.xlu0 %3295  ;;  %v3339_v21 = vrot.slane %v7533_v3, 5 }
 0xef9   :  { %v3304_v41 = vpop.permute.xlu1 %3303  ;;  %v7540_v7 = vmul.f32 %v3296_v2, %v3271_v52  ;;  %v3432_v52 = vld [vmem:[%s8062_s1 + $0x36] sm:$0x1] }
 0xefa   :  { %v7536_v16 = vmul.f32 %v3304_v41, %v3275_v0  ;;  %v3428_v41 = vld [vmem:[%s8062_s1 + $0x16] sm:$0x1] }
 0xefc   :  { %v3298_v62 = vpop.permute.xlu0 %3297  ;;  %v3341_v35 = vrot.slane %v7536_v16, 4 }
 0xefd   :  { %v7531_v39 = vmul.f32 %v3298_v62, %v3272_v31  ;;  %v3306_v25 = vpop.permute.xlu1 %3305 }
 0xefe   :  { %v7542_v57 = vmul.f32 %v3306_v25, %v3276_v28  ;;  %v3431_v25 = vld [vmem:[%s8062_s1 + $0x2e] sm:$0x1] }
 0xeff   :  { %v3335_v6 = vrot.slane %v7531_v39, 7 }
 0xf00   :  { %v3300_v38 = vpop.permute.xlu0 %3299  ;;  %v3343_v53 = vrot.slane %v7542_v57, 3 }
 0xf01   :  { %v7538_v63 = vmul.f32 %v3300_v38, %v3273_v4  ;;  %v3310_v36 = vpop.permute.xlu1 %3309  ;;  %v3336_v59 = vsel %vm249_vm2, %v3335_v6, %v7540_v7 }
 0xf02   :  { %v7548_v48 = vmul.f32 %v3310_v36, %v3278_v29  ;;  %v3433_v36 = vld [vmem:[%s8062_s1 + $0x3e] sm:$0x1] }
 0xf03   :  { %v3337_v43 = vrot.slane %v7538_v63, 6 }
 0xf04   :  { %v3308_v18 = vpop.permute.xlu0 %3307  ;;  %v3347_v12 = vrot.slane %v7548_v48, 1 }
 0xf05   :  { %v3338_v30 = vsel %vm252_vm3, %v3337_v43, %v3336_v59  ;;  %v7552_v46 = vmul.f32 %v3308_v18, %v3277_v50 }
 0xf06   :  { %v3340_v20 = vsel %vm255_vm4, %v3339_v21, %v3338_v30 }
 0xf07   :  { %v3345_v37 = vrot.slane %v7552_v46, 2  ;;  %v3342_v55 = vsel %vm258_vm5, %v3341_v35, %v3340_v20 }
 0xf08   :  { %v3344_v23 = vsel %vm261_vm6, %v3343_v53, %v3342_v55 }
 0xf09   :  { %v3346_v10 = vsel %vm264_vm7, %v3345_v37, %v3344_v23 }
 0xf0a   :  { %v3348_v27 = vsel %vm267_vm8, %v3347_v12, %v3346_v10 }
 0xf0b   :  { %3349 = vrot.lane.b32.xlu0 %v3348_v27, %s5759_s0 }
 0xf7d   :  { %v3350_v17 = vpop.permute.xlu0 %3349 }
 0xf7e   :  { %4593 = vst.msk [vmem:[%s8065_s5 + $0x28] sm:$0xff] %vm29_vm0, %v3350_v17  ;;  %4730 = vmatmul.mubr.msk.f32.vlgmr.msra.gmra.mxu0 %vm29_vm0, %v3350_v17 }
0x103e   :  { %v3422_v2 = vpop.f32.mrf.mxu0 }
0x103f   :  { %v3435_v31 = vrot.slane %v3422_v2, 1  ;;  %v3436_v34 = vrot.slane %v3422_v2, 2  ;;  %v3437_v62 = vrot.slane %v3422_v2, 3  ;;  %v3438_v51 = vrot.slane %v3422_v2, 4 }
0x1040   :  { %v3439_v15 = vrot.slane %v3422_v2, 5  ;;  %v3440_v56 = vrot.slane %v3422_v2, 6  ;;  %v3441_v22 = vrot.slane %v3422_v2, 7  ;;  %v3450_v4 = vadd.f32 %v3426_v45, %v3422_v2  ;;  %v4731_v0 = vpop.f32.mrf.mxu0 }
0x1041   :  { %v3451_v28 = vadd.f32 %v3435_v31, %v3427_v44  ;;  %v3452_v6 = vadd.f32 %v3436_v34, %v3428_v41  ;;  %v3453_v38 = vadd.f32 %v3437_v62, %v3429_v24  ;;  %v3454_v14 = vadd.f32 %v3438_v51, %v3430_v8 }
0x1042   :  { %v7598_v29 = vadd.f32 %v7595_v58, %v3450_v4  ;;  %v3455_v50 = vadd.f32 %v3439_v15, %v3431_v25  ;;  %v3456_v18 = vadd.f32 %v3440_v56, %v3432_v52  ;;  %v3457_v35 = vadd.f32 %v3441_v22, %v3433_v36 }
0x1043   :  { %v7601_v43 = vadd.f32 %v7595_v58, %v3451_v28  ;;  %v7604_v21 = vadd.f32 %v7595_v58, %v3452_v6  ;;  %v7607_v59 = vadd.f32 %v7595_v58, %v3453_v38  ;;  %v7610_v30 = vadd.f32 %v7595_v58, %v3454_v14 }
0x1044   :  { %v3474_v53 = vand.u32 2147483647, %v7598_v29  ;;  %v7616_v55 = vadd.f32 %v7595_v58, %v3455_v50  ;;  %v7620_v10 = vadd.f32 %v7595_v58, %v3456_v18  ;;  %v7623_v45 = vadd.f32 %v7595_v58, %v3457_v35 }
0x1045   :  { %v3476_v20 = vand.u32 2147483647, %v7604_v21  ;;  %v3475_v37 = vand.u32 2147483647, %v7601_v43  ;;  %v3477_v23 = vand.u32 2147483647, %v7607_v59 }
0x1046   :  { %v3482_v12 = vsub.f32 0.0, %v3474_v53  ;;  %v3478_v41 = vand.u32 2147483647, %v7610_v30  ;;  %v3479_v62 = vand.u32 2147483647, %v7616_v55 }
0x1047   :  { %v3484_v27 = vsub.f32 0.0, %v3476_v20  ;;  %v3483_v17 = vsub.f32 0.0, %v3475_v37  ;;  %v3485_v2 = vsub.f32 0.0, %v3477_v23  ;;  %v3480_v51 = vand.u32 2147483647, %v7620_v10 }
0x1048   :  { %v3490_v44 = vmul.f32 1.442695, %v3482_v12  ;;  %v3486_v34 = vsub.f32 0.0, %v3478_v41  ;;  %v3487_v15 = vsub.f32 0.0, %v3479_v62  ;;  %v3481_v56 = vand.u32 2147483647, %v7623_v45 }
0x1049   :  { %v3494_v24 = vmul.f32 1.442695, %v3484_v27  ;;  %v3492_v8 = vmul.f32 1.442695, %v3483_v17  ;;  %v3496_v31 = vmul.f32 1.442695, %v3485_v2 }
0x104a   :  { %5488 = vpow2.f32 %v3490_v44  ;;  %v3498_v25 = vmul.f32 1.442695, %v3486_v34  ;;  %v3488_v22 = vsub.f32 0.0, %v3480_v51  ;;  %v3500_v4 = vmul.f32 1.442695, %v3487_v15 }
0x104b   :  { %5490 = vpow2.f32 %v3494_v24  ;;  %v3489_v0 = vsub.f32 0.0, %v3481_v56  ;;  %v3468_v62 = vmin.f32 %v7604_v21, 0.0 }
0x104c   :  { %5492 = vpow2.f32 %v3492_v8  ;;  %v3502_v52 = vmul.f32 1.442695, %v3488_v22  ;;  %v3466_v8 = vmin.f32 %v7598_v29, 0.0 }
0x104d   :  { %5494 = vpow2.f32 %v3496_v31  ;;  %v3504_v28 = vmul.f32 1.442695, %v3489_v0 }
0x104e   :  { %5496 = vpow2.f32 %v3498_v25 }
0x104f   :  { %5498 = vpow2.f32 %v3500_v4 }
0x1050   :  { %5500 = vpow2.f32 %v3502_v52 }
0x1051   :  { %5502 = vpow2.f32 %v3504_v28  ;;  %v3467_v28 = vmin.f32 %v7601_v43, 0.0 }
0x1057   :  { %v5489_v6 = vpop.eup %5488 }
0x1058   :  { %v5491_v38 = vpop.eup %5490  ;;  %v3506_v14 = vadd.f32 1.0, %v5489_v6  ;;  %v3469_v6 = vmin.f32 %v7607_v59, 0.0 }
0x1059   :  { %v5493_v36 = vpop.eup %5492  ;;  %v3508_v50 = vadd.f32 1.0, %v5491_v38 }
0x105a   :  { %v5495_v18 = vpop.eup %5494  ;;  %5504 = vlog2.f32 %v3506_v14  ;;  %v3507_v35 = vadd.f32 1.0, %v5493_v36 }
0x105b   :  { %v5497_v53 = vpop.eup %5496  ;;  %5506 = vlog2.f32 %v3508_v50  ;;  %v3509_v20 = vadd.f32 1.0, %v5495_v18 }
0x105c   :  { %v5499_v37 = vpop.eup %5498  ;;  %5508 = vlog2.f32 %v3507_v35  ;;  %v3510_v12 = vadd.f32 1.0, %v5497_v53  ;;  %v3470_v53 = vmin.f32 %v7610_v30, 0.0 }
0x105d   :  { %v5501_v23 = vpop.eup %5500  ;;  %5510 = vlog2.f32 %v3509_v20  ;;  %v3511_v27 = vadd.f32 1.0, %v5499_v37  ;;  %v3471_v20 = vmin.f32 %v7616_v55, 0.0 }
0x105e   :  { %v5503_v17 = vpop.eup %5502  ;;  %5512 = vlog2.f32 %v3510_v12  ;;  %v3512_v44 = vadd.f32 1.0, %v5501_v23 }
0x105f   :  { %5514 = vlog2.f32 %v3511_v27  ;;  %v3513_v2 = vadd.f32 1.0, %v5503_v17  ;;  %v3472_v17 = vmin.f32 %v7620_v10, 0.0 }
0x1060   :  { %5516 = vlog2.f32 %v3512_v44  ;;  %v3473_v44 = vmin.f32 %v7623_v45, 0.0 }
0x1061   :  { %5518 = vlog2.f32 %v3513_v2 }
0x1062   :  { %5520 = vtanh.f32 %v7601_v43 }
0x1063   :  { %5522 = vtanh.f32 %v7604_v21 }
0x1064   :  { %5524 = vtanh.f32 %v7598_v29 }
0x1065   :  { %5526 = vtanh.f32 %v7607_v59 }
0x1066   :  { %5528 = vtanh.f32 %v7610_v30 }
0x1067   :  { %v5505_v41 = vpop.eup %5504  ;;  %5530 = vtanh.f32 %v7616_v55 }
0x1068   :  { %v5507_v24 = vpop.eup %5506  ;;  %v3515_v31 = vmul.f32 0.6931472, %v5505_v41  ;;  %5532 = vtanh.f32 %v7620_v10 }
0x1069   :  { %v5509_v34 = vpop.eup %5508  ;;  %v3519_v51 = vmul.f32 0.6931472, %v5507_v24  ;;  %5534 = vtanh.f32 %v7623_v45 }
0x106a   :  { %v5511_v25 = vpop.eup %5510  ;;  %v3530_v15 = vsub.f32 %v3466_v8, %v3515_v31  ;;  %v3517_v56 = vmul.f32 0.6931472, %v5509_v34 }
0x106b   :  { %v5513_v22 = vpop.eup %5512  ;;  %v3532_v4 = vsub.f32 %v3468_v62, %v3519_v51  ;;  %v3521_v0 = vmul.f32 0.6931472, %v5511_v25 }
0x106c   :  { %v5515_v52 = vpop.eup %5514  ;;  %3546 = vrot.lane.b32.xlu1 %v3530_v15, %s5758_s28  ;;  %v3531_v38 = vsub.f32 %v3467_v28, %v3517_v56  ;;  %v3523_v14 = vmul.f32 0.6931472, %v5513_v22 }
0x106d   :  { %3550 = vrot.lane.b32.xlu0 %v3532_v4, %s5758_s28  ;;  %v5517_v36 = vpop.eup %5516  ;;  %v3533_v50 = vsub.f32 %v3469_v6, %v3521_v0  ;;  %v3525_v18 = vmul.f32 0.6931472, %v5515_v52 }
0x106e   :  { %v5519_v35 = vpop.eup %5518  ;;  %v3534_v37 = vsub.f32 %v3470_v53, %v3523_v14  ;;  %v3527_v12 = vmul.f32 0.6931472, %v5517_v36 }
0x106f   :  { %v3535_v23 = vsub.f32 %v3471_v20, %v3525_v18  ;;  %v3529_v27 = vmul.f32 0.6931472, %v5519_v35 }
0x1070   :  { %3548 = vrot.lane.b32.xlu1 %v3531_v38, %s5758_s28  ;;  %v3536_v2 = vsub.f32 %v3472_v17, %v3527_v12 }
0x1071   :  { %3552 = vrot.lane.b32.xlu0 %v3533_v50, %s5758_s28  ;;  %v3537_v41 = vsub.f32 %v3473_v44, %v3529_v27 }
0x1074   :  { %3554 = vrot.lane.b32.xlu1 %v3534_v37, %s5758_s28 }
0x1075   :  { %3556 = vrot.lane.b32.xlu0 %v3535_v23, %s5758_s28 }
0x1078   :  { %3558 = vrot.lane.b32.xlu1 %v3536_v2, %s5758_s28 }
0x1079   :  { %3560 = vrot.lane.b32.xlu0 %v3537_v41, %s5758_s28 }
0x107c   :  { %3748 = vrot.lane.b32.xlu1 %v7531_v39, %s5759_s0  ;;  %v5521_v39 = vpop.eup %5520 }
0x107d   :  { %3750 = vrot.lane.b32.xlu0 %v7538_v63, %s5759_s0 }
0x1080   :  { %3746 = vrot.lane.b32.xlu1 %v7540_v7, %s5759_s0 }
0x1081   :  { %3752 = vrot.lane.b32.xlu0 %v7533_v3, %s5759_s0  ;;  %v5523_v3 = vpop.eup %5522 }
0x1084   :  { %3754 = vrot.lane.b32.xlu1 %v7536_v16, %s5759_s0  ;;  %v5525_v16 = vpop.eup %5524 }
0x1085   :  { %3756 = vrot.lane.b32.xlu0 %v7542_v57, %s5759_s0  ;;  %v5527_v63 = vpop.eup %5526 }
0x1086   :  { %v5529_v7 = vpop.eup %5528 }
0x1087   :  { %v5531_v57 = vpop.eup %5530 }
0x1088   :  { %3758 = vrot.lane.b32.xlu1 %v7552_v46, %s5759_s0 }
0x1089   :  { %3760 = vrot.lane.b32.xlu0 %v7548_v48, %s5759_s0  ;;  %v5533_v48 = vpop.eup %5532 }
0x108a   :  { %v5535_v46 = vpop.eup %5534 }
0x108c   :  { %3708 = vrot.lane.b32.xlu1 %v5521_v39, %s5757_s27 }
0x108d   :  { %3710 = vrot.lane.b32.xlu0 %v5523_v3, %s5757_s27 }
0x1090   :  { %3706 = vrot.lane.b32.xlu1 %v5525_v16, %s5757_s27 }
0x1091   :  { %3712 = vrot.lane.b32.xlu0 %v5527_v63, %s5757_s27 }
0x1094   :  { %3714 = vrot.lane.b32.xlu1 %v5529_v7, %s5757_s27 }
0x1095   :  { %3716 = vrot.lane.b32.xlu0 %v5531_v57, %s5757_s27 }
0x1098   :  { %3718 = vrot.lane.b32.xlu1 %v5533_v48, %s5757_s27 }
0x1099   :  { %3720 = vrot.lane.b32.xlu0 %v5535_v46, %s5757_s27 }
0x10de   :  { %v3547_v24 = vpop.permute.xlu1 %3546 }
0x10df   :  { %v3570_v8 = vadd.f32 %v3547_v24, %v7413_v19  ;;  %v3551_v31 = vpop.permute.xlu0 %3550 }
0x10e0   :  { %v3572_v34 = vadd.f32 %v3551_v31, %v7417_v54 }
0x10e1   :  { %v7680_v62 = vmax.f32 %v7598_v29, %v3570_v8 }
0x10e2   :  { %v3549_v51 = vpop.permute.xlu1 %3548  ;;  %v7684_v56 = vmax.f32 %v7604_v21, %v3572_v34 }
0x10e3   :  { %v3571_v25 = vadd.f32 %v3549_v51, %v7427_v26  ;;  %v3553_v15 = vpop.permute.xlu0 %3552  ;;  %v3634_v4 = vsub.f32 %v7598_v29, %v7680_v62  ;;  %v3658_v54 = vsub.f32 %v3570_v8, %v7680_v62 }
0x10e4   :  { %v3573_v22 = vadd.f32 %v3553_v15, %v7423_v1  ;;  %v3660_v6 = vsub.f32 %v3572_v34, %v7684_v56  ;;  %v3636_v50 = vsub.f32 %v7604_v21, %v7684_v56 }
0x10e5   :  { %v7694_v52 = vmax.f32 %v7601_v43, %v3571_v25  ;;  %v3642_v14 = vmul.f32 1.442695, %v3634_v4 }
0x10e6   :  { %v7690_v19 = vmax.f32 %v7607_v59, %v3573_v22  ;;  %v3555_v0 = vpop.permute.xlu1 %3554  ;;  %v3670_v23 = vmul.f32 1.442695, %v3660_v6  ;;  %v3646_v41 = vmul.f32 1.442695, %v3636_v50 }
0x10e7   :  { %v3574_v26 = vadd.f32 %v3555_v0, %v7434_v33  ;;  %v3557_v28 = vpop.permute.xlu0 %3556  ;;  %v3666_v33 = vmul.f32 1.442695, %v3658_v54  ;;  %v3635_v20 = vsub.f32 %v7601_v43, %v7694_v52  ;;  %5536 = vpow2.f32 %v3642_v14 }
0x10e8   :  { %v3661_v38 = vsub.f32 %v3573_v22, %v7690_v19  ;;  %v3575_v1 = vadd.f32 %v3557_v28, %v7439_v32  ;;  %v3637_v27 = vsub.f32 %v7607_v59, %v7690_v19  ;;  %v3659_v44 = vsub.f32 %v3571_v25, %v7694_v52 }
0x10e9   :  { %v7701_v36 = vmax.f32 %v7610_v30, %v3574_v26 }
0x10ea   :  { %v3672_v18 = vmul.f32 1.442695, %v3661_v38  ;;  %v7706_v35 = vmax.f32 %v7616_v55, %v3575_v1  ;;  %v3559_v53 = vpop.permute.xlu1 %3558  ;;  %v3648_v57 = vmul.f32 1.442695, %v3637_v27  ;;  %v3668_v48 = vmul.f32 1.442695, %v3659_v44 }
0x10eb   :  { %v3662_v37 = vsub.f32 %v3574_v26, %v7701_v36  ;;  %v3576_v32 = vadd.f32 %v3559_v53, %v7458_v9  ;;  %v3561_v12 = vpop.permute.xlu0 %3560  ;;  %v3644_v9 = vmul.f32 1.442695, %v3635_v20  ;;  %v3638_v63 = vsub.f32 %v7610_v30, %v7701_v36 }
0x10ec   :  { %v3577_v17 = vadd.f32 %v3561_v12, %v7451_v13  ;;  %5538 = vpow2.f32 %v3672_v18  ;;  %v3663_v39 = vsub.f32 %v3575_v1, %v7706_v35  ;;  %v3639_v25 = vsub.f32 %v7616_v55, %v7706_v35 }
0x10ed   :  { %v3674_v2 = vmul.f32 1.442695, %v3662_v37  ;;  %5540 = vpow2.f32 %v3666_v33  ;;  %v7725_v13 = vmax.f32 %v7620_v10, %v3576_v32  ;;  %v3650_v31 = vmul.f32 1.442695, %v3638_v63 }
0x10ee   :  { %v7718_v3 = vmax.f32 %v7623_v45, %v3577_v17  ;;  %v7720_v16 = vpop.permute.xlu1 %3748  ;;  %5542 = vpow2.f32 %v3670_v23  ;;  %v3676_v46 = vmul.f32 1.442695, %v3663_v39  ;;  %v3652_v28 = vmul.f32 1.442695, %v3639_v25 }
0x10ef   :  { %v7727_v7 = vpop.permute.xlu0 %3750  ;;  %5544 = vpow2.f32 %v3674_v2  ;;  %v3664_v34 = vsub.f32 %v3576_v32, %v7725_v13  ;;  %v3640_v15 = vsub.f32 %v7620_v10, %v7725_v13 }
0x10f0   :  { %5546 = vpow2.f32 %v3646_v41  ;;  %v3665_v24 = vsub.f32 %v3577_v17, %v7718_v3  ;;  %v3641_v54 = vsub.f32 %v7623_v45, %v7718_v3 }
0x10f1   :  { %5548 = vpow2.f32 %v3644_v9  ;;  %v3678_v0 = vmul.f32 1.442695, %v3664_v34  ;;  %v3654_v6 = vmul.f32 1.442695, %v3640_v15 }
0x10f2   :  { %v3747_v8 = vpop.permute.xlu1 %3746  ;;  %5550 = vpow2.f32 %v3648_v57  ;;  %v3680_v22 = vmul.f32 1.442695, %v3665_v24  ;;  %v3656_v50 = vmul.f32 1.442695, %v3641_v54 }
0x10f3   :  { %v3753_v51 = vpop.permute.xlu0 %3752  ;;  %5552 = vpow2.f32 %v3668_v48 }
0x10f4   :  { %5554 = vpow2.f32 %v3676_v46  ;;  %v5537_v38 = vpop.eup %5536 }
0x10f5   :  { %5556 = vpow2.f32 %v3650_v31 }
0x10f6   :  { %v3755_v4 = vpop.permute.xlu1 %3754  ;;  %5558 = vpow2.f32 %v3680_v22 }
0x10f7   :  { %v3757_v26 = vpop.permute.xlu0 %3756  ;;  %5560 = vpow2.f32 %v3678_v0 }
0x10f8   :  { %5562 = vpow2.f32 %v3652_v28 }
0x10f9   :  { %v5539_v14 = vpop.eup %5538  ;;  %5564 = vpow2.f32 %v3654_v6 }
0x10fa   :  { %v7737_v1 = vpop.permute.xlu1 %3758  ;;  %v5541_v53 = vpop.eup %5540  ;;  %v3773_v37 = vmul.f32 %v5539_v14, %v3753_v51  ;;  %5566 = vpow2.f32 %v3656_v50  ;;  %v3685_v15 = vmul.f32 %v5539_v14, %v7482_v47 }
0x10fb   :  { %v3761_v18 = vpop.permute.xlu0 %3760  ;;  %v5543_v33 = vpop.eup %5542  ;;  %v3770_v17 = vmul.f32 %v5541_v53, %v3747_v8  ;;  %v3682_v24 = vmul.f32 %v5541_v53, %v7480_v49 }
0x10fc   :  { %v5545_v20 = vpop.eup %5544  ;;  %v3684_v44 = vmul.f32 %v5543_v33, %v7473_v61 }
0x10fd   :  { %v5547_v12 = vpop.eup %5546  ;;  %v3774_v39 = vmul.f32 %v5545_v20, %v3755_v4  ;;  %v3778_v25 = vadd.f32 %v5537_v38, %v3770_v17  ;;  %v3686_v53 = vmul.f32 %v5545_v20, %v7493_v60 }
0x10fe   :  { %v3709_v32 = vpop.permute.xlu1 %3708  ;;  %v5549_v27 = vpop.eup %5548 }
0x10ff   :  { %v3711_v23 = vpop.permute.xlu0 %3710  ;;  %v5551_v41 = vpop.eup %5550  ;;  %v3731_v4 = vmul.f32 %v5549_v27, %v3709_v32 }
0x1100   :  { %v3732_v2 = vmul.f32 %v5547_v12, %v3711_v23  ;;  %v5553_v9 = vpop.eup %5552  ;;  %v3781_v63 = vadd.f32 %v5551_v41, %v3773_v37 }
0x1101   :  { %v5555_v46 = vpop.eup %5554  ;;  %v3771_v61 = vmul.f32 %v5553_v9, %v7720_v16  ;;  %v3772_v16 = vmul.f32 %v5543_v33, %v7727_v7 }
0x1102   :  { %v7740_v57 = vadd.f32 %v3732_v2, %v3684_v44  ;;  %v3707_v48 = vpop.permute.xlu1 %3706  ;;  %v5557_v51 = vpop.eup %5556  ;;  %5568 = vrcp.f32 %v3781_v63  ;;  %v3775_v54 = vmul.f32 %v5555_v46, %v3757_v26 }
0x1103   :  { %v3730_v31 = vmul.f32 %v5537_v38, %v3707_v48  ;;  %v3713_v34 = vpop.permute.xlu0 %3712  ;;  %v3782_v22 = vadd.f32 %v5557_v51, %v3774_v39  ;;  %v5559_v6 = vpop.eup %5558  ;;  %v3683_v38 = vmul.f32 %v5553_v9, %v7491_v40  ;;  %5570 = vrcp.f32 %v3778_v25 }
0x1104   :  { %v3733_v8 = vmul.f32 %v5551_v41, %v3713_v34  ;;  %3798 = vrot.lane.b32.xlu0 %v7740_v57, %s5758_s28  ;;  %v5561_v14 = vpop.eup %5560  ;;  %v3779_v37 = vadd.f32 %v5549_v27, %v3771_v61  ;;  %v3777_v17 = vmul.f32 %v5559_v6, %v3761_v18  ;;  %v3780_v39 = vadd.f32 %v5547_v12, %v3772_v16 }
0x1105   :  { %v7747_v0 = vadd.f32 %v3730_v31, %v3682_v24  ;;  %v5563_v26 = vpop.eup %5562  ;;  %5572 = vrcp.f32 %v3782_v22  ;;  %v7758_v32 = vadd.f32 %v3731_v4, %v3683_v38  ;;  %v3688_v7 = vmul.f32 %v5561_v14, %v7502_v5 }
0x1106   :  { %v7749_v28 = vadd.f32 %v3733_v8, %v3685_v15  ;;  %v3715_v49 = vpop.permute.xlu1 %3714  ;;  %v5565_v40 = vpop.eup %5564  ;;  %v3783_v23 = vadd.f32 %v5563_v26, %v3775_v54  ;;  %v3687_v27 = vmul.f32 %v5555_v46, %v7504_v11  ;;  %5574 = vrcp.f32 %v3779_v37 }
0x1107   :  { %v3734_v50 = vmul.f32 %v5557_v51, %v3715_v49  ;;  %3794 = vrot.lane.b32.xlu1 %v7747_v0, %s5758_s28  ;;  %v3717_v47 = vpop.permute.xlu0 %3716  ;;  %v5567_v20 = vpop.eup %5566  ;;  %v3776_v18 = vmul.f32 %v5561_v14, %v7737_v1  ;;  %v3689_v24 = vmul.f32 %v5559_v6, %v7511_v42  ;;  %v4596_v8 = vmul.f32 -1.442695, %v7601_v43 }
0x1108   :  { %3800 = vrot.lane.b32.xlu0 %v7749_v28, %s5758_s28  ;;  %v3735_v2 = vmul.f32 %v5563_v26, %v3717_v47  ;;  %5576 = vrcp.f32 %v3783_v23  ;;  %v3785_v5 = vadd.f32 %v5567_v20, %v3777_v17  ;;  %v4597_v61 = vmul.f32 -1.442695, %v7604_v21 }
0x1109   :  { %v7760_v44 = vadd.f32 %v3734_v50, %v3686_v53  ;;  %5578 = vrcp.f32 %v3780_v39  ;;  %v3784_v11 = vadd.f32 %v5565_v40, %v3776_v18  ;;  %v4595_v22 = vmul.f32 -1.442695, %v7598_v29 }
0x110a   :  { %v3719_v41 = vpop.permute.xlu1 %3718  ;;  %v7771_v48 = vadd.f32 %v3735_v2, %v3687_v27  ;;  %5580 = vrcp.f32 %v3785_v5  ;;  %v4598_v4 = vmul.f32 -1.442695, %v7607_v59  ;;  %v4599_v54 = vmul.f32 -1.442695, %v7610_v30 }
0x110b   :  { %v3736_v33 = vmul.f32 %v5565_v40, %v3719_v41  ;;  %3796 = vrot.lane.b32.xlu1 %v7758_v32, %s5758_s28  ;;  %v3721_v60 = vpop.permute.xlu0 %3720  ;;  %5582 = vrcp.f32 %v3784_v11  ;;  %v4600_v49 = vmul.f32 -1.442695, %v7616_v55  ;;  %v4602_v6 = vmul.f32 -1.442695, %v7623_v45 }
0x110c   :  { %3802 = vrot.lane.b32.xlu0 %v7760_v44, %s5758_s28  ;;  %v3737_v63 = vmul.f32 %v5567_v20, %v3721_v60  ;;  %5584 = vpow2.f32 %v4596_v8  ;;  %v4601_v38 = vmul.f32 -1.442695, %v7620_v10 }
0x110d   :  { %v7769_v9 = vadd.f32 %v3736_v33, %v3688_v7  ;;  %5586 = vpow2.f32 %v4597_v61 }
0x110e   :  { %v7778_v12 = vadd.f32 %v3737_v63, %v3689_v24  ;;  %5588 = vpow2.f32 %v4595_v22 }
0x110f   :  { %3806 = vrot.lane.b32.xlu1 %v7769_v9, %s5758_s28  ;;  %v5569_v1 = vpop.eup %5568  ;;  %5590 = vpow2.f32 %v4598_v4 }
0x1110   :  { %3804 = vrot.lane.b32.xlu0 %v7771_v48, %s5758_s28  ;;  %v5571_v46 = vpop.eup %5570  ;;  %5592 = vpow2.f32 %v4599_v54 }
0x1111   :  { %5594 = vpow2.f32 %v4600_v49 }
0x1112   :  { %v5573_v42 = vpop.eup %5572  ;;  %5596 = vpow2.f32 %v4602_v6 }
0x1113   :  { %3808 = vrot.lane.b32.xlu1 %v7778_v12, %s5758_s28  ;;  %v5575_v31 = vpop.eup %5574  ;;  %5598 = vpow2.f32 %v4601_v38 }
0x1114   :  { %3848 = vrot.lane.b32.xlu0 %v5569_v1, %s5758_s28 }
0x1115   :  { %v5577_v34 = vpop.eup %5576 }
0x1116   :  { %v5579_v51 = vpop.eup %5578 }
0x1117   :  { %3842 = vrot.lane.b32.xlu1 %v5571_v46, %s5758_s28  ;;  %v5581_v25 = vpop.eup %5580 }
0x1118   :  { %3850 = vrot.lane.b32.xlu0 %v5573_v42, %s5758_s28  ;;  %v5583_v15 = vpop.eup %5582 }
0x1119   :  { %v5585_v29 = vpop.eup %5584 }
0x111a   :  { %v5587_v21 = vpop.eup %5586  ;;  %v3611_v14 = vadd.f32 1.0, %v5585_v29 }
0x111b   :  { %3844 = vrot.lane.b32.xlu1 %v5575_v31, %s5758_s28  ;;  %v5589_v59 = vpop.eup %5588  ;;  %v3612_v55 = vadd.f32 1.0, %v5587_v21 }
0x111c   :  { %3852 = vrot.lane.b32.xlu0 %v5577_v34, %s5758_s28  ;;  %v5591_v47 = vpop.eup %5590  ;;  %v3610_v26 = vadd.f32 1.0, %v5589_v59  ;;  %5600 = vrcp.f32 %v3611_v14 }
0x111d   :  { %v5593_v16 = vpop.eup %5592  ;;  %v3613_v37 = vadd.f32 1.0, %v5591_v47  ;;  %5602 = vrcp.f32 %v3612_v55 }
0x111e   :  { %v5595_v53 = vpop.eup %5594  ;;  %v3614_v10 = vadd.f32 1.0, %v5593_v16  ;;  %5604 = vrcp.f32 %v3610_v26 }
0x111f   :  { %3846 = vrot.lane.b32.xlu1 %v5579_v51, %s5758_s28  ;;  %v5597_v40 = vpop.eup %5596  ;;  %v3615_v2 = vadd.f32 1.0, %v5595_v53  ;;  %5606 = vrcp.f32 %v3613_v37 }
0x1120   :  { %3856 = vrot.lane.b32.xlu0 %v5581_v25, %s5758_s28  ;;  %v5599_v17 = vpop.eup %5598  ;;  %v3617_v7 = vadd.f32 1.0, %v5597_v40  ;;  %5608 = vrcp.f32 %v3614_v10 }
0x1121   :  { %v3616_v33 = vadd.f32 1.0, %v5599_v17  ;;  %5610 = vrcp.f32 %v3615_v2 }
0x1122   :  { %5612 = vrcp.f32 %v3617_v7 }
0x1123   :  { %3854 = vrot.lane.b32.xlu1 %v5583_v15, %s5758_s28  ;;  %5614 = vrcp.f32 %v3616_v33 }
0x1129   :  { %v5601_v63 = vpop.eup %5600 }
0x112a   :  { %v5603_v5 = vpop.eup %5602 }
0x112b   :  { %v5605_v11 = vpop.eup %5604 }
0x112c   :  { %v5607_v46 = vpop.eup %5606 }
0x112d   :  { %v5609_v34 = vpop.eup %5608 }
0x112e   :  { %v5611_v25 = vpop.eup %5610 }
0x112f   :  { %v5613_v6 = vpop.eup %5612 }
0x1130   :  { %v5615_v59 = vpop.eup %5614 }
0x1176   :  { %v3799_v43 = vpop.permute.xlu0 %3798 }
0x1177   :  { %v3820_v15 = vmul.f32 %v5603_v5, %v3799_v43  ;;  %v3976_v5 = vld [vmem:[%s8062_s1 + $0x1f] sm:$0x1] }
0x1179   :  { %v3795_v50 = vpop.permute.xlu1 %3794 }
0x117a   :  { %v3801_v30 = vpop.permute.xlu0 %3800  ;;  %v3818_v61 = vmul.f32 %v5605_v11, %v3795_v50 }
0x117b   :  { %v3821_v51 = vmul.f32 %v5607_v46, %v3801_v30 }
0x117d   :  { %v3797_v45 = vpop.permute.xlu1 %3796 }
0x117e   :  { %v3803_v23 = vpop.permute.xlu0 %3802  ;;  %v3819_v24 = vmul.f32 %v5601_v63, %v3797_v45  ;;  %v3975_v63 = vld [vmem:[%s8062_s1 + $0x17] sm:$0x1] }
0x117f   :  { %v3822_v8 = vmul.f32 %v5609_v34, %v3803_v23  ;;  %v3978_v34 = vld [vmem:[%s8062_s1 + $0x2f] sm:$0x1] }
0x1181   :  { %v3807_v41 = vpop.permute.xlu1 %3806 }
0x1182   :  { %v3805_v60 = vpop.permute.xlu0 %3804  ;;  %v3824_v43 = vmul.f32 %v5615_v59, %v3807_v41  ;;  %v3980_v59 = vld [vmem:[%s8062_s1 + $0x3f] sm:$0x1] }
0x1183   :  { %v3823_v22 = vmul.f32 %v5611_v25, %v3805_v60 }
0x1185   :  { %v3809_v20 = vpop.permute.xlu1 %3808 }
0x1186   :  { %v3849_v39 = vpop.permute.xlu0 %3848  ;;  %v3825_v47 = vmul.f32 %v5613_v6, %v3809_v20 }
0x1187   :  { %v7800_v4 = vmul.f32 %v3849_v39, %v3821_v51  ;;  %v3973_v39 = vld [vmem:[%s8062_s1 + $0x7] sm:$0x1] }
0x1189   :  { %v3843_v27 = vpop.permute.xlu1 %3842  ;;  %v3886_v16 = vrot.slane %v7800_v4, 5 }
0x118a   :  { %v3851_v18 = vpop.permute.xlu0 %3850  ;;  %v7807_v14 = vmul.f32 %v3843_v27, %v3818_v61  ;;  %v3974_v27 = vld [vmem:[%s8062_s1 + $0xf] sm:$0x1] }
0x118b   :  { %v7803_v38 = vmul.f32 %v3851_v18, %v3822_v8 }
0x118d   :  { %v3845_v1 = vpop.permute.xlu1 %3844  ;;  %v3888_v37 = vrot.slane %v7803_v38, 4 }
0x118e   :  { %v7798_v42 = vmul.f32 %v3845_v1, %v3819_v24  ;;  %v3853_v31 = vpop.permute.xlu0 %3852  ;;  %v3977_v24 = vld [vmem:[%s8062_s1 + $0x27] sm:$0x1] }
0x118f   :  { %v7809_v30 = vmul.f32 %v3853_v31, %v3823_v22  ;;  %v3979_v22 = vld [vmem:[%s8062_s1 + $0x37] sm:$0x1] }
0x1190   :  { %v3882_v54 = vrot.slane %v7798_v42, 7 }
0x1191   :  { %v3847_v49 = vpop.permute.xlu1 %3846  ;;  %v3890_v10 = vrot.slane %v7809_v30, 3 }
0x1192   :  { %v7805_v29 = vmul.f32 %v3847_v49, %v3820_v15  ;;  %v3857_v21 = vpop.permute.xlu0 %3856  ;;  %v3883_v55 = vsel %vm249_vm2, %v3882_v54, %v7807_v14 }
0x1193   :  { %v7815_v53 = vmul.f32 %v3857_v21, %v3825_v47 }
0x1194   :  { %v3884_v50 = vrot.slane %v7805_v29, 6 }
0x1195   :  { %v3855_v26 = vpop.permute.xlu1 %3854  ;;  %v3894_v41 = vrot.slane %v7815_v53, 1 }
0x1196   :  { %v3885_v45 = vsel %vm252_vm3, %v3884_v50, %v3883_v55  ;;  %v7819_v40 = vmul.f32 %v3855_v26, %v3824_v43 }
0x1197   :  { %v3887_v23 = vsel %vm255_vm4, %v3886_v16, %v3885_v45 }
0x1198   :  { %v3892_v17 = vrot.slane %v7819_v40, 2  ;;  %v3889_v2 = vsel %vm258_vm5, %v3888_v37, %v3887_v23 }
0x1199   :  { %v3891_v7 = vsel %vm261_vm6, %v3890_v10, %v3889_v2 }
0x119a   :  { %v3893_v33 = vsel %vm264_vm7, %v3892_v17, %v3891_v7 }
0x119b   :  { %v3895_v60 = vsel %vm267_vm8, %v3894_v41, %v3893_v33 }
0x119c   :  { %3896 = vrot.lane.b32.xlu1 %v3895_v60, %s5759_s0 }
0x120e   :  { %v3897_v20 = vpop.permute.xlu1 %3896 }
0x120f   :  { %4603 = vst.msk [vmem:[%s8065_s5 + $0x30] sm:$0xff] %vm29_vm0, %v3897_v20  ;;  %4741 = vmatmul.mubr.msk.f32.vlgmr.msra.gmra.mxu1 %vm29_vm0, %v3897_v20 }
0x12cf   :  { %v3969_v18 = vpop.f32.mrf.mxu1 }
0x12d0   :  { %v3982_v11 = vrot.slane %v3969_v18, 1  ;;  %v3983_v1 = vrot.slane %v3969_v18, 2  ;;  %v3984_v46 = vrot.slane %v3969_v18, 3  ;;  %v3985_v31 = vrot.slane %v3969_v18, 4 }
0x12d1   :  { %v3986_v51 = vrot.slane %v3969_v18, 5  ;;  %v3987_v25 = vrot.slane %v3969_v18, 6  ;;  %v3988_v15 = vrot.slane %v3969_v18, 7  ;;  %v3997_v8 = vadd.f32 %v3973_v39, %v3969_v18  ;;  %v4742_v61 = vpop.f32.mrf.mxu1 }
0x12d2   :  { %v3998_v54 = vadd.f32 %v3982_v11, %v3974_v27  ;;  %v3999_v49 = vadd.f32 %v3983_v1, %v3975_v63  ;;  %v4000_v6 = vadd.f32 %v3984_v46, %v3976_v5  ;;  %v4001_v21 = vadd.f32 %v3985_v31, %v3977_v24 }
0x12d3   :  { %v7860_v47 = vadd.f32 %v7595_v58, %v3997_v8  ;;  %v4002_v43 = vadd.f32 %v3986_v51, %v3978_v34  ;;  %v4003_v26 = vadd.f32 %v3987_v25, %v3979_v22  ;;  %v4004_v37 = vadd.f32 %v3988_v15, %v3980_v59 }
0x12d4   :  { %v7863_v50 = vadd.f32 %v7595_v58, %v3998_v54  ;;  %v7866_v16 = vadd.f32 %v7595_v58, %v3999_v49  ;;  %v7869_v55 = vadd.f32 %v7595_v58, %v4000_v6  ;;  %v7872_v45 = vadd.f32 %v7595_v58, %v4001_v21 }
0x12d5   :  { %v4021_v10 = vand.u32 2147483647, %v7860_v47  ;;  %v7878_v2 = vadd.f32 %v7595_v58, %v4002_v43  ;;  %v7882_v33 = vadd.f32 %v7595_v58, %v4003_v26  ;;  %v7885_v39 = vadd.f32 %v7595_v58, %v4004_v37 }
0x12d6   :  { %v4023_v23 = vand.u32 2147483647, %v7866_v16  ;;  %v4022_v17 = vand.u32 2147483647, %v7863_v50  ;;  %v4024_v7 = vand.u32 2147483647, %v7869_v55 }
0x12d7   :  { %v4029_v41 = vsub.f32 0.0, %v4021_v10  ;;  %v4025_v63 = vand.u32 2147483647, %v7872_v45  ;;  %v4026_v46 = vand.u32 2147483647, %v7878_v2 }
0x12d8   :  { %v4031_v60 = vsub.f32 0.0, %v4023_v23  ;;  %v4030_v20 = vsub.f32 0.0, %v4022_v17  ;;  %v4032_v18 = vsub.f32 0.0, %v4024_v7  ;;  %v4027_v31 = vand.u32 2147483647, %v7882_v33 }
0x12d9   :  { %v4037_v27 = vmul.f32 1.442695, %v4029_v41  ;;  %v4033_v1 = vsub.f32 0.0, %v4025_v63  ;;  %v4034_v51 = vsub.f32 0.0, %v4026_v46  ;;  %v4028_v25 = vand.u32 2147483647, %v7885_v39 }
0x12da   :  { %v4041_v5 = vmul.f32 1.442695, %v4031_v60  ;;  %v4039_v24 = vmul.f32 1.442695, %v4030_v20  ;;  %v4043_v11 = vmul.f32 1.442695, %v4032_v18 }
0x12db   :  { %5616 = vpow2.f32 %v4037_v27  ;;  %v4045_v34 = vmul.f32 1.442695, %v4033_v1  ;;  %v4035_v58 = vsub.f32 0.0, %v4027_v31  ;;  %v4047_v15 = vmul.f32 1.442695, %v4034_v51 }
0x12dc   :  { %5618 = vpow2.f32 %v4041_v5  ;;  %v4036_v8 = vsub.f32 0.0, %v4028_v25  ;;  %v4013_v5 = vmin.f32 %v7860_v47, 0.0  ;;  %v4015_v1 = vmin.f32 %v7866_v16, 0.0 }
0x12dd   :  { %5620 = vpow2.f32 %v4039_v24  ;;  %v4049_v61 = vmul.f32 1.442695, %v4035_v58 }
0x12de   :  { %5622 = vpow2.f32 %v4043_v11  ;;  %v4051_v22 = vmul.f32 1.442695, %v4036_v8 }
0x12df   :  { %5624 = vpow2.f32 %v4045_v34 }
0x12e0   :  { %5626 = vpow2.f32 %v4047_v15 }
0x12e1   :  { %5628 = vpow2.f32 %v4049_v61  ;;  %v4014_v61 = vmin.f32 %v7863_v50, 0.0 }
0x12e2   :  { %5630 = vpow2.f32 %v4051_v22  ;;  %v4016_v22 = vmin.f32 %v7869_v55, 0.0 }
0x12e8   :  { %v5617_v54 = vpop.eup %5616 }
0x12e9   :  { %v5619_v49 = vpop.eup %5618  ;;  %v4053_v6 = vadd.f32 1.0, %v5617_v54 }
0x12ea   :  { %v5621_v21 = vpop.eup %5620  ;;  %v4055_v59 = vadd.f32 1.0, %v5619_v49 }
0x12eb   :  { %v5623_v43 = vpop.eup %5622  ;;  %5632 = vlog2.f32 %v4053_v6  ;;  %v4054_v26 = vadd.f32 1.0, %v5621_v21 }
0x12ec   :  { %v5625_v37 = vpop.eup %5624  ;;  %5634 = vlog2.f32 %v4055_v59  ;;  %v4056_v10 = vadd.f32 1.0, %v5623_v43 }
0x12ed   :  { %v5627_v23 = vpop.eup %5626  ;;  %5636 = vlog2.f32 %v4054_v26  ;;  %v4057_v17 = vadd.f32 1.0, %v5625_v37  ;;  %v4017_v26 = vmin.f32 %v7872_v45, 0.0  ;;  %v4018_v37 = vmin.f32 %v7878_v2, 0.0 }
0x12ee   :  { %v5629_v41 = vpop.eup %5628  ;;  %5638 = vlog2.f32 %v4056_v10  ;;  %v4058_v7 = vadd.f32 1.0, %v5627_v23 }
0x12ef   :  { %v5631_v60 = vpop.eup %5630  ;;  %5640 = vlog2.f32 %v4057_v17  ;;  %v4059_v20 = vadd.f32 1.0, %v5629_v41 }
0x12f0   :  { %5642 = vlog2.f32 %v4058_v7  ;;  %v4060_v27 = vadd.f32 1.0, %v5631_v60  ;;  %v4019_v7 = vmin.f32 %v7882_v33, 0.0  ;;  %v4020_v60 = vmin.f32 %v7885_v39, 0.0 }
0x12f1   :  { %5644 = vlog2.f32 %v4059_v20 }
0x12f2   :  { %5646 = vlog2.f32 %v4060_v27 }
0x12f3   :  { %5648 = vtanh.f32 %v7863_v50 }
0x12f4   :  { %5650 = vtanh.f32 %v7866_v16 }
0x12f5   :  { %5652 = vtanh.f32 %v7860_v47 }
0x12f6   :  { %5654 = vtanh.f32 %v7869_v55 }
0x12f7   :  { %5656 = vtanh.f32 %v7872_v45 }
0x12f8   :  { %v5633_v18 = vpop.eup %5632  ;;  %5658 = vtanh.f32 %v7878_v2 }
0x12f9   :  { %v5635_v63 = vpop.eup %5634  ;;  %v4062_v24 = vmul.f32 0.6931472, %v5633_v18  ;;  %5660 = vtanh.f32 %v7882_v33 }
0x12fa   :  { %v5637_v11 = vpop.eup %5636  ;;  %v4066_v46 = vmul.f32 0.6931472, %v5635_v63  ;;  %5662 = vtanh.f32 %v7885_v39 }
0x12fb   :  { %v5639_v31 = vpop.eup %5638  ;;  %v4077_v34 = vsub.f32 %v4013_v5, %v4062_v24  ;;  %v4064_v51 = vmul.f32 0.6931472, %v5637_v11 }
0x12fc   :  { %v5641_v25 = vpop.eup %5640  ;;  %v4079_v58 = vsub.f32 %v4015_v1, %v4066_v46  ;;  %v4068_v15 = vmul.f32 0.6931472, %v5639_v31 }
0x12fd   :  { %v5643_v8 = vpop.eup %5642  ;;  %4093 = vrot.lane.b32.xlu0 %v4077_v34, %s5758_s28  ;;  %v4078_v54 = vsub.f32 %v4014_v61, %v4064_v51  ;;  %v4070_v49 = vmul.f32 0.6931472, %v5641_v25 }
0x12fe   :  { %4097 = vrot.lane.b32.xlu1 %v4079_v58, %s5758_s28  ;;  %v5645_v6 = vpop.eup %5644  ;;  %v4080_v21 = vsub.f32 %v4016_v22, %v4068_v15  ;;  %v4072_v59 = vmul.f32 0.6931472, %v5643_v8 }
0x12ff   :  { %v5647_v43 = vpop.eup %5646  ;;  %v4081_v10 = vsub.f32 %v4017_v26, %v4070_v49  ;;  %v4074_v23 = vmul.f32 0.6931472, %v5645_v6 }
0x1300   :  { %v4082_v17 = vsub.f32 %v4018_v37, %v4072_v59  ;;  %v4076_v41 = vmul.f32 0.6931472, %v5647_v43 }
0x1301   :  { %4095 = vrot.lane.b32.xlu0 %v4078_v54, %s5758_s28  ;;  %v4083_v20 = vsub.f32 %v4019_v7, %v4074_v23 }
0x1302   :  { %4099 = vrot.lane.b32.xlu1 %v4080_v21, %s5758_s28  ;;  %v4084_v27 = vsub.f32 %v4020_v60, %v4076_v41 }
0x1305   :  { %4101 = vrot.lane.b32.xlu0 %v4081_v10, %s5758_s28 }
0x1306   :  { %4103 = vrot.lane.b32.xlu1 %v4082_v17, %s5758_s28 }
0x1309   :  { %4105 = vrot.lane.b32.xlu0 %v4083_v20, %s5758_s28 }
0x130a   :  { %4107 = vrot.lane.b32.xlu1 %v4084_v27, %s5758_s28 }
0x130d   :  { %4295 = vrot.lane.b32.xlu0 %v7798_v42, %s5759_s0  ;;  %v5649_v42 = vpop.eup %5648 }
0x130e   :  { %4297 = vrot.lane.b32.xlu1 %v7805_v29, %s5759_s0 }
0x1311   :  { %4293 = vrot.lane.b32.xlu0 %v7807_v14, %s5759_s0 }
0x1312   :  { %4299 = vrot.lane.b32.xlu1 %v7800_v4, %s5759_s0  ;;  %v5651_v4 = vpop.eup %5650 }
0x1313   :  { %v5653_v29 = vpop.eup %5652 }
0x1314   :  { %v5655_v14 = vpop.eup %5654 }
0x1315   :  { %4301 = vrot.lane.b32.xlu0 %v7803_v38, %s5759_s0  ;;  %v27_v38 = vld [vmem:[%s8061_s4 + $0x10] sm:$0xff] }
0x1316   :  { %4303 = vrot.lane.b32.xlu1 %v7809_v30, %s5759_s0  ;;  %32 = vst.msk [vmem:[#allocation2 + $0x10] sm:$0xff] %vm29_vm0, %v27_v38  ;;  %v5657_v30 = vpop.eup %5656 }
0x1319   :  { %4305 = vrot.lane.b32.xlu0 %v7819_v40, %s5759_s0 }
0x131a   :  { %4307 = vrot.lane.b32.xlu1 %v7815_v53, %s5759_s0  ;;  %v5659_v53 = vpop.eup %5658 }
0x131b   :  { %v5661_v40 = vpop.eup %5660 }
0x131c   :  { %v5663_v18 = vpop.eup %5662 }
0x131d   :  { %4255 = vrot.lane.b32.xlu0 %v5649_v42, %s5757_s27 }
0x131e   :  { %4257 = vrot.lane.b32.xlu1 %v5651_v4, %s5757_s27 }
0x1321   :  { %4253 = vrot.lane.b32.xlu0 %v5653_v29, %s5757_s27 }
0x1322   :  { %4259 = vrot.lane.b32.xlu1 %v5655_v14, %s5757_s27 }
0x1325   :  { %4261 = vrot.lane.b32.xlu0 %v5657_v30, %s5757_s27 }
0x1326   :  { %4263 = vrot.lane.b32.xlu1 %v5659_v53, %s5757_s27 }
0x1329   :  { %4265 = vrot.lane.b32.xlu0 %v5661_v40, %s5757_s27 }
0x132a   :  { %4267 = vrot.lane.b32.xlu1 %v5663_v18, %s5757_s27 }
0x136f   :  { %v4094_v63 = vpop.permute.xlu0 %4093 }
0x1370   :  { %v4117_v5 = vadd.f32 %v4094_v63, %v7680_v62  ;;  %v4098_v24 = vpop.permute.xlu1 %4097 }
0x1371   :  { %v4119_v11 = vadd.f32 %v4098_v24, %v7684_v56 }
0x1372   :  { %v4125_v1 = vmax.f32 %v7860_v47, %v4117_v5 }
0x1373   :  { %v4127_v46 = vmax.f32 %v7866_v16, %v4119_v11  ;;  %v4096_v31 = vpop.permute.xlu0 %4095 }
0x1374   :  { %v4181_v34 = vsub.f32 %v7860_v47, %v4125_v1  ;;  %v4205_v51 = vsub.f32 %v4117_v5, %v4125_v1  ;;  %v4118_v25 = vadd.f32 %v4096_v31, %v7694_v52  ;;  %v4100_v58 = vpop.permute.xlu1 %4099 }
0x1375   :  { %v4183_v15 = vsub.f32 %v7866_v16, %v4127_v46  ;;  %v4207_v8 = vsub.f32 %v4119_v11, %v4127_v46  ;;  %v4120_v61 = vadd.f32 %v4100_v58, %v7690_v19  ;;  %v4500_v37 = vrot.slane %v4127_v46, 6 }
0x1376   :  { %v4189_v62 = vmul.f32 1.442695, %v4181_v34  ;;  %v4213_v22 = vmul.f32 1.442695, %v4205_v51  ;;  %v4126_v56 = vmax.f32 %v7863_v50, %v4118_v25 }
0x1377   :  { %v4217_v54 = vmul.f32 1.442695, %v4207_v8  ;;  %v4128_v49 = vmax.f32 %v7869_v55, %v4120_v61  ;;  %v4102_v6 = vpop.permute.xlu0 %4101  ;;  %v4193_v21 = vmul.f32 1.442695, %v4183_v15 }
0x1378   :  { %v4182_v59 = vsub.f32 %v7863_v50, %v4126_v56  ;;  %v4206_v43 = vsub.f32 %v4118_v25, %v4126_v56  ;;  %v4498_v26 = vrot.slane %v4126_v56, 7  ;;  %v4104_v52 = vpop.permute.xlu1 %4103  ;;  %5664 = vpow2.f32 %v4189_v62 }
0x1379   :  { %v4184_v10 = vsub.f32 %v7869_v55, %v4128_v49  ;;  %v4208_v23 = vsub.f32 %v4120_v61, %v4128_v49  ;;  %5666 = vpow2.f32 %v4213_v22  ;;  %v4502_v60 = vrot.slane %v4128_v49, 5 }
0x137a   :  { %v4191_v19 = vmul.f32 1.442695, %v4182_v59  ;;  %v4215_v17 = vmul.f32 1.442695, %v4206_v43  ;;  %v4499_v41 = vsel %vm249_vm2, %v4498_v26, %v4125_v1  ;;  %5668 = vpow2.f32 %v4217_v54 }
0x137b   :  { %v4219_v7 = vmul.f32 1.442695, %v4208_v23  ;;  %v4106_v20 = vpop.permute.xlu0 %4105  ;;  %5670 = vpow2.f32 %v4193_v21  ;;  %v4501_v27 = vsel %vm252_vm3, %v4500_v37, %v4499_v41  ;;  %v4121_v42 = vadd.f32 %v4102_v6, %v7701_v36 }
0x137c   :  { %v4122_v4 = vadd.f32 %v4104_v52, %v7706_v35  ;;  %v4108_v38 = vpop.permute.xlu1 %4107  ;;  %5672 = vpow2.f32 %v4215_v17  ;;  %v4195_v29 = vmul.f32 1.442695, %v4184_v10  ;;  %v4123_v14 = vadd.f32 %v4106_v20, %v7725_v13 }
0x137d   :  { %v4124_v30 = vadd.f32 %v4108_v38, %v7718_v3  ;;  %5674 = vpow2.f32 %v4191_v19  ;;  %v4129_v53 = vmax.f32 %v7872_v45, %v4121_v42  ;;  %v4503_v18 = vsel %vm255_vm4, %v4502_v60, %v4501_v27 }
0x137e   :  { %v4130_v40 = vmax.f32 %v7878_v2, %v4122_v4  ;;  %5676 = vpow2.f32 %v4219_v7  ;;  %v4131_v63 = vmax.f32 %v7882_v33, %v4123_v14 }
0x137f   :  { %v4132_v36 = vmax.f32 %v7885_v39, %v4124_v30  ;;  %v4296_v35 = vpop.permute.xlu0 %4295  ;;  %v4185_v5 = vsub.f32 %v7872_v45, %v4129_v53  ;;  %v4209_v24 = vsub.f32 %v4121_v42, %v4129_v53  ;;  %v4504_v11 = vrot.slane %v4129_v53, 4 }
0x1380   :  { %v4186_v13 = vsub.f32 %v7878_v2, %v4130_v40  ;;  %v4298_v3 = vpop.permute.xlu1 %4297  ;;  %5678 = vpow2.f32 %v4195_v29  ;;  %v4210_v1 = vsub.f32 %v4122_v4, %v4130_v40  ;;  %v4506_v46 = vrot.slane %v4130_v40, 3 }
0x1381   :  { %v4211_v31 = vsub.f32 %v4123_v14, %v4131_v63  ;;  %v4197_v34 = vmul.f32 1.442695, %v4185_v5  ;;  %v4221_v51 = vmul.f32 1.442695, %v4209_v24  ;;  %v4505_v25 = vsel %vm258_vm5, %v4504_v11, %v4503_v18 }
0x1382   :  { %v4187_v58 = vsub.f32 %v7882_v33, %v4131_v63  ;;  %v4223_v15 = vmul.f32 1.442695, %v4210_v1  ;;  %v4507_v8 = vsel %vm261_vm6, %v4506_v46, %v4505_v25  ;;  %v4199_v62 = vmul.f32 1.442695, %v4186_v13 }
0x1383   :  { %v4294_v61 = vpop.permute.xlu0 %4293  ;;  %v4508_v22 = vrot.slane %v4131_v63, 2  ;;  %v4212_v56 = vsub.f32 %v4124_v30, %v4132_v36  ;;  %5680 = vpow2.f32 %v4221_v51  ;;  %v4225_v49 = vmul.f32 1.442695, %v4211_v31 }
0x1384   :  { %v4300_v54 = vpop.permute.xlu1 %4299  ;;  %v4510_v6 = vrot.slane %v4132_v36, 1  ;;  %5682 = vpow2.f32 %v4197_v34  ;;  %v4201_v59 = vmul.f32 1.442695, %v4187_v58  ;;  %v4188_v26 = vsub.f32 %v7885_v39, %v4132_v36 }
0x1385   :  { %v5665_v21 = vpop.eup %5664  ;;  %v4509_v43 = vsel %vm264_vm7, %v4508_v22, %v4507_v8  ;;  %5684 = vpow2.f32 %v4223_v15  ;;  %v4227_v37 = vmul.f32 1.442695, %v4212_v56 }
0x1386   :  { %v5667_v52 = vpop.eup %5666  ;;  %v4511_v10 = vsel %vm267_vm8, %v4510_v6, %v4509_v43  ;;  %5686 = vpow2.f32 %v4199_v62  ;;  %v4203_v20 = vmul.f32 1.442695, %v4188_v26 }
0x1387   :  { %v4302_v23 = vpop.permute.xlu0 %4301  ;;  %v5669_v19 = vpop.eup %5668  ;;  %4513 = vst.msk [vmem:[#allocation2 + $0x18] sm:$0xff] %vm29_vm0, %v4511_v10  ;;  %5688 = vpow2.f32 %v4225_v49  ;;  %v4317_v4 = vmul.f32 %v5667_v52, %v4294_v61  ;;  %v4229_v56 = vmul.f32 %v5667_v52, %v7747_v0 }
0x1388   :  { %v4304_v17 = vpop.permute.xlu1 %4303  ;;  %v5671_v41 = vpop.eup %5670  ;;  %v4319_v7 = vmul.f32 %v5669_v19, %v4298_v3  ;;  %5690 = vpow2.f32 %v4201_v59  ;;  %v4231_v31 = vmul.f32 %v5669_v19, %v7740_v57 }
0x1389   :  { %v5673_v60 = vpop.eup %5672  ;;  %5692 = vpow2.f32 %v4227_v37  ;;  %v4325_v5 = vadd.f32 %v5665_v21, %v4317_v4 }
0x138a   :  { %v5675_v27 = vpop.eup %5674  ;;  %v4318_v42 = vmul.f32 %v5673_v60, %v4296_v35  ;;  %v7977_v53 = vadd.f32 %v5671_v41, %v4319_v7  ;;  %5694 = vpow2.f32 %v4203_v20  ;;  %v4230_v13 = vmul.f32 %v5673_v60, %v7758_v32 }
0x138b   :  { %v4306_v38 = vpop.permute.xlu0 %4305  ;;  %v5677_v29 = vpop.eup %5676  ;;  %5696 = vrcp.f32 %v4325_v5 }
0x138c   :  { %v4308_v14 = vpop.permute.xlu1 %4307  ;;  %v7975_v30 = vadd.f32 %v5675_v27, %v4318_v42  ;;  %v4320_v40 = vmul.f32 %v5677_v29, %v4300_v54  ;;  %v4475_v1 = vrot.slane %v7977_v53, 6  ;;  %v4232_v49 = vmul.f32 %v5677_v29, %v7749_v28 }
0x138d   :  { %v5679_v18 = vpop.eup %5678 }
0x138e   :  { %v4520_v63 = vld [vmem:[#allocation2 + $0x18] sm:$0xff]  ;;  %v4473_v36 = vrot.slane %v7975_v30, 7  ;;  %v4328_v24 = vadd.f32 %v5679_v18, %v4320_v40 }
0x138f   :  { %v4256_v11 = vpop.permute.xlu0 %4255  ;;  %4524 = vst.msk [vmem:[%s8066_s6 + $0x18] sm:$0xff] %vm29_vm0, %v4520_v63 }
0x1390   :  { %v4278_v35 = vmul.f32 %v5675_v27, %v4256_v11  ;;  %v4258_v3 = vpop.permute.xlu1 %4257  ;;  %v4474_v46 = vsel %vm249_vm2, %v4473_v36, %v4325_v5  ;;  %v5681_v51 = vpop.eup %5680  ;;  %v4477_v25 = vrot.slane %v4328_v24, 5  ;;  %5698 = vrcp.f32 %v4328_v24 }
0x1391   :  { %v4279_v34 = vmul.f32 %v5671_v41, %v4258_v3  ;;  %v5683_v15 = vpop.eup %5682  ;;  %v4476_v32 = vsel %vm252_vm3, %v4475_v1, %v4474_v46  ;;  %v4321_v8 = vmul.f32 %v5681_v51, %v4302_v23  ;;  %v4233_v41 = vmul.f32 %v5681_v51, %v7760_v44 }
0x1392   :  { %v4286_v58 = vadd.f32 %v4278_v35, %v4230_v13  ;;  %v5685_v22 = vpop.eup %5684  ;;  %v4478_v10 = vsel %vm255_vm4, %v4477_v25, %v4476_v32 }
0x1393   :  { %v4287_v61 = vadd.f32 %v4279_v34, %v4231_v31  ;;  %v4254_v62 = vpop.permute.xlu0 %4253  ;;  %v5687_v59 = vpop.eup %5686  ;;  %v4329_v57 = vadd.f32 %v5683_v15, %v4321_v8  ;;  %v4322_v43 = vmul.f32 %v5685_v22, %v4304_v17  ;;  %v4234_v4 = vmul.f32 %v5685_v22, %v7771_v48 }
0x1394   :  { %v4277_v54 = vmul.f32 %v5665_v21, %v4254_v62  ;;  %v4260_v6 = vpop.permute.xlu1 %4259  ;;  %v5689_v37 = vpop.eup %5688  ;;  %v4449_v23 = vrot.slane %v4286_v58, 7 }
0x1395   :  { %v4280_v26 = vmul.f32 %v5679_v18, %v4260_v6  ;;  %4345 = vrot.lane.b32.xlu1 %v4287_v61, %s5758_s28  ;;  %v5691_v7 = vpop.eup %5690  ;;  %v4479_v0 = vrot.slane %v4329_v57, 4  ;;  %v4330_v21 = vadd.f32 %v5687_v59, %v4322_v43  ;;  %v4323_v52 = vmul.f32 %v5689_v37, %v4306_v38 }
0x1396   :  { %v4285_v19 = vadd.f32 %v4277_v54, %v4229_v56  ;;  %v4451_v28 = vrot.slane %v4287_v61, 6  ;;  %v5693_v20 = vpop.eup %5692  ;;  %5700 = vrcp.f32 %v4329_v57  ;;  %v4235_v5 = vmul.f32 %v5689_v37, %v7769_v9 }
0x1397   :  { %v4262_v60 = vpop.permute.xlu0 %4261  ;;  %v4288_v17 = vadd.f32 %v4280_v26, %v4232_v49  ;;  %v4480_v40 = vsel %vm258_vm5, %v4479_v0, %v4478_v10  ;;  %v4481_v44 = vrot.slane %v4330_v21, 3  ;;  %v4331_v18 = vadd.f32 %v5691_v7, %v4323_v52  ;;  %v5695_v24 = vpop.eup %5694 }
0x1398   :  { %v4450_v27 = vsel %vm249_vm2, %v4449_v23, %v4285_v19  ;;  %v4281_v42 = vmul.f32 %v5683_v15, %v4262_v60  ;;  %4341 = vrot.lane.b32.xlu0 %v4285_v19, %s5758_s28  ;;  %v4264_v29 = vpop.permute.xlu1 %4263  ;;  %v4324_v63 = vmul.f32 %v5693_v20, %v4308_v14  ;;  %v4236_v9 = vmul.f32 %v5693_v20, %v7778_v12  ;;  %v5697_v54 = vpop.eup %5696 }
0x1399   :  { %v4453_v36 = vrot.slane %v4288_v17, 5  ;;  %4347 = vrot.lane.b32.xlu1 %v4288_v17, %s5758_s28  ;;  %v4482_v11 = vsel %vm261_vm6, %v4481_v44, %v4480_v40  ;;  %v4483_v13 = vrot.slane %v4331_v18, 2  ;;  %v4452_v35 = vsel %vm252_vm3, %v4451_v28, %v4450_v27 }
0x139a   :  { %v4289_v38 = vadd.f32 %v4281_v42, %v4233_v41  ;;  %v4282_v48 = vmul.f32 %v5687_v59, %v4264_v29  ;;  %v4332_v1 = vadd.f32 %v5695_v24, %v4324_v63  ;;  %5702 = vrcp.f32 %v7975_v30 }
0x139b   :  { %v4266_v3 = vpop.permute.xlu0 %4265  ;;  %v4454_v46 = vsel %vm255_vm4, %v4453_v36, %v4452_v35  ;;  %v4484_v51 = vsel %vm264_vm7, %v4483_v13, %v4482_v11  ;;  %5704 = vrcp.f32 %v4330_v21  ;;  %v4606_v41 = vmul.f32 -1.442695, %v7863_v50 }
0x139c   :  { %v4455_v31 = vrot.slane %v4289_v38, 4  ;;  %v4283_v34 = vmul.f32 %v5691_v7, %v4266_v3  ;;  %4343 = vrot.lane.b32.xlu0 %v4286_v58, %s5758_s28  ;;  %v4268_v14 = vpop.permute.xlu1 %4267  ;;  %v4290_v25 = vadd.f32 %v4282_v48, %v4234_v4  ;;  %v4485_v32 = vrot.slane %v4332_v1, 1 }
0x139d   :  { %v4284_v15 = vmul.f32 %v5695_v24, %v4268_v14  ;;  %4349 = vrot.lane.b32.xlu1 %v4289_v38, %s5758_s28  ;;  %v5699_v49 = vpop.eup %5698  ;;  %5706 = vrcp.f32 %v7977_v53  ;;  %v4607_v7 = vmul.f32 -1.442695, %v7866_v16  ;;  %v4605_v0 = vmul.f32 -1.442695, %v7860_v47 }
0x139e   :  { %v4456_v8 = vsel %vm258_vm5, %v4455_v31, %v4454_v46  ;;  %v4291_v61 = vadd.f32 %v4283_v34, %v4235_v5  ;;  %v4457_v62 = vrot.slane %v4290_v25, 3  ;;  %v4486_v58 = vsel %vm267_vm8, %v4485_v32, %v4484_v51 }
0x139f   :  { %v4292_v22 = vadd.f32 %v4284_v15, %v4236_v9  ;;  %4489 = vst.msk [vmem:[#allocation2 + $0x10] sm:$0xff] %vm29_vm0, %v4486_v58  ;;  %5708 = vrcp.f32 %v4332_v1  ;;  %v4608_v21 = vmul.f32 -1.442695, %v7869_v55  ;;  %v4609_v52 = vmul.f32 -1.442695, %v7872_v45 }
0x13a0   :  { %v4459_v56 = vrot.slane %v4291_v61, 2  ;;  %4353 = vrot.lane.b32.xlu0 %v4291_v61, %s5758_s28  ;;  %v4458_v12 = vsel %vm261_vm6, %v4457_v62, %v4456_v8  ;;  %5710 = vrcp.f32 %v4331_v18  ;;  %v4610_v28 = vmul.f32 -1.442695, %v7878_v2 }
0x13a1   :  { %v4461_v30 = vrot.slane %v4292_v22, 1  ;;  %4351 = vrot.lane.b32.xlu1 %v4290_v25, %s5758_s28  ;;  %5712 = vpow2.f32 %v4606_v41  ;;  %v4612_v60 = vmul.f32 -1.442695, %v7885_v39  ;;  %v4611_v20 = vmul.f32 -1.442695, %v7882_v33 }
0x13a2   :  { %v4460_v6 = vsel %vm264_vm7, %v4459_v56, %v4458_v12  ;;  %5714 = vpow2.f32 %v4607_v7 }
0x13a3   :  { %v4462_v59 = vsel %vm267_vm8, %v4461_v30, %v4460_v6  ;;  %v5701_v57 = vpop.eup %5700  ;;  %5716 = vpow2.f32 %v4605_v0 }
0x13a4   :  { %4464 = vst.msk [vmem:[#allocation2 + $0x8] sm:$0xff] %vm29_vm0, %v4462_v59  ;;  %4355 = vrot.lane.b32.xlu0 %v4292_v22, %s5758_s28  ;;  %5718 = vpow2.f32 %v4608_v21 }
0x13a5   :  { %4395 = vrot.lane.b32.xlu1 %v5699_v49, %s5758_s28  ;;  %5720 = vpow2.f32 %v4609_v52 }
0x13a6   :  { %v4519_v43 = vld [vmem:[#allocation2 + $0x10] sm:$0xff]  ;;  %5722 = vpow2.f32 %v4610_v28 }
0x13a7   :  { %4523 = vst.msk [vmem:[%s8066_s6 + $0x10] sm:$0xff] %vm29_vm0, %v4519_v43  ;;  %v5703_v53 = vpop.eup %5702  ;;  %5724 = vpow2.f32 %v4612_v60 }
0x13a8   :  { %4389 = vrot.lane.b32.xlu0 %v5697_v54, %s5758_s28  ;;  %v5705_v37 = vpop.eup %5704  ;;  %5726 = vpow2.f32 %v4611_v20 }
0x13a9   :  { %4397 = vrot.lane.b32.xlu1 %v5701_v57, %s5758_s28 }
0x13aa   :  { %v5707_v10 = vpop.eup %5706 }
0x13ab   :  { %v4518_v26 = vld [vmem:[#allocation2 + $0x8] sm:$0xff] }
0x13ac   :  { %4391 = vrot.lane.b32.xlu0 %v5703_v53, %s5758_s28  ;;  %4522 = vst.msk [vmem:[%s8066_s6 + $0x8] sm:$0xff] %vm29_vm0, %v4518_v26  ;;  %v5709_v23 = vpop.eup %5708 }
0x13ad   :  { %4399 = vrot.lane.b32.xlu1 %v5705_v37, %s5758_s28  ;;  %v5711_v19 = vpop.eup %5710 }
0x13ae   :  { %v5713_v47 = vpop.eup %5712 }
0x13af   :  { %v5715_v16 = vpop.eup %5714  ;;  %v4158_v45 = vadd.f32 1.0, %v5713_v47 }
0x13b0   :  { %4393 = vrot.lane.b32.xlu0 %v5707_v10, %s5758_s28  ;;  %v5717_v55 = vpop.eup %5716  ;;  %v4159_v4 = vadd.f32 1.0, %v5715_v16 }
0x13b1   :  { %4403 = vrot.lane.b32.xlu1 %v5709_v23, %s5758_s28  ;;  %v5719_v17 = vpop.eup %5718  ;;  %v4157_v40 = vadd.f32 1.0, %v5717_v55  ;;  %5728 = vrcp.f32 %v4158_v45 }
0x13b2   :  { %v5721_v42 = vpop.eup %5720  ;;  %v4160_v44 = vadd.f32 1.0, %v5719_v17  ;;  %5730 = vrcp.f32 %v4159_v4 }
0x13b3   :  { %v5723_v29 = vpop.eup %5722  ;;  %v4161_v33 = vadd.f32 1.0, %v5721_v42  ;;  %5732 = vrcp.f32 %v4157_v40 }
0x13b4   :  { %4401 = vrot.lane.b32.xlu0 %v5711_v19, %s5758_s28  ;;  %v5725_v18 = vpop.eup %5724  ;;  %v4162_v38 = vadd.f32 1.0, %v5723_v29  ;;  %5734 = vrcp.f32 %v4160_v44 }
0x13b5   :  { %v5727_v63 = vpop.eup %5726  ;;  %v4164_v24 = vadd.f32 1.0, %v5725_v18  ;;  %5736 = vrcp.f32 %v4161_v33 }
0x13b6   :  { %v4163_v11 = vadd.f32 1.0, %v5727_v63  ;;  %5738 = vrcp.f32 %v4162_v38 }
0x13b7   :  { %5740 = vrcp.f32 %v4164_v24 }
0x13b8   :  { %5742 = vrcp.f32 %v4163_v11 }
0x13be   :  { %v5729_v1 = vpop.eup %5728 }
0x13bf   :  { %v5731_v31 = vpop.eup %5730 }
0x13c0   :  { %v5733_v14 = vpop.eup %5732 }
0x13c1   :  { %v5735_v25 = vpop.eup %5734 }
0x13c2   :  { %v5737_v15 = vpop.eup %5736 }
0x13c3   :  { %v5739_v61 = vpop.eup %5738 }
0x13c4   :  { %v5741_v49 = vpop.eup %5740 }
0x13c5   :  { %v5743_v57 = vpop.eup %5742 }
0x1407   :  { %v4346_v50 = vpop.permute.xlu1 %4345 }
0x1408   :  { %v4367_v62 = vmul.f32 %v5731_v31, %v4346_v50 }
0x140a   :  { %v4342_v27 = vpop.permute.xlu0 %4341 }
0x140b   :  { %v4348_v2 = vpop.permute.xlu1 %4347  ;;  %v4365_v58 = vmul.f32 %v5733_v14, %v4342_v27 }
0x140c   :  { %v4368_v32 = vmul.f32 %v5735_v25, %v4348_v2 }
0x140e   :  { %v4344_v39 = vpop.permute.xlu0 %4343 }
0x140f   :  { %v4350_v36 = vpop.permute.xlu1 %4349  ;;  %v4366_v34 = vmul.f32 %v5729_v1, %v4344_v39 }
0x1410   :  { %v4369_v22 = vmul.f32 %v5737_v15, %v4350_v36 }
0x1412   :  { %v4354_v5 = vpop.permute.xlu0 %4353 }
0x1413   :  { %v4352_v13 = vpop.permute.xlu1 %4351  ;;  %v4371_v10 = vmul.f32 %v5743_v57, %v4354_v5 }
0x1414   :  { %v4370_v56 = vmul.f32 %v5739_v61, %v4352_v13 }
0x1416   :  { %v4356_v35 = vpop.permute.xlu0 %4355 }
0x1417   :  { %v4396_v48 = vpop.permute.xlu1 %4395  ;;  %v4372_v43 = vmul.f32 %v5741_v49, %v4356_v35 }
0x1418   :  { %v4416_v54 = vmul.f32 %v4396_v48, %v4368_v32 }
0x141a   :  { %v4390_v3 = vpop.permute.xlu0 %4389  ;;  %v4433_v19 = vrot.slane %v4416_v54, 5 }
0x141b   :  { %v4398_v46 = vpop.permute.xlu1 %4397  ;;  %v4413_v53 = vmul.f32 %v4390_v3, %v4365_v58 }
0x141c   :  { %v4417_v6 = vmul.f32 %v4398_v46, %v4369_v22 }
0x141e   :  { %v4392_v51 = vpop.permute.xlu0 %4391  ;;  %v4435_v21 = vrot.slane %v4417_v6, 4 }
0x141f   :  { %v4414_v9 = vmul.f32 %v4392_v51, %v4366_v34  ;;  %v4400_v8 = vpop.permute.xlu1 %4399 }
0x1420   :  { %v4418_v26 = vmul.f32 %v4400_v8, %v4370_v56 }
0x1421   :  { %v4429_v12 = vrot.slane %v4414_v9, 7 }
0x1422   :  { %v4394_v30 = vpop.permute.xlu0 %4393  ;;  %v4437_v60 = vrot.slane %v4418_v26, 3 }
0x1423   :  { %v4415_v59 = vmul.f32 %v4394_v30, %v4367_v62  ;;  %v4404_v37 = vpop.permute.xlu1 %4403  ;;  %v4430_v41 = vsel %vm249_vm2, %v4429_v12, %v4413_v53 }
0x1424   :  { %v4420_v7 = vmul.f32 %v4404_v37, %v4372_v43 }
0x1425   :  { %v4431_v23 = vrot.slane %v4415_v59, 6 }
0x1426   :  { %v4402_v0 = vpop.permute.xlu0 %4401  ;;  %v4441_v16 = vrot.slane %v4420_v7, 1 }
0x1427   :  { %v4432_v52 = vsel %vm252_vm3, %v4431_v23, %v4430_v41  ;;  %v4419_v28 = vmul.f32 %v4402_v0, %v4371_v10 }
0x1428   :  { %v4434_v20 = vsel %vm255_vm4, %v4433_v19, %v4432_v52 }
0x1429   :  { %v4436_v50 = vsel %vm258_vm5, %v4435_v21, %v4434_v20  ;;  %v4439_v47 = vrot.slane %v4419_v28, 2 }
0x142a   :  { %v4438_v55 = vsel %vm261_vm6, %v4437_v60, %v4436_v50 }
0x142b   :  { %v4440_v27 = vsel %vm264_vm7, %v4439_v47, %v4438_v55 }
0x142c   :  { %v4442_v17 = vsel %vm267_vm8, %v4441_v16, %v4440_v27 }
0x142d   :  { %4443 = vrot.lane.b32.xlu0 %v4442_v17, %s5759_s0 }
0x149f   :  { %v4444_v45 = vpop.permute.xlu0 %4443 }
0x14a0   :  { %4613 = vst.msk [vmem:[%s8065_s5 + $0x38] sm:$0xff] %vm29_vm0, %v4444_v45  ;;  %4448 = vst.msk [vmem:[#allocation2] sm:$0xff] %vm29_vm0, %v4444_v45 }
0x14a7   :  { %v4517_v42 = vld [vmem:[#allocation2] sm:$0xff] }
0x14a8   :  { %4521 = vst.msk [vmem:[%s8066_s6] sm:$0xff] %vm29_vm0, %v4517_v42 }

</bundles_post_ra>
